<compile_context>
chip_gen: v5e
topology: v5e:2x2
jax: 0.10.0
libtpu: 0.0.40
codegen_flags: <defaults>
</compile_context>

<pallas_src>
import numpy as np
import jax
import jax.numpy as jnp
from jax.experimental import pallas as pl
from jax.experimental.pallas import tpu as pltpu

LANES = 128
EPS = 1e-5
C1P = 8    # conv1 channels padded 6 -> 8 (lane-group width of the conv1 activation)
C2 = 16    # conv2 channels (exact)


# ----------------------------- in-kernel helpers ---------------------------- #

def _bn_relu(z, eps=EPS):
    """BatchNorm (training mode, biased var, affine=False) + ReLU over rows, per column. f32."""
    mean = jnp.mean(z, axis=0, keepdims=True)
    zc = z - mean
    var = jnp.mean(zc * zc, axis=0, keepdims=True)            # two-pass (centered) variance
    return jnp.maximum(zc * jax.lax.rsqrt(var + eps), 0.0)


def _bn_relu_grouped(z, g_avg, g_exp, eps=EPS):
    """BatchNorm2d + ReLU for a (rows=(n,i), lanes=(j,c)) layout.

    Per-channel stats require reducing over rows AND over the spatial-j lane groups; the
    lane-group fold / broadcast-back are tiny constant matmuls (g_avg, g_exp), all f32."""
    col_mean = jnp.mean(z, axis=0, keepdims=True)                               # (1, J*C)
    mean_c = jnp.dot(col_mean, g_avg, preferred_element_type=jnp.float32)       # (1, C)
    mean_b = jnp.dot(mean_c, g_exp, preferred_element_type=jnp.float32)         # (1, J*C)
    zc = z - mean_b
    col_var = jnp.mean(zc * zc, axis=0, keepdims=True)
    var_c = jnp.dot(col_var, g_avg, preferred_element_type=jnp.float32)
    var_b = jnp.dot(var_c, g_exp, preferred_element_type=jnp.float32)
    return jnp.maximum(zc * jax.lax.rsqrt(var_b + eps), 0.0)


def _pool_pair(y, sel_even, sel_odd, left):
    """One direction of the 2x2 max-pool: two 0/1 selection matmuls + elementwise max.

    Selection of bf16-representable values is exact; max is done in f32."""
    yb = y.astype(jnp.bfloat16)
    if left:   # pool over rows (the H direction)
        a = jnp.dot(sel_even, yb, preferred_element_type=jnp.float32)
        b = jnp.dot(sel_odd, yb, preferred_element_type=jnp.float32)
    else:      # pool over lane groups (the W direction)
        a = jnp.dot(yb, sel_even, preferred_element_type=jnp.float32)
        b = jnp.dot(yb, sel_odd, preferred_element_type=jnp.float32)
    return jnp.maximum(a, b)


# ------------------------------- fused kernel ------------------------------- #

def _lenet_kernel(x_ref, r1_ref, b1_ref, g1a_ref, g1e_ref, s1_ref, p1_ref,
                  r2_ref, b2_ref, g2a_ref, g2e_ref, s2_ref, p2_ref,
                  f_ref, w1b_ref, w2f_ref, w3f_ref, b3_ref, o_ref):
    f32 = jnp.float32
    bf16 = jnp.bfloat16

    # ---- conv1 (bias absorbed by BN): 5 banded matmuls over kernel-row shifts ---- #
    xb = x_ref[...].astype(bf16)                                                  # (N*28, 28)
    z1 = None
    for di in range(5):
        rows = jnp.dot(r1_ref[di], xb, preferred_element_type=f32).astype(bf16)  # (N*24, 28)
        t = jnp.dot(rows, b1_ref[di], preferred_element_type=f32)                # (N*24, 24*C1P)
        z1 = t if z1 is None else z1 + t
    y1 = _bn_relu_grouped(z1, g1a_ref[...], g1e_ref[...])        # BN2d(6) over (n, i, j), f32
    y1 = _pool_pair(y1, s1_ref[0], s1_ref[1], left=True)         # H pool  -> (N*12, 24*C1P)
    h1 = _pool_pair(y1, p1_ref[0], p1_ref[1], left=False)        # W pool  -> (N*12, 12*C1P)
    h1 = h1.astype(bf16)

    # ---- conv2: row-shift selection + banded matmuls (in-kernel im2col) ---- #
    z2 = None
    for di in range(5):
        rows = jnp.dot(r2_ref[di], h1, preferred_element_type=f32).astype(bf16)  # (N*8, 12*C1P)
        t = jnp.dot(rows, b2_ref[di], preferred_element_type=f32)                # (N*8, 8*C2)
        z2 = t if z2 is None else z2 + t
    y2 = _bn_relu_grouped(z2, g2a_ref[...], g2e_ref[...])        # BN2d(16)
    y2 = _pool_pair(y2, s2_ref[0], s2_ref[1], left=True)         # -> (N*4, 8*C2)
    h2 = _pool_pair(y2, p2_ref[0], p2_ref[1], left=False)        # -> (N*4, 4*C2)
    h2 = h2.astype(bf16)

    # ---- flatten (PyTorch (c,h,w) order folded into the fc1 weight) + fc1 ---- #
    g = None
    for a in range(4):
        feats_a = jnp.dot(f_ref[a], h2, preferred_element_type=f32).astype(bf16)  # (N, 4*C2)
        t = jnp.dot(feats_a, w1b_ref[a], preferred_element_type=f32)              # (N, 128)
        g = t if g is None else g + t
    g = _bn_relu(g)                                               # BN1d(128)
    g = jnp.dot(g.astype(bf16), w2f_ref[...], preferred_element_type=f32)          # (N, 128) [84 real]
    g = _bn_relu(g)                                               # BN1d(84); padded cols stay 0
    o_ref[...] = (jnp.dot(g.astype(bf16), w3f_ref[...], preferred_element_type=f32)
                  + b3_ref[...])                                  # fc3 keeps its bias


# ------------------------------ wrapper glue --------------------------------- #

def _pad_last(a, n):
    pad = n - a.shape[-1]
    if pad == 0:
        return a
    widths = [(0, 0)] * (a.ndim - 1) + [(0, pad)]
    return jnp.pad(a, widths)


def _pad_rows(a, n):
    pad = n - a.shape[0]
    return jnp.pad(a, ((0, pad), (0, 0))) if pad else a


def _sel(shape, pairs):
    m = np.zeros(shape, np.float32)
    for r, c in pairs:
        m[r, c] = 1.0
    return m


def _build_structure_mats(n):
    """Constant 0/1 selection / pooling matrices and BN lane-group folding matrices."""
    r1 = np.stack([_sel((n * 24, n * 28),
                        [(b * 24 + i, b * 28 + i + di) for b in range(n) for i in range(24)])
                   for di in range(5)])                                     # conv1 row shifts
    s1 = np.stack([_sel((n * 12, n * 24),
                        [(b * 12 + a, b * 24 + 2 * a + p) for b in range(n) for a in range(12)])
                   for p in range(2)])                                      # conv1 H-pool
    p1 = np.stack([_sel((24 * C1P, 12 * C1P),
                        [((2 * b + p) * C1P + c, b * C1P + c) for b in range(12) for c in range(C1P)])
                   for p in range(2)])                                      # conv1 W-pool
    r2 = np.stack([_sel((n * 8, n * 12),
                        [(b * 8 + i, b * 12 + i + di) for b in range(n) for i in range(8)])
                   for di in range(5)])                                     # conv2 row shifts
    s2 = np.stack([_sel((n * 4, n * 8),
                        [(b * 4 + a, b * 8 + 2 * a + p) for b in range(n) for a in range(4)])
                   for p in range(2)])                                      # conv2 H-pool
    p2 = np.stack([_sel((8 * C2, 4 * C2),
                        [((2 * b + p) * C2 + c, b * C2 + c) for b in range(4) for c in range(C2)])
                   for p in range(2)])                                      # conv2 W-pool
    f = np.stack([_sel((n, n * 4), [(b, b * 4 + a) for b in range(n)]) for a in range(4)])  # flatten
    g1a = np.tile(np.eye(C1P, dtype=np.float32), (24, 1)) / 24.0            # (192, 8)
    g1e = np.tile(np.eye(C1P, dtype=np.float32), (1, 24))                   # (8, 192)
    g2a = np.tile(np.eye(C2, dtype=np.float32), (8, 1)) / 8.0               # (128, 16)
    g2e = np.tile(np.eye(C2, dtype=np.float32), (1, 8))                     # (16, 128)
    return r1, s1, p1, r2, s2, p2, f, g1a, g1e, g2a, g2e


def _band_weight(in_len, out_len, wk):
    """wk: (5, 5, Cin, Cout) indexed (di, dj, ci, co) -> banded matrices B[di] of shape
    (in_len*Cin, out_len*Cout) with B[di][w*Cin+ci, j*Cout+co] = wk[di, w-j, ci, co], 0<=w-j<5."""
    k = wk.shape[0]
    ind = np.zeros((k, in_len, out_len), np.float32)
    for dj in range(k):
        for j in range(out_len):
            ind[dj, j + dj, j] = 1.0
    b = jnp.einsum("awj,daic->dwijc", jnp.asarray(ind), wk)
    d, w, ci, j, co = b.shape
    return b.reshape(d, w * ci, j * co)


def lenet_bn_forward(x, params):
    """x: (N, 1, 28, 28) f32 NCHW -> (N, num_classes). Whole forward is one Pallas kernel."""
    N = x.shape[0]
    num_classes = params["fc3_w"].shape[0]
    bf = jnp.bfloat16

    x2d = x.reshape(N * 28, 28)      # (n, h) rows, w cols; pure view, no data expansion

    r1, s1, p1, r2, s2, p2, f, g1a, g1e, g2a, g2e = _build_structure_mats(N)
    r1, s1, p1 = jnp.asarray(r1, bf), jnp.asarray(s1, bf), jnp.asarray(p1, bf)
    r2, s2, p2 = jnp.asarray(r2, bf), jnp.asarray(s2, bf), jnp.asarray(p2, bf)
    f = jnp.asarray(f, bf)
    g1a, g1e = jnp.asarray(g1a), jnp.asarray(g1e)
    g2a, g2e = jnp.asarray(g2a), jnp.asarray(g2e)

    # Weights (conv1/conv2/fc1/fc2 biases dropped: exactly absorbed by affine=False BN).
    wk1 = jnp.pad(params["conv1_w"].transpose(2, 3, 1, 0),
                  ((0, 0), (0, 0), (0, 0), (0, C1P - 6)))                   # (5,5,1,8)
    b1 = _band_weight(28, 24, wk1).astype(bf)                               # (5, 28, 192)
    wk2 = jnp.pad(params["conv2_w"].transpose(2, 3, 1, 0),
                  ((0, 0), (0, 0), (0, C1P - 6), (0, 0)))                   # (5,5,8,16)
    b2 = _band_weight(12, 8, wk2).astype(bf)                                # (5, 96, 128)

    # fc1: permute input features from PyTorch (c,h,w) order to our (h,w,c) order, block by h.
    w1p = (params["fc1_w"].reshape(128, C2, 4, 4).transpose(0, 2, 3, 1)
           .reshape(128, 256).T)                                            # (256, 128)
    w1blk = w1p.reshape(4, 64, 128).astype(bf)
    w2f = _pad_last(params["fc2_w"].T, LANES).astype(bf)                    # (128, 128)
    w3f = _pad_last(_pad_rows(params["fc3_w"].T, LANES), LANES).astype(bf)  # (128, 128)
    b3 = _pad_last(params["fc3_b"].reshape(1, -1), LANES).astype(jnp.float32)

    args = (x2d, r1, b1, g1a, g1e, s1, p1, r2, b2, g2a, g2e, s2, p2,
            f, w1blk, w2f, w3f, b3)

    def vspec(a):
        return pl.BlockSpec(a.shape, lambda i, z=(0,) * a.ndim: z)

    out = pl.pallas_call(
        _lenet_kernel,
        out_shape=jax.ShapeDtypeStruct((N, LANES), jnp.float32),
        grid=(1,),
        in_specs=[vspec(a) for a in args],
        out_specs=pl.BlockSpec((N, LANES), lambda i: (0, 0)),
        compiler_params=pltpu.CompilerParams(
            dimension_semantics=("arbitrary",),
            vmem_limit_bytes=32 * 1024 * 1024),     # resident set << 32 MiB on all generations
    )(*args)
    return out[:, :num_classes]


def init_params(key, num_classes=10):
    ks = jax.random.split(key, 10)
    f32 = jnp.float32

    def w(k, shape, fan_in):
        return (jax.random.normal(k, shape, f32) * (1.0 / jnp.sqrt(fan_in))).astype(f32)

    # conv1/conv2/fc1/fc2 biases exist in the module but are no-ops under affine=False BN,
    # so the fused kernel does not consume them.
    return {
        "conv1_w": w(ks[0], (6, 1, 5, 5), 1 * 5 * 5),
        "conv1_b": w(ks[1], (6,), 1 * 5 * 5),
        "conv2_w": w(ks[2], (16, 6, 5, 5), 6 * 5 * 5),
        "conv2_b": w(ks[3], (16,), 6 * 5 * 5),
        "fc1_w":  w(ks[4], (128, 256), 256),
        "fc1_b":  w(ks[5], (128,), 256),
        "fc2_w":  w(ks[6], (84, 128), 128),
        "fc2_b":  w(ks[7], (84,), 128),
        "fc3_w":  w(ks[8], (num_classes, 84), 84),
        "fc3_b":  w(ks[9], (num_classes,), 84),
    }


if __name__ == "__main__":
    key = jax.random.PRNGKey(0)
    k_params, k_x = jax.random.split(key)
    params = init_params(k_params, num_classes=10)

    # Input must be (N, 1, 28, 28) so the flattened features == 256 (fc1 in_features).
    x = jax.random.normal(k_x, (4, 1, 28, 28), jnp.float32)

    fwd = jax.jit(lambda xx: lenet_bn_forward(xx, params))
    out = fwd(x)
    jax.block_until_ready(out)
    assert out.shape == (4, 10) and out.dtype == jnp.float32
    assert bool(jnp.all(jnp.isfinite(out)))
    print("KERNEL_OK")
</pallas_src>

<mosaic_0001>
module attributes {stable_mosaic.version = 11 : i64} {
  func.func @_lenet_kernel(%arg0: i32, %arg1: memref<112x28xf32, #tpu.memory_space<vmem>>, %arg2: memref<5x96x112xbf16, #tpu.memory_space<vmem>>, %arg3: memref<5x28x192xbf16, #tpu.memory_space<vmem>>, %arg4: memref<192x8xf32, #tpu.memory_space<vmem>>, %arg5: memref<8x192xf32, #tpu.memory_space<vmem>>, %arg6: memref<2x48x96xbf16, #tpu.memory_space<vmem>>, %arg7: memref<2x192x96xbf16, #tpu.memory_space<vmem>>, %arg8: memref<5x32x48xbf16, #tpu.memory_space<vmem>>, %arg9: memref<5x96x128xbf16, #tpu.memory_space<vmem>>, %arg10: memref<128x16xf32, #tpu.memory_space<vmem>>, %arg11: memref<16x128xf32, #tpu.memory_space<vmem>>, %arg12: memref<2x16x32xbf16, #tpu.memory_space<vmem>>, %arg13: memref<2x128x64xbf16, #tpu.memory_space<vmem>>, %arg14: memref<4x4x16xbf16, #tpu.memory_space<vmem>>, %arg15: memref<4x64x128xbf16, #tpu.memory_space<vmem>>, %arg16: memref<128x128xbf16, #tpu.memory_space<vmem>>, %arg17: memref<128x128xbf16, #tpu.memory_space<vmem>>, %arg18: memref<1x128xf32, #tpu.memory_space<vmem>>, %arg19: memref<4x128xf32, #tpu.memory_space<vmem>>) attributes {dimension_semantics = [#tpu.dimension_semantics<arbitrary>], iteration_bounds = array<i64: 1>, scalar_prefetch = 0 : i64, scratch_operands = 0 : i64, tpu.core_type = #tpu.core_type<tc>, window_params = [{pipeline_mode = #tpu.pipeline_mode<synchronous>, transform_indices = @transform_0, window_bounds = array<i64: 112, 28>}, {pipeline_mode = #tpu.pipeline_mode<synchronous>, transform_indices = @transform_1, window_bounds = array<i64: 5, 96, 112>}, {pipeline_mode = #tpu.pipeline_mode<synchronous>, transform_indices = @transform_2, window_bounds = array<i64: 5, 28, 192>}, {pipeline_mode = #tpu.pipeline_mode<synchronous>, transform_indices = @transform_3, window_bounds = array<i64: 192, 8>}, {pipeline_mode = #tpu.pipeline_mode<synchronous>, transform_indices = @transform_4, window_bounds = array<i64: 8, 192>}, {pipeline_mode = #tpu.pipeline_mode<synchronous>, transform_indices = @transform_5, window_bounds = array<i64: 2, 48, 96>}, {pipeline_mode = #tpu.pipeline_mode<synchronous>, transform_indices = @transform_6, window_bounds = array<i64: 2, 192, 96>}, {pipeline_mode = #tpu.pipeline_mode<synchronous>, transform_indices = @transform_7, window_bounds = array<i64: 5, 32, 48>}, {pipeline_mode = #tpu.pipeline_mode<synchronous>, transform_indices = @transform_8, window_bounds = array<i64: 5, 96, 128>}, {pipeline_mode = #tpu.pipeline_mode<synchronous>, transform_indices = @transform_9, window_bounds = array<i64: 128, 16>}, {pipeline_mode = #tpu.pipeline_mode<synchronous>, transform_indices = @transform_10, window_bounds = array<i64: 16, 128>}, {pipeline_mode = #tpu.pipeline_mode<synchronous>, transform_indices = @transform_11, window_bounds = array<i64: 2, 16, 32>}, {pipeline_mode = #tpu.pipeline_mode<synchronous>, transform_indices = @transform_12, window_bounds = array<i64: 2, 128, 64>}, {pipeline_mode = #tpu.pipeline_mode<synchronous>, transform_indices = @transform_13, window_bounds = array<i64: 4, 4, 16>}, {pipeline_mode = #tpu.pipeline_mode<synchronous>, transform_indices = @transform_14, window_bounds = array<i64: 4, 64, 128>}, {pipeline_mode = #tpu.pipeline_mode<synchronous>, transform_indices = @transform_15, window_bounds = array<i64: 128, 128>}, {pipeline_mode = #tpu.pipeline_mode<synchronous>, transform_indices = @transform_16, window_bounds = array<i64: 128, 128>}, {pipeline_mode = #tpu.pipeline_mode<synchronous>, transform_indices = @transform_17, window_bounds = array<i64: 1, 128>}, {pipeline_mode = #tpu.pipeline_mode<synchronous>, transform_indices = @transform_18, window_bounds = array<i64: 4, 128>}]} {
    %c0 = arith.constant 0 : index
    %c0_0 = arith.constant 0 : index
    %0 = vector.load %arg1[%c0, %c0_0] : memref<112x28xf32, #tpu.memory_space<vmem>>, vector<112x28xf32>
    %1 = arith.truncf %0 : vector<112x28xf32> to vector<112x28xbf16>
    %c0_1 = arith.constant 0 : index
    %c0_2 = arith.constant 0 : index
    %c0_3 = arith.constant 0 : index
    %2 = vector.load %arg2[%c0_1, %c0_2, %c0_3] : memref<5x96x112xbf16, #tpu.memory_space<vmem>>, vector<1x96x112xbf16>
    %3 = vector.shape_cast %2 : vector<1x96x112xbf16> to vector<96x112xbf16>
    %cst = arith.constant dense<0.000000e+00> : vector<96x28xf32>
    %4 = tpu.matmul %3, %1, %cst {dimension_numbers = #tpu.dot_dimension_numbers<[1], [0], [0], [1], [0, 0, 1, 1], [], []>} : vector<96x112xbf16>, vector<112x28xbf16>, vector<96x28xf32> -> vector<96x28xf32>
    %5 = arith.truncf %4 : vector<96x28xf32> to vector<96x28xbf16>
    %c0_4 = arith.constant 0 : index
    %c0_5 = arith.constant 0 : index
    %c0_6 = arith.constant 0 : index
    %6 = vector.load %arg3[%c0_4, %c0_5, %c0_6] : memref<5x28x192xbf16, #tpu.memory_space<vmem>>, vector<1x28x192xbf16>
    %7 = vector.shape_cast %6 : vector<1x28x192xbf16> to vector<28x192xbf16>
    %cst_7 = arith.constant dense<0.000000e+00> : vector<96x192xf32>
    %8 = tpu.matmul %5, %7, %cst_7 {dimension_numbers = #tpu.dot_dimension_numbers<[1], [0], [0], [1], [0, 0, 1, 1], [], []>} : vector<96x28xbf16>, vector<28x192xbf16>, vector<96x192xf32> -> vector<96x192xf32>
    %c1 = arith.constant 1 : index
    %c0_8 = arith.constant 0 : index
    %c0_9 = arith.constant 0 : index
    %9 = vector.load %arg2[%c1, %c0_8, %c0_9] : memref<5x96x112xbf16, #tpu.memory_space<vmem>>, vector<1x96x112xbf16>
    %10 = vector.shape_cast %9 : vector<1x96x112xbf16> to vector<96x112xbf16>
    %cst_10 = arith.constant dense<0.000000e+00> : vector<96x28xf32>
    %11 = tpu.matmul %10, %1, %cst_10 {dimension_numbers = #tpu.dot_dimension_numbers<[1], [0], [0], [1], [0, 0, 1, 1], [], []>} : vector<96x112xbf16>, vector<112x28xbf16>, vector<96x28xf32> -> vector<96x28xf32>
    %12 = arith.truncf %11 : vector<96x28xf32> to vector<96x28xbf16>
    %c1_11 = arith.constant 1 : index
    %c0_12 = arith.constant 0 : index
    %c0_13 = arith.constant 0 : index
    %13 = vector.load %arg3[%c1_11, %c0_12, %c0_13] : memref<5x28x192xbf16, #tpu.memory_space<vmem>>, vector<1x28x192xbf16>
    %14 = vector.shape_cast %13 : vector<1x28x192xbf16> to vector<28x192xbf16>
    %cst_14 = arith.constant dense<0.000000e+00> : vector<96x192xf32>
    %15 = tpu.matmul %12, %14, %cst_14 {dimension_numbers = #tpu.dot_dimension_numbers<[1], [0], [0], [1], [0, 0, 1, 1], [], []>} : vector<96x28xbf16>, vector<28x192xbf16>, vector<96x192xf32> -> vector<96x192xf32>
    %16 = arith.addf %8, %15 : vector<96x192xf32>
    %c2 = arith.constant 2 : index
    %c0_15 = arith.constant 0 : index
    %c0_16 = arith.constant 0 : index
    %17 = vector.load %arg2[%c2, %c0_15, %c0_16] : memref<5x96x112xbf16, #tpu.memory_space<vmem>>, vector<1x96x112xbf16>
    %18 = vector.shape_cast %17 : vector<1x96x112xbf16> to vector<96x112xbf16>
    %cst_17 = arith.constant dense<0.000000e+00> : vector<96x28xf32>
    %19 = tpu.matmul %18, %1, %cst_17 {dimension_numbers = #tpu.dot_dimension_numbers<[1], [0], [0], [1], [0, 0, 1, 1], [], []>} : vector<96x112xbf16>, vector<112x28xbf16>, vector<96x28xf32> -> vector<96x28xf32>
    %20 = arith.truncf %19 : vector<96x28xf32> to vector<96x28xbf16>
    %c2_18 = arith.constant 2 : index
    %c0_19 = arith.constant 0 : index
    %c0_20 = arith.constant 0 : index
    %21 = vector.load %arg3[%c2_18, %c0_19, %c0_20] : memref<5x28x192xbf16, #tpu.memory_space<vmem>>, vector<1x28x192xbf16>
    %22 = vector.shape_cast %21 : vector<1x28x192xbf16> to vector<28x192xbf16>
    %cst_21 = arith.constant dense<0.000000e+00> : vector<96x192xf32>
    %23 = tpu.matmul %20, %22, %cst_21 {dimension_numbers = #tpu.dot_dimension_numbers<[1], [0], [0], [1], [0, 0, 1, 1], [], []>} : vector<96x28xbf16>, vector<28x192xbf16>, vector<96x192xf32> -> vector<96x192xf32>
    %24 = arith.addf %16, %23 : vector<96x192xf32>
    %c3 = arith.constant 3 : index
    %c0_22 = arith.constant 0 : index
    %c0_23 = arith.constant 0 : index
    %25 = vector.load %arg2[%c3, %c0_22, %c0_23] : memref<5x96x112xbf16, #tpu.memory_space<vmem>>, vector<1x96x112xbf16>
    %26 = vector.shape_cast %25 : vector<1x96x112xbf16> to vector<96x112xbf16>
    %cst_24 = arith.constant dense<0.000000e+00> : vector<96x28xf32>
    %27 = tpu.matmul %26, %1, %cst_24 {dimension_numbers = #tpu.dot_dimension_numbers<[1], [0], [0], [1], [0, 0, 1, 1], [], []>} : vector<96x112xbf16>, vector<112x28xbf16>, vector<96x28xf32> -> vector<96x28xf32>
    %28 = arith.truncf %27 : vector<96x28xf32> to vector<96x28xbf16>
    %c3_25 = arith.constant 3 : index
    %c0_26 = arith.constant 0 : index
    %c0_27 = arith.constant 0 : index
    %29 = vector.load %arg3[%c3_25, %c0_26, %c0_27] : memref<5x28x192xbf16, #tpu.memory_space<vmem>>, vector<1x28x192xbf16>
    %30 = vector.shape_cast %29 : vector<1x28x192xbf16> to vector<28x192xbf16>
    %cst_28 = arith.constant dense<0.000000e+00> : vector<96x192xf32>
    %31 = tpu.matmul %28, %30, %cst_28 {dimension_numbers = #tpu.dot_dimension_numbers<[1], [0], [0], [1], [0, 0, 1, 1], [], []>} : vector<96x28xbf16>, vector<28x192xbf16>, vector<96x192xf32> -> vector<96x192xf32>
    %32 = arith.addf %24, %31 : vector<96x192xf32>
    %c4 = arith.constant 4 : index
    %c0_29 = arith.constant 0 : index
    %c0_30 = arith.constant 0 : index
    %33 = vector.load %arg2[%c4, %c0_29, %c0_30] : memref<5x96x112xbf16, #tpu.memory_space<vmem>>, vector<1x96x112xbf16>
    %34 = vector.shape_cast %33 : vector<1x96x112xbf16> to vector<96x112xbf16>
    %cst_31 = arith.constant dense<0.000000e+00> : vector<96x28xf32>
    %35 = tpu.matmul %34, %1, %cst_31 {dimension_numbers = #tpu.dot_dimension_numbers<[1], [0], [0], [1], [0, 0, 1, 1], [], []>} : vector<96x112xbf16>, vector<112x28xbf16>, vector<96x28xf32> -> vector<96x28xf32>
    %36 = arith.truncf %35 : vector<96x28xf32> to vector<96x28xbf16>
    %c4_32 = arith.constant 4 : index
    %c0_33 = arith.constant 0 : index
    %c0_34 = arith.constant 0 : index
    %37 = vector.load %arg3[%c4_32, %c0_33, %c0_34] : memref<5x28x192xbf16, #tpu.memory_space<vmem>>, vector<1x28x192xbf16>
    %38 = vector.shape_cast %37 : vector<1x28x192xbf16> to vector<28x192xbf16>
    %cst_35 = arith.constant dense<0.000000e+00> : vector<96x192xf32>
    %39 = tpu.matmul %36, %38, %cst_35 {dimension_numbers = #tpu.dot_dimension_numbers<[1], [0], [0], [1], [0, 0, 1, 1], [], []>} : vector<96x28xbf16>, vector<28x192xbf16>, vector<96x192xf32> -> vector<96x192xf32>
    %40 = arith.addf %32, %39 : vector<96x192xf32>
    %c0_36 = arith.constant 0 : index
    %c0_37 = arith.constant 0 : index
    %41 = vector.load %arg4[%c0_36, %c0_37] : memref<192x8xf32, #tpu.memory_space<vmem>>, vector<192x8xf32>
    %c0_38 = arith.constant 0 : index
    %c0_39 = arith.constant 0 : index
    %42 = vector.load %arg5[%c0_38, %c0_39] : memref<8x192xf32, #tpu.memory_space<vmem>>, vector<8x192xf32>
    %cst_40 = arith.constant dense<0.000000e+00> : vector<192xf32>
    %43 = vector.multi_reduction <add>, %40, %cst_40 [0] : vector<96x192xf32> to vector<192xf32>
    %44 = vector.shape_cast %43 : vector<192xf32> to vector<1x192xf32>
    %cst_41 = arith.constant 9.600000e+01 : f32
    %45 = vector.broadcast %cst_41 : f32 to vector<1x192xf32>
    %46 = arith.divf %44, %45 : vector<1x192xf32>
    %cst_42 = arith.constant dense<0.000000e+00> : vector<1x8xf32>
    %47 = tpu.matmul %46, %41, %cst_42 {dimension_numbers = #tpu.dot_dimension_numbers<[1], [0], [0], [1], [0, 0, 1, 1], [], []>} : vector<1x192xf32>, vector<192x8xf32>, vector<1x8xf32> -> vector<1x8xf32>
    %cst_43 = arith.constant dense<0.000000e+00> : vector<1x192xf32>
    %48 = tpu.matmul %47, %42, %cst_43 {dimension_numbers = #tpu.dot_dimension_numbers<[1], [0], [0], [1], [0, 0, 1, 1], [], []>} : vector<1x8xf32>, vector<8x192xf32>, vector<1x192xf32> -> vector<1x192xf32>
    %49 = vector.broadcast %48 : vector<1x192xf32> to vector<96x192xf32>
    %50 = arith.subf %40, %49 : vector<96x192xf32>
    %51 = arith.mulf %50, %50 : vector<96x192xf32>
    %cst_44 = arith.constant dense<0.000000e+00> : vector<192xf32>
    %52 = vector.multi_reduction <add>, %51, %cst_44 [0] : vector<96x192xf32> to vector<192xf32>
    %53 = vector.shape_cast %52 : vector<192xf32> to vector<1x192xf32>
    %cst_45 = arith.constant 9.600000e+01 : f32
    %54 = vector.broadcast %cst_45 : f32 to vector<1x192xf32>
    %55 = arith.divf %53, %54 : vector<1x192xf32>
    %cst_46 = arith.constant dense<0.000000e+00> : vector<1x8xf32>
    %56 = tpu.matmul %55, %41, %cst_46 {dimension_numbers = #tpu.dot_dimension_numbers<[1], [0], [0], [1], [0, 0, 1, 1], [], []>} : vector<1x192xf32>, vector<192x8xf32>, vector<1x8xf32> -> vector<1x8xf32>
    %cst_47 = arith.constant dense<0.000000e+00> : vector<1x192xf32>
    %57 = tpu.matmul %56, %42, %cst_47 {dimension_numbers = #tpu.dot_dimension_numbers<[1], [0], [0], [1], [0, 0, 1, 1], [], []>} : vector<1x8xf32>, vector<8x192xf32>, vector<1x192xf32> -> vector<1x192xf32>
    %cst_48 = arith.constant 9.99999974E-6 : f32
    %58 = vector.broadcast %cst_48 : f32 to vector<1x192xf32>
    %59 = arith.addf %57, %58 : vector<1x192xf32>
    %60 = math.rsqrt %59 : vector<1x192xf32>
    %61 = vector.broadcast %60 : vector<1x192xf32> to vector<96x192xf32>
    %62 = arith.mulf %50, %61 : vector<96x192xf32>
    %cst_49 = arith.constant 0.000000e+00 : f32
    %63 = vector.broadcast %cst_49 : f32 to vector<96x192xf32>
    %64 = arith.maximumf %62, %63 : vector<96x192xf32>
    %c0_50 = arith.constant 0 : index
    %c0_51 = arith.constant 0 : index
    %c0_52 = arith.constant 0 : index
    %65 = vector.load %arg6[%c0_50, %c0_51, %c0_52] : memref<2x48x96xbf16, #tpu.memory_space<vmem>>, vector<1x48x96xbf16>
    %66 = vector.shape_cast %65 : vector<1x48x96xbf16> to vector<48x96xbf16>
    %c1_53 = arith.constant 1 : index
    %c0_54 = arith.constant 0 : index
    %c0_55 = arith.constant 0 : index
    %67 = vector.load %arg6[%c1_53, %c0_54, %c0_55] : memref<2x48x96xbf16, #tpu.memory_space<vmem>>, vector<1x48x96xbf16>
    %68 = vector.shape_cast %67 : vector<1x48x96xbf16> to vector<48x96xbf16>
    %69 = arith.truncf %64 : vector<96x192xf32> to vector<96x192xbf16>
    %cst_56 = arith.constant dense<0.000000e+00> : vector<48x192xf32>
    %70 = tpu.matmul %66, %69, %cst_56 {dimension_numbers = #tpu.dot_dimension_numbers<[1], [0], [0], [1], [0, 0, 1, 1], [], []>} : vector<48x96xbf16>, vector<96x192xbf16>, vector<48x192xf32> -> vector<48x192xf32>
    %cst_57 = arith.constant dense<0.000000e+00> : vector<48x192xf32>
    %71 = tpu.matmul %68, %69, %cst_57 {dimension_numbers = #tpu.dot_dimension_numbers<[1], [0], [0], [1], [0, 0, 1, 1], [], []>} : vector<48x96xbf16>, vector<96x192xbf16>, vector<48x192xf32> -> vector<48x192xf32>
    %72 = arith.maximumf %70, %71 : vector<48x192xf32>
    %c0_58 = arith.constant 0 : index
    %c0_59 = arith.constant 0 : index
    %c0_60 = arith.constant 0 : index
    %73 = vector.load %arg7[%c0_58, %c0_59, %c0_60] : memref<2x192x96xbf16, #tpu.memory_space<vmem>>, vector<1x192x96xbf16>
    %74 = vector.shape_cast %73 : vector<1x192x96xbf16> to vector<192x96xbf16>
    %c1_61 = arith.constant 1 : index
    %c0_62 = arith.constant 0 : index
    %c0_63 = arith.constant 0 : index
    %75 = vector.load %arg7[%c1_61, %c0_62, %c0_63] : memref<2x192x96xbf16, #tpu.memory_space<vmem>>, vector<1x192x96xbf16>
    %76 = vector.shape_cast %75 : vector<1x192x96xbf16> to vector<192x96xbf16>
    %77 = arith.truncf %72 : vector<48x192xf32> to vector<48x192xbf16>
    %cst_64 = arith.constant dense<0.000000e+00> : vector<48x96xf32>
    %78 = tpu.matmul %77, %74, %cst_64 {dimension_numbers = #tpu.dot_dimension_numbers<[1], [0], [0], [1], [0, 0, 1, 1], [], []>} : vector<48x192xbf16>, vector<192x96xbf16>, vector<48x96xf32> -> vector<48x96xf32>
    %cst_65 = arith.constant dense<0.000000e+00> : vector<48x96xf32>
    %79 = tpu.matmul %77, %76, %cst_65 {dimension_numbers = #tpu.dot_dimension_numbers<[1], [0], [0], [1], [0, 0, 1, 1], [], []>} : vector<48x192xbf16>, vector<192x96xbf16>, vector<48x96xf32> -> vector<48x96xf32>
    %80 = arith.maximumf %78, %79 : vector<48x96xf32>
    %81 = arith.truncf %80 : vector<48x96xf32> to vector<48x96xbf16>
    %c0_66 = arith.constant 0 : index
    %c0_67 = arith.constant 0 : index
    %c0_68 = arith.constant 0 : index
    %82 = vector.load %arg8[%c0_66, %c0_67, %c0_68] : memref<5x32x48xbf16, #tpu.memory_space<vmem>>, vector<1x32x48xbf16>
    %83 = vector.shape_cast %82 : vector<1x32x48xbf16> to vector<32x48xbf16>
    %cst_69 = arith.constant dense<0.000000e+00> : vector<32x96xf32>
    %84 = tpu.matmul %83, %81, %cst_69 {dimension_numbers = #tpu.dot_dimension_numbers<[1], [0], [0], [1], [0, 0, 1, 1], [], []>} : vector<32x48xbf16>, vector<48x96xbf16>, vector<32x96xf32> -> vector<32x96xf32>
    %85 = arith.truncf %84 : vector<32x96xf32> to vector<32x96xbf16>
    %c0_70 = arith.constant 0 : index
    %c0_71 = arith.constant 0 : index
    %c0_72 = arith.constant 0 : index
    %86 = vector.load %arg9[%c0_70, %c0_71, %c0_72] : memref<5x96x128xbf16, #tpu.memory_space<vmem>>, vector<1x96x128xbf16>
    %87 = vector.shape_cast %86 : vector<1x96x128xbf16> to vector<96x128xbf16>
    %cst_73 = arith.constant dense<0.000000e+00> : vector<32x128xf32>
    %88 = tpu.matmul %85, %87, %cst_73 {dimension_numbers = #tpu.dot_dimension_numbers<[1], [0], [0], [1], [0, 0, 1, 1], [], []>} : vector<32x96xbf16>, vector<96x128xbf16>, vector<32x128xf32> -> vector<32x128xf32>
    %c1_74 = arith.constant 1 : index
    %c0_75 = arith.constant 0 : index
    %c0_76 = arith.constant 0 : index
    %89 = vector.load %arg8[%c1_74, %c0_75, %c0_76] : memref<5x32x48xbf16, #tpu.memory_space<vmem>>, vector<1x32x48xbf16>
    %90 = vector.shape_cast %89 : vector<1x32x48xbf16> to vector<32x48xbf16>
    %cst_77 = arith.constant dense<0.000000e+00> : vector<32x96xf32>
    %91 = tpu.matmul %90, %81, %cst_77 {dimension_numbers = #tpu.dot_dimension_numbers<[1], [0], [0], [1], [0, 0, 1, 1], [], []>} : vector<32x48xbf16>, vector<48x96xbf16>, vector<32x96xf32> -> vector<32x96xf32>
    %92 = arith.truncf %91 : vector<32x96xf32> to vector<32x96xbf16>
    %c1_78 = arith.constant 1 : index
    %c0_79 = arith.constant 0 : index
    %c0_80 = arith.constant 0 : index
    %93 = vector.load %arg9[%c1_78, %c0_79, %c0_80] : memref<5x96x128xbf16, #tpu.memory_space<vmem>>, vector<1x96x128xbf16>
    %94 = vector.shape_cast %93 : vector<1x96x128xbf16> to vector<96x128xbf16>
    %cst_81 = arith.constant dense<0.000000e+00> : vector<32x128xf32>
    %95 = tpu.matmul %92, %94, %cst_81 {dimension_numbers = #tpu.dot_dimension_numbers<[1], [0], [0], [1], [0, 0, 1, 1], [], []>} : vector<32x96xbf16>, vector<96x128xbf16>, vector<32x128xf32> -> vector<32x128xf32>
    %96 = arith.addf %88, %95 : vector<32x128xf32>
    %c2_82 = arith.constant 2 : index
    %c0_83 = arith.constant 0 : index
    %c0_84 = arith.constant 0 : index
    %97 = vector.load %arg8[%c2_82, %c0_83, %c0_84] : memref<5x32x48xbf16, #tpu.memory_space<vmem>>, vector<1x32x48xbf16>
    %98 = vector.shape_cast %97 : vector<1x32x48xbf16> to vector<32x48xbf16>
    %cst_85 = arith.constant dense<0.000000e+00> : vector<32x96xf32>
    %99 = tpu.matmul %98, %81, %cst_85 {dimension_numbers = #tpu.dot_dimension_numbers<[1], [0], [0], [1], [0, 0, 1, 1], [], []>} : vector<32x48xbf16>, vector<48x96xbf16>, vector<32x96xf32> -> vector<32x96xf32>
    %100 = arith.truncf %99 : vector<32x96xf32> to vector<32x96xbf16>
    %c2_86 = arith.constant 2 : index
    %c0_87 = arith.constant 0 : index
    %c0_88 = arith.constant 0 : index
    %101 = vector.load %arg9[%c2_86, %c0_87, %c0_88] : memref<5x96x128xbf16, #tpu.memory_space<vmem>>, vector<1x96x128xbf16>
    %102 = vector.shape_cast %101 : vector<1x96x128xbf16> to vector<96x128xbf16>
    %cst_89 = arith.constant dense<0.000000e+00> : vector<32x128xf32>
    %103 = tpu.matmul %100, %102, %cst_89 {dimension_numbers = #tpu.dot_dimension_numbers<[1], [0], [0], [1], [0, 0, 1, 1], [], []>} : vector<32x96xbf16>, vector<96x128xbf16>, vector<32x128xf32> -> vector<32x128xf32>
    %104 = arith.addf %96, %103 : vector<32x128xf32>
    %c3_90 = arith.constant 3 : index
    %c0_91 = arith.constant 0 : index
    %c0_92 = arith.constant 0 : index
    %105 = vector.load %arg8[%c3_90, %c0_91, %c0_92] : memref<5x32x48xbf16, #tpu.memory_space<vmem>>, vector<1x32x48xbf16>
    %106 = vector.shape_cast %105 : vector<1x32x48xbf16> to vector<32x48xbf16>
    %cst_93 = arith.constant dense<0.000000e+00> : vector<32x96xf32>
    %107 = tpu.matmul %106, %81, %cst_93 {dimension_numbers = #tpu.dot_dimension_numbers<[1], [0], [0], [1], [0, 0, 1, 1], [], []>} : vector<32x48xbf16>, vector<48x96xbf16>, vector<32x96xf32> -> vector<32x96xf32>
    %108 = arith.truncf %107 : vector<32x96xf32> to vector<32x96xbf16>
    %c3_94 = arith.constant 3 : index
    %c0_95 = arith.constant 0 : index
    %c0_96 = arith.constant 0 : index
    %109 = vector.load %arg9[%c3_94, %c0_95, %c0_96] : memref<5x96x128xbf16, #tpu.memory_space<vmem>>, vector<1x96x128xbf16>
    %110 = vector.shape_cast %109 : vector<1x96x128xbf16> to vector<96x128xbf16>
    %cst_97 = arith.constant dense<0.000000e+00> : vector<32x128xf32>
    %111 = tpu.matmul %108, %110, %cst_97 {dimension_numbers = #tpu.dot_dimension_numbers<[1], [0], [0], [1], [0, 0, 1, 1], [], []>} : vector<32x96xbf16>, vector<96x128xbf16>, vector<32x128xf32> -> vector<32x128xf32>
    %112 = arith.addf %104, %111 : vector<32x128xf32>
    %c4_98 = arith.constant 4 : index
    %c0_99 = arith.constant 0 : index
    %c0_100 = arith.constant 0 : index
    %113 = vector.load %arg8[%c4_98, %c0_99, %c0_100] : memref<5x32x48xbf16, #tpu.memory_space<vmem>>, vector<1x32x48xbf16>
    %114 = vector.shape_cast %113 : vector<1x32x48xbf16> to vector<32x48xbf16>
    %cst_101 = arith.constant dense<0.000000e+00> : vector<32x96xf32>
    %115 = tpu.matmul %114, %81, %cst_101 {dimension_numbers = #tpu.dot_dimension_numbers<[1], [0], [0], [1], [0, 0, 1, 1], [], []>} : vector<32x48xbf16>, vector<48x96xbf16>, vector<32x96xf32> -> vector<32x96xf32>
    %116 = arith.truncf %115 : vector<32x96xf32> to vector<32x96xbf16>
    %c4_102 = arith.constant 4 : index
    %c0_103 = arith.constant 0 : index
    %c0_104 = arith.constant 0 : index
    %117 = vector.load %arg9[%c4_102, %c0_103, %c0_104] : memref<5x96x128xbf16, #tpu.memory_space<vmem>>, vector<1x96x128xbf16>
    %118 = vector.shape_cast %117 : vector<1x96x128xbf16> to vector<96x128xbf16>
    %cst_105 = arith.constant dense<0.000000e+00> : vector<32x128xf32>
    %119 = tpu.matmul %116, %118, %cst_105 {dimension_numbers = #tpu.dot_dimension_numbers<[1], [0], [0], [1], [0, 0, 1, 1], [], []>} : vector<32x96xbf16>, vector<96x128xbf16>, vector<32x128xf32> -> vector<32x128xf32>
    %120 = arith.addf %112, %119 : vector<32x128xf32>
    %c0_106 = arith.constant 0 : index
    %c0_107 = arith.constant 0 : index
    %121 = vector.load %arg10[%c0_106, %c0_107] : memref<128x16xf32, #tpu.memory_space<vmem>>, vector<128x16xf32>
    %c0_108 = arith.constant 0 : index
    %c0_109 = arith.constant 0 : index
    %122 = vector.load %arg11[%c0_108, %c0_109] : memref<16x128xf32, #tpu.memory_space<vmem>>, vector<16x128xf32>
    %cst_110 = arith.constant dense<0.000000e+00> : vector<128xf32>
    %123 = vector.multi_reduction <add>, %120, %cst_110 [0] : vector<32x128xf32> to vector<128xf32>
    %124 = vector.shape_cast %123 : vector<128xf32> to vector<1x128xf32>
    %cst_111 = arith.constant 3.200000e+01 : f32
    %125 = vector.broadcast %cst_111 : f32 to vector<1x128xf32>
    %126 = arith.divf %124, %125 : vector<1x128xf32>
    %cst_112 = arith.constant dense<0.000000e+00> : vector<1x16xf32>
    %127 = tpu.matmul %126, %121, %cst_112 {dimension_numbers = #tpu.dot_dimension_numbers<[1], [0], [0], [1], [0, 0, 1, 1], [], []>} : vector<1x128xf32>, vector<128x16xf32>, vector<1x16xf32> -> vector<1x16xf32>
    %cst_113 = arith.constant dense<0.000000e+00> : vector<1x128xf32>
    %128 = tpu.matmul %127, %122, %cst_113 {dimension_numbers = #tpu.dot_dimension_numbers<[1], [0], [0], [1], [0, 0, 1, 1], [], []>} : vector<1x16xf32>, vector<16x128xf32>, vector<1x128xf32> -> vector<1x128xf32>
    %129 = vector.broadcast %128 : vector<1x128xf32> to vector<32x128xf32>
    %130 = arith.subf %120, %129 : vector<32x128xf32>
    %131 = arith.mulf %130, %130 : vector<32x128xf32>
    %cst_114 = arith.constant dense<0.000000e+00> : vector<128xf32>
    %132 = vector.multi_reduction <add>, %131, %cst_114 [0] : vector<32x128xf32> to vector<128xf32>
    %133 = vector.shape_cast %132 : vector<128xf32> to vector<1x128xf32>
    %cst_115 = arith.constant 3.200000e+01 : f32
    %134 = vector.broadcast %cst_115 : f32 to vector<1x128xf32>
    %135 = arith.divf %133, %134 : vector<1x128xf32>
    %cst_116 = arith.constant dense<0.000000e+00> : vector<1x16xf32>
    %136 = tpu.matmul %135, %121, %cst_116 {dimension_numbers = #tpu.dot_dimension_numbers<[1], [0], [0], [1], [0, 0, 1, 1], [], []>} : vector<1x128xf32>, vector<128x16xf32>, vector<1x16xf32> -> vector<1x16xf32>
    %cst_117 = arith.constant dense<0.000000e+00> : vector<1x128xf32>
    %137 = tpu.matmul %136, %122, %cst_117 {dimension_numbers = #tpu.dot_dimension_numbers<[1], [0], [0], [1], [0, 0, 1, 1], [], []>} : vector<1x16xf32>, vector<16x128xf32>, vector<1x128xf32> -> vector<1x128xf32>
    %cst_118 = arith.constant 9.99999974E-6 : f32
    %138 = vector.broadcast %cst_118 : f32 to vector<1x128xf32>
    %139 = arith.addf %137, %138 : vector<1x128xf32>
    %140 = math.rsqrt %139 : vector<1x128xf32>
    %141 = vector.broadcast %140 : vector<1x128xf32> to vector<32x128xf32>
    %142 = arith.mulf %130, %141 : vector<32x128xf32>
    %cst_119 = arith.constant 0.000000e+00 : f32
    %143 = vector.broadcast %cst_119 : f32 to vector<32x128xf32>
    %144 = arith.maximumf %142, %143 : vector<32x128xf32>
    %c0_120 = arith.constant 0 : index
    %c0_121 = arith.constant 0 : index
    %c0_122 = arith.constant 0 : index
    %145 = vector.load %arg12[%c0_120, %c0_121, %c0_122] : memref<2x16x32xbf16, #tpu.memory_space<vmem>>, vector<1x16x32xbf16>
    %146 = vector.shape_cast %145 : vector<1x16x32xbf16> to vector<16x32xbf16>
    %c1_123 = arith.constant 1 : index
    %c0_124 = arith.constant 0 : index
    %c0_125 = arith.constant 0 : index
    %147 = vector.load %arg12[%c1_123, %c0_124, %c0_125] : memref<2x16x32xbf16, #tpu.memory_space<vmem>>, vector<1x16x32xbf16>
    %148 = vector.shape_cast %147 : vector<1x16x32xbf16> to vector<16x32xbf16>
    %149 = arith.truncf %144 : vector<32x128xf32> to vector<32x128xbf16>
    %cst_126 = arith.constant dense<0.000000e+00> : vector<16x128xf32>
    %150 = tpu.matmul %146, %149, %cst_126 {dimension_numbers = #tpu.dot_dimension_numbers<[1], [0], [0], [1], [0, 0, 1, 1], [], []>} : vector<16x32xbf16>, vector<32x128xbf16>, vector<16x128xf32> -> vector<16x128xf32>
    %cst_127 = arith.constant dense<0.000000e+00> : vector<16x128xf32>
    %151 = tpu.matmul %148, %149, %cst_127 {dimension_numbers = #tpu.dot_dimension_numbers<[1], [0], [0], [1], [0, 0, 1, 1], [], []>} : vector<16x32xbf16>, vector<32x128xbf16>, vector<16x128xf32> -> vector<16x128xf32>
    %152 = arith.maximumf %150, %151 : vector<16x128xf32>
    %c0_128 = arith.constant 0 : index
    %c0_129 = arith.constant 0 : index
    %c0_130 = arith.constant 0 : index
    %153 = vector.load %arg13[%c0_128, %c0_129, %c0_130] : memref<2x128x64xbf16, #tpu.memory_space<vmem>>, vector<1x128x64xbf16>
    %154 = vector.shape_cast %153 : vector<1x128x64xbf16> to vector<128x64xbf16>
    %c1_131 = arith.constant 1 : index
    %c0_132 = arith.constant 0 : index
    %c0_133 = arith.constant 0 : index
    %155 = vector.load %arg13[%c1_131, %c0_132, %c0_133] : memref<2x128x64xbf16, #tpu.memory_space<vmem>>, vector<1x128x64xbf16>
    %156 = vector.shape_cast %155 : vector<1x128x64xbf16> to vector<128x64xbf16>
    %157 = arith.truncf %152 : vector<16x128xf32> to vector<16x128xbf16>
    %cst_134 = arith.constant dense<0.000000e+00> : vector<16x64xf32>
    %158 = tpu.matmul %157, %154, %cst_134 {dimension_numbers = #tpu.dot_dimension_numbers<[1], [0], [0], [1], [0, 0, 1, 1], [], []>} : vector<16x128xbf16>, vector<128x64xbf16>, vector<16x64xf32> -> vector<16x64xf32>
    %cst_135 = arith.constant dense<0.000000e+00> : vector<16x64xf32>
    %159 = tpu.matmul %157, %156, %cst_135 {dimension_numbers = #tpu.dot_dimension_numbers<[1], [0], [0], [1], [0, 0, 1, 1], [], []>} : vector<16x128xbf16>, vector<128x64xbf16>, vector<16x64xf32> -> vector<16x64xf32>
    %160 = arith.maximumf %158, %159 : vector<16x64xf32>
    %161 = arith.truncf %160 : vector<16x64xf32> to vector<16x64xbf16>
    %c0_136 = arith.constant 0 : index
    %c0_137 = arith.constant 0 : index
    %c0_138 = arith.constant 0 : index
    %162 = vector.load %arg14[%c0_136, %c0_137, %c0_138] : memref<4x4x16xbf16, #tpu.memory_space<vmem>>, vector<1x4x16xbf16>
    %163 = vector.shape_cast %162 : vector<1x4x16xbf16> to vector<4x16xbf16>
    %cst_139 = arith.constant dense<0.000000e+00> : vector<4x64xf32>
    %164 = tpu.matmul %163, %161, %cst_139 {dimension_numbers = #tpu.dot_dimension_numbers<[1], [0], [0], [1], [0, 0, 1, 1], [], []>} : vector<4x16xbf16>, vector<16x64xbf16>, vector<4x64xf32> -> vector<4x64xf32>
    %165 = arith.truncf %164 : vector<4x64xf32> to vector<4x64xbf16>
    %c0_140 = arith.constant 0 : index
    %c0_141 = arith.constant 0 : index
    %c0_142 = arith.constant 0 : index
    %166 = vector.load %arg15[%c0_140, %c0_141, %c0_142] : memref<4x64x128xbf16, #tpu.memory_space<vmem>>, vector<1x64x128xbf16>
    %167 = vector.shape_cast %166 : vector<1x64x128xbf16> to vector<64x128xbf16>
    %cst_143 = arith.constant dense<0.000000e+00> : vector<4x128xf32>
    %168 = tpu.matmul %165, %167, %cst_143 {dimension_numbers = #tpu.dot_dimension_numbers<[1], [0], [0], [1], [0, 0, 1, 1], [], []>} : vector<4x64xbf16>, vector<64x128xbf16>, vector<4x128xf32> -> vector<4x128xf32>
    %c1_144 = arith.constant 1 : index
    %c0_145 = arith.constant 0 : index
    %c0_146 = arith.constant 0 : index
    %169 = vector.load %arg14[%c1_144, %c0_145, %c0_146] : memref<4x4x16xbf16, #tpu.memory_space<vmem>>, vector<1x4x16xbf16>
    %170 = vector.shape_cast %169 : vector<1x4x16xbf16> to vector<4x16xbf16>
    %cst_147 = arith.constant dense<0.000000e+00> : vector<4x64xf32>
    %171 = tpu.matmul %170, %161, %cst_147 {dimension_numbers = #tpu.dot_dimension_numbers<[1], [0], [0], [1], [0, 0, 1, 1], [], []>} : vector<4x16xbf16>, vector<16x64xbf16>, vector<4x64xf32> -> vector<4x64xf32>
    %172 = arith.truncf %171 : vector<4x64xf32> to vector<4x64xbf16>
    %c1_148 = arith.constant 1 : index
    %c0_149 = arith.constant 0 : index
    %c0_150 = arith.constant 0 : index
    %173 = vector.load %arg15[%c1_148, %c0_149, %c0_150] : memref<4x64x128xbf16, #tpu.memory_space<vmem>>, vector<1x64x128xbf16>
    %174 = vector.shape_cast %173 : vector<1x64x128xbf16> to vector<64x128xbf16>
    %cst_151 = arith.constant dense<0.000000e+00> : vector<4x128xf32>
    %175 = tpu.matmul %172, %174, %cst_151 {dimension_numbers = #tpu.dot_dimension_numbers<[1], [0], [0], [1], [0, 0, 1, 1], [], []>} : vector<4x64xbf16>, vector<64x128xbf16>, vector<4x128xf32> -> vector<4x128xf32>
    %176 = arith.addf %168, %175 : vector<4x128xf32>
    %c2_152 = arith.constant 2 : index
    %c0_153 = arith.constant 0 : index
    %c0_154 = arith.constant 0 : index
    %177 = vector.load %arg14[%c2_152, %c0_153, %c0_154] : memref<4x4x16xbf16, #tpu.memory_space<vmem>>, vector<1x4x16xbf16>
    %178 = vector.shape_cast %177 : vector<1x4x16xbf16> to vector<4x16xbf16>
    %cst_155 = arith.constant dense<0.000000e+00> : vector<4x64xf32>
    %179 = tpu.matmul %178, %161, %cst_155 {dimension_numbers = #tpu.dot_dimension_numbers<[1], [0], [0], [1], [0, 0, 1, 1], [], []>} : vector<4x16xbf16>, vector<16x64xbf16>, vector<4x64xf32> -> vector<4x64xf32>
    %180 = arith.truncf %179 : vector<4x64xf32> to vector<4x64xbf16>
    %c2_156 = arith.constant 2 : index
    %c0_157 = arith.constant 0 : index
    %c0_158 = arith.constant 0 : index
    %181 = vector.load %arg15[%c2_156, %c0_157, %c0_158] : memref<4x64x128xbf16, #tpu.memory_space<vmem>>, vector<1x64x128xbf16>
    %182 = vector.shape_cast %181 : vector<1x64x128xbf16> to vector<64x128xbf16>
    %cst_159 = arith.constant dense<0.000000e+00> : vector<4x128xf32>
    %183 = tpu.matmul %180, %182, %cst_159 {dimension_numbers = #tpu.dot_dimension_numbers<[1], [0], [0], [1], [0, 0, 1, 1], [], []>} : vector<4x64xbf16>, vector<64x128xbf16>, vector<4x128xf32> -> vector<4x128xf32>
    %184 = arith.addf %176, %183 : vector<4x128xf32>
    %c3_160 = arith.constant 3 : index
    %c0_161 = arith.constant 0 : index
    %c0_162 = arith.constant 0 : index
    %185 = vector.load %arg14[%c3_160, %c0_161, %c0_162] : memref<4x4x16xbf16, #tpu.memory_space<vmem>>, vector<1x4x16xbf16>
    %186 = vector.shape_cast %185 : vector<1x4x16xbf16> to vector<4x16xbf16>
    %cst_163 = arith.constant dense<0.000000e+00> : vector<4x64xf32>
    %187 = tpu.matmul %186, %161, %cst_163 {dimension_numbers = #tpu.dot_dimension_numbers<[1], [0], [0], [1], [0, 0, 1, 1], [], []>} : vector<4x16xbf16>, vector<16x64xbf16>, vector<4x64xf32> -> vector<4x64xf32>
    %188 = arith.truncf %187 : vector<4x64xf32> to vector<4x64xbf16>
    %c3_164 = arith.constant 3 : index
    %c0_165 = arith.constant 0 : index
    %c0_166 = arith.constant 0 : index
    %189 = vector.load %arg15[%c3_164, %c0_165, %c0_166] : memref<4x64x128xbf16, #tpu.memory_space<vmem>>, vector<1x64x128xbf16>
    %190 = vector.shape_cast %189 : vector<1x64x128xbf16> to vector<64x128xbf16>
    %cst_167 = arith.constant dense<0.000000e+00> : vector<4x128xf32>
    %191 = tpu.matmul %188, %190, %cst_167 {dimension_numbers = #tpu.dot_dimension_numbers<[1], [0], [0], [1], [0, 0, 1, 1], [], []>} : vector<4x64xbf16>, vector<64x128xbf16>, vector<4x128xf32> -> vector<4x128xf32>
    %192 = arith.addf %184, %191 : vector<4x128xf32>
    %cst_168 = arith.constant dense<0.000000e+00> : vector<128xf32>
    %193 = vector.multi_reduction <add>, %192, %cst_168 [0] : vector<4x128xf32> to vector<128xf32>
    %194 = vector.shape_cast %193 : vector<128xf32> to vector<1x128xf32>
    %cst_169 = arith.constant 4.000000e+00 : f32
    %195 = vector.broadcast %cst_169 : f32 to vector<1x128xf32>
    %196 = arith.divf %194, %195 : vector<1x128xf32>
    %197 = vector.broadcast %196 : vector<1x128xf32> to vector<4x128xf32>
    %198 = arith.subf %192, %197 : vector<4x128xf32>
    %199 = arith.mulf %198, %198 : vector<4x128xf32>
    %cst_170 = arith.constant dense<0.000000e+00> : vector<128xf32>
    %200 = vector.multi_reduction <add>, %199, %cst_170 [0] : vector<4x128xf32> to vector<128xf32>
    %201 = vector.shape_cast %200 : vector<128xf32> to vector<1x128xf32>
    %cst_171 = arith.constant 4.000000e+00 : f32
    %202 = vector.broadcast %cst_171 : f32 to vector<1x128xf32>
    %203 = arith.divf %201, %202 : vector<1x128xf32>
    %cst_172 = arith.constant 9.99999974E-6 : f32
    %204 = vector.broadcast %cst_172 : f32 to vector<1x128xf32>
    %205 = arith.addf %203, %204 : vector<1x128xf32>
    %206 = math.rsqrt %205 : vector<1x128xf32>
    %207 = vector.broadcast %206 : vector<1x128xf32> to vector<4x128xf32>
    %208 = arith.mulf %198, %207 : vector<4x128xf32>
    %cst_173 = arith.constant 0.000000e+00 : f32
    %209 = vector.broadcast %cst_173 : f32 to vector<4x128xf32>
    %210 = arith.maximumf %208, %209 : vector<4x128xf32>
    %211 = arith.truncf %210 : vector<4x128xf32> to vector<4x128xbf16>
    %c0_174 = arith.constant 0 : index
    %c0_175 = arith.constant 0 : index
    %212 = vector.load %arg16[%c0_174, %c0_175] : memref<128x128xbf16, #tpu.memory_space<vmem>>, vector<128x128xbf16>
    %cst_176 = arith.constant dense<0.000000e+00> : vector<4x128xf32>
    %213 = tpu.matmul %211, %212, %cst_176 {dimension_numbers = #tpu.dot_dimension_numbers<[1], [0], [0], [1], [0, 0, 1, 1], [], []>} : vector<4x128xbf16>, vector<128x128xbf16>, vector<4x128xf32> -> vector<4x128xf32>
    %cst_177 = arith.constant dense<0.000000e+00> : vector<128xf32>
    %214 = vector.multi_reduction <add>, %213, %cst_177 [0] : vector<4x128xf32> to vector<128xf32>
    %215 = vector.shape_cast %214 : vector<128xf32> to vector<1x128xf32>
    %cst_178 = arith.constant 4.000000e+00 : f32
    %216 = vector.broadcast %cst_178 : f32 to vector<1x128xf32>
    %217 = arith.divf %215, %216 : vector<1x128xf32>
    %218 = vector.broadcast %217 : vector<1x128xf32> to vector<4x128xf32>
    %219 = arith.subf %213, %218 : vector<4x128xf32>
    %220 = arith.mulf %219, %219 : vector<4x128xf32>
    %cst_179 = arith.constant dense<0.000000e+00> : vector<128xf32>
    %221 = vector.multi_reduction <add>, %220, %cst_179 [0] : vector<4x128xf32> to vector<128xf32>
    %222 = vector.shape_cast %221 : vector<128xf32> to vector<1x128xf32>
    %cst_180 = arith.constant 4.000000e+00 : f32
    %223 = vector.broadcast %cst_180 : f32 to vector<1x128xf32>
    %224 = arith.divf %222, %223 : vector<1x128xf32>
    %cst_181 = arith.constant 9.99999974E-6 : f32
    %225 = vector.broadcast %cst_181 : f32 to vector<1x128xf32>
    %226 = arith.addf %224, %225 : vector<1x128xf32>
    %227 = math.rsqrt %226 : vector<1x128xf32>
    %228 = vector.broadcast %227 : vector<1x128xf32> to vector<4x128xf32>
    %229 = arith.mulf %219, %228 : vector<4x128xf32>
    %cst_182 = arith.constant 0.000000e+00 : f32
    %230 = vector.broadcast %cst_182 : f32 to vector<4x128xf32>
    %231 = arith.maximumf %229, %230 : vector<4x128xf32>
    %232 = arith.truncf %231 : vector<4x128xf32> to vector<4x128xbf16>
    %c0_183 = arith.constant 0 : index
    %c0_184 = arith.constant 0 : index
    %233 = vector.load %arg17[%c0_183, %c0_184] : memref<128x128xbf16, #tpu.memory_space<vmem>>, vector<128x128xbf16>
    %cst_185 = arith.constant dense<0.000000e+00> : vector<4x128xf32>
    %234 = tpu.matmul %232, %233, %cst_185 {dimension_numbers = #tpu.dot_dimension_numbers<[1], [0], [0], [1], [0, 0, 1, 1], [], []>} : vector<4x128xbf16>, vector<128x128xbf16>, vector<4x128xf32> -> vector<4x128xf32>
    %c0_186 = arith.constant 0 : index
    %c0_187 = arith.constant 0 : index
    %235 = vector.load %arg18[%c0_186, %c0_187] : memref<1x128xf32, #tpu.memory_space<vmem>>, vector<1x128xf32>
    %236 = vector.broadcast %235 : vector<1x128xf32> to vector<4x128xf32>
    %237 = arith.addf %234, %236 : vector<4x128xf32>
    %c0_188 = arith.constant 0 : index
    %c0_189 = arith.constant 0 : index
    %238 = vector.load %arg19[%c0_188, %c0_189] : memref<4x128xf32, #tpu.memory_space<vmem>>, vector<4x128xf32>
    tpu.vector_store %arg19[%c0_188, %c0_189], %237 {strides = array<i32>} : memref<4x128xf32, #tpu.memory_space<vmem>>, vector<4x128xf32>,
    return
  }
  func.func @transform_0(%arg0: i32) -> (i32, i32) {
    %c0_i32 = arith.constant 0 : i32
    %c0_i32_0 = arith.constant 0 : i32
    %c0_i32_1 = arith.constant 0 : i32
    return %c0_i32, %c0_i32_0 : i32, i32
  }
  func.func @transform_1(%arg0: i32) -> (i32, i32, i32) {
    %c0_i32 = arith.constant 0 : i32
    %c0_i32_0 = arith.constant 0 : i32
    %c0_i32_1 = arith.constant 0 : i32
    %c0_i32_2 = arith.constant 0 : i32
    return %c0_i32, %c0_i32_0, %c0_i32_1 : i32, i32, i32
  }
  func.func @transform_2(%arg0: i32) -> (i32, i32, i32) {
    %c0_i32 = arith.constant 0 : i32
    %c0_i32_0 = arith.constant 0 : i32
    %c0_i32_1 = arith.constant 0 : i32
    %c0_i32_2 = arith.constant 0 : i32
    return %c0_i32, %c0_i32_0, %c0_i32_1 : i32, i32, i32
  }
  func.func @transform_3(%arg0: i32) -> (i32, i32) {
    %c0_i32 = arith.constant 0 : i32
    %c0_i32_0 = arith.constant 0 : i32
    %c0_i32_1 = arith.constant 0 : i32
    return %c0_i32, %c0_i32_0 : i32, i32
  }
  func.func @transform_4(%arg0: i32) -> (i32, i32) {
    %c0_i32 = arith.constant 0 : i32
    %c0_i32_0 = arith.constant 0 : i32
    %c0_i32_1 = arith.constant 0 : i32
    return %c0_i32, %c0_i32_0 : i32, i32
  }
  func.func @transform_5(%arg0: i32) -> (i32, i32, i32) {
    %c0_i32 = arith.constant 0 : i32
    %c0_i32_0 = arith.constant 0 : i32
    %c0_i32_1 = arith.constant 0 : i32
    %c0_i32_2 = arith.constant 0 : i32
    return %c0_i32, %c0_i32_0, %c0_i32_1 : i32, i32, i32
  }
  func.func @transform_6(%arg0: i32) -> (i32, i32, i32) {
    %c0_i32 = arith.constant 0 : i32
    %c0_i32_0 = arith.constant 0 : i32
    %c0_i32_1 = arith.constant 0 : i32
    %c0_i32_2 = arith.constant 0 : i32
    return %c0_i32, %c0_i32_0, %c0_i32_1 : i32, i32, i32
  }
  func.func @transform_7(%arg0: i32) -> (i32, i32, i32) {
    %c0_i32 = arith.constant 0 : i32
    %c0_i32_0 = arith.constant 0 : i32
    %c0_i32_1 = arith.constant 0 : i32
    %c0_i32_2 = arith.constant 0 : i32
    return %c0_i32, %c0_i32_0, %c0_i32_1 : i32, i32, i32
  }
  func.func @transform_8(%arg0: i32) -> (i32, i32, i32) {
    %c0_i32 = arith.constant 0 : i32
    %c0_i32_0 = arith.constant 0 : i32
    %c0_i32_1 = arith.constant 0 : i32
    %c0_i32_2 = arith.constant 0 : i32
    return %c0_i32, %c0_i32_0, %c0_i32_1 : i32, i32, i32
  }
  func.func @transform_9(%arg0: i32) -> (i32, i32) {
    %c0_i32 = arith.constant 0 : i32
    %c0_i32_0 = arith.constant 0 : i32
    %c0_i32_1 = arith.constant 0 : i32
    return %c0_i32, %c0_i32_0 : i32, i32
  }
  func.func @transform_10(%arg0: i32) -> (i32, i32) {
    %c0_i32 = arith.constant 0 : i32
    %c0_i32_0 = arith.constant 0 : i32
    %c0_i32_1 = arith.constant 0 : i32
    return %c0_i32, %c0_i32_0 : i32, i32
  }
  func.func @transform_11(%arg0: i32) -> (i32, i32, i32) {
    %c0_i32 = arith.constant 0 : i32
    %c0_i32_0 = arith.constant 0 : i32
    %c0_i32_1 = arith.constant 0 : i32
    %c0_i32_2 = arith.constant 0 : i32
    return %c0_i32, %c0_i32_0, %c0_i32_1 : i32, i32, i32
  }
  func.func @transform_12(%arg0: i32) -> (i32, i32, i32) {
    %c0_i32 = arith.constant 0 : i32
    %c0_i32_0 = arith.constant 0 : i32
    %c0_i32_1 = arith.constant 0 : i32
    %c0_i32_2 = arith.constant 0 : i32
    return %c0_i32, %c0_i32_0, %c0_i32_1 : i32, i32, i32
  }
  func.func @transform_13(%arg0: i32) -> (i32, i32, i32) {
    %c0_i32 = arith.constant 0 : i32
    %c0_i32_0 = arith.constant 0 : i32
    %c0_i32_1 = arith.constant 0 : i32
    %c0_i32_2 = arith.constant 0 : i32
    return %c0_i32, %c0_i32_0, %c0_i32_1 : i32, i32, i32
  }
  func.func @transform_14(%arg0: i32) -> (i32, i32, i32) {
    %c0_i32 = arith.constant 0 : i32
    %c0_i32_0 = arith.constant 0 : i32
    %c0_i32_1 = arith.constant 0 : i32
    %c0_i32_2 = arith.constant 0 : i32
    return %c0_i32, %c0_i32_0, %c0_i32_1 : i32, i32, i32
  }
  func.func @transform_15(%arg0: i32) -> (i32, i32) {
    %c0_i32 = arith.constant 0 : i32
    %c0_i32_0 = arith.constant 0 : i32
    %c0_i32_1 = arith.constant 0 : i32
    return %c0_i32, %c0_i32_0 : i32, i32
  }
  func.func @transform_16(%arg0: i32) -> (i32, i32) {
    %c0_i32 = arith.constant 0 : i32
    %c0_i32_0 = arith.constant 0 : i32
    %c0_i32_1 = arith.constant 0 : i32
    return %c0_i32, %c0_i32_0 : i32, i32
  }
  func.func @transform_17(%arg0: i32) -> (i32, i32) {
    %c0_i32 = arith.constant 0 : i32
    %c0_i32_0 = arith.constant 0 : i32
    %c0_i32_1 = arith.constant 0 : i32
    return %c0_i32, %c0_i32_0 : i32, i32
  }
  func.func @transform_18(%arg0: i32) -> (i32, i32) {
    %c0_i32 = arith.constant 0 : i32
    %c0_i32_0 = arith.constant 0 : i32
    %c0_i32_1 = arith.constant 0 : i32
    return %c0_i32, %c0_i32_0 : i32, i32
  }
}

</mosaic_0001>

<bundles_post_ra>
// kernel: _lambda_.1
= control target key start
LH: loop header
LB: loop body
LE: loop exit
PB: predicated region body
PF: predicated region fallthrough
CT: control target
= control target key end

     0   :  { %s6592_s0 = inlined_call_operand.hbm [shape: f32[112,28], index: 0, kind: input, shape index: {}]   ;;  %s6593_s1 = inlined_call_operand.hbm [shape: bf16[5,96,112], index: 1, kind: input, shape index: {}]   ;;  %s6594_s2 = inlined_call_operand.hbm [shape: bf16[5,28,192], index: 2, kind: input, shape index: {}]   ;;  %s6595_s3 = inlined_call_operand.hbm [shape: f32[192,8], index: 3, kind: input, shape index: {}]   ;;  %s6596_s4 = inlined_call_operand.hbm [shape: f32[8,192], index: 4, kind: input, shape index: {}]   ;;  %s6597_s5 = inlined_call_operand.hbm [shape: bf16[2,48,96], index: 5, kind: input, shape index: {}]   ;;  %s6598_s6 = inlined_call_operand.hbm [shape: bf16[2,192,96], index: 6, kind: input, shape index: {}]   ;;  %s6599_s7 = inlined_call_operand.hbm [shape: bf16[5,32,48], index: 7, kind: input, shape index: {}]   ;;  %s6600_s8 = inlined_call_operand.hbm [shape: bf16[5,96,128], index: 8, kind: input, shape index: {}]   ;;  %s6601_s9 = inlined_call_operand.hbm [shape: f32[128,16], index: 9, kind: input, shape index: {}]   ;;  %s6602_s10 = inlined_call_operand.hbm [shape: f32[16,128], index: 10, kind: input, shape index: {}]   ;;  %s6603_s11 = inlined_call_operand.hbm [shape: bf16[2,16,32], index: 11, kind: input, shape index: {}]   ;;  %s6604_s12 = inlined_call_operand.hbm [shape: bf16[2,128,64], index: 12, kind: input, shape index: {}]   ;;  %s6605_s13 = inlined_call_operand.vmem [shape: bf16[4,4,16], index: 13, kind: input, shape index: {}]   ;;  %s6606_s14 = inlined_call_operand.hbm [shape: bf16[4,64,128], index: 14, kind: input, shape index: {}]   ;;  %s6607_s15 = inlined_call_operand.hbm [shape: bf16[128,128], index: 15, kind: input, shape index: {}]   ;;  %s6608_s16 = inlined_call_operand.hbm [shape: bf16[128,128], index: 16, kind: input, shape index: {}]   ;;  %s6609_s17 = inlined_call_operand.vmem [shape: f32[1,128], index: 17, kind: input, shape index: {}]   ;;  %s6610_s18 = inlined_call_operand.hbm [shape: f32[4,128], index: 18, kind: output, shape index: {}]  }
   0x1   :  { %6620 = sst [smem:[#allocation73_spill]] %s6592_s0 }
   0x2   :  { %6621 = sst [smem:[#allocation74_spill]] %s6593_s1 }
   0x3   :  { %6622 = sst [smem:[#allocation75_spill]] %s6594_s2 }
   0x4   :  { %23 = vsyncpa [#allocation3], 0 }
   0x5   :  { %24 = vsyncpa [#allocation6], 0 }
   0x6   :  { %25 = vsyncpa [#allocation9], 0 }
   0x7   :  { %26 = vsyncpa [#allocation12], 0 }
   0x8   :  { %27 = vsyncpa [#allocation15], 0 }
   0x9   :  { %28 = vsyncpa [#allocation18], 0 }
   0xa   :  { %29 = vsyncpa [#allocation21], 0 }
   0xb   :  { %30 = vsyncpa [#allocation24], 0 }
   0xc   :  { %31 = vsyncpa [#allocation27], 0  ;;  %s6623_s29 = sld [smem:[#allocation74_spill]] }
  0x12   :  { %s50_s30 = sshll.u32 %s6623_s29, 4  ;;  %s51_s30 = int_to_ptr.hbm [resolvable:$true] %s50_s30 }
  0x13   :  { %32 = vsyncpa [#allocation4], 0  ;;  %s5440_s0 = smov [#allocation5]   ;;  %s5441_s1 = smov 64  }
  0x14   :  { %s52_s19 = sshll.u32 %s5440_s0, 4  ;;  %s5442_s20 = smov 4   ;;  %s53_s19 = int_to_ptr.vmem [resolvable:$true] %s52_s19 }
  0x15   :  { %58 = dma.hbm_to_vmem [thread:$0]  %s51_s30, 3840, %s53_s19, [#allocation6], %s5441_s1, %s5441_s1, %s5442_s20  }
  0x16   :  { %s76_s2 = sshll.u32 %s6595_s3, 4  ;;  %s5443_s23 = smov [#allocation8]   ;;  %s77_s2 = int_to_ptr.hbm [resolvable:$true] %s76_s2 }
  0x17   :  { %s78_s24 = sshll.u32 %s5443_s23, 4  ;;  %s100_s27 = sshll.u32 %s6597_s5, 4  ;;  %s79_s24 = int_to_ptr.vmem [resolvable:$true] %s78_s24  ;;  %s101_s27 = int_to_ptr.hbm [resolvable:$true] %s100_s27 }
  0x18   :  { %s5444_s28 = smov 128   ;;  %s5445_s29 = smov 8  }
  0x19   :  { %84 = dma.hbm_to_vmem [thread:$0]  %s77_s2, 3072, %s79_s24, [#allocation9], %s5444_s28, %s5444_s28, %s5445_s29  }
  0x1a   :  { %s126_s19 = sshll.u32 %s6599_s7, 4  ;;  %s5446_s3 = smov [#allocation11]   ;;  %s127_s19 = int_to_ptr.hbm [resolvable:$true] %s126_s19 }
  0x1b   :  { %s102_s21 = sshll.u32 %s5446_s3, 4  ;;  %s5447_s5 = smov [#allocation14]   ;;  %s103_s21 = int_to_ptr.vmem [resolvable:$true] %s102_s21 }
  0x1c   :  { %108 = dma.hbm_to_vmem [thread:$0]  %s101_s27, 768, %s103_s21, [#allocation12], %s5441_s1, %s5441_s1, %s5442_s20  }
  0x1d   :  { %s128_s22 = sshll.u32 %s5447_s5, 4  ;;  %s152_s26 = sshll.u32 %s6601_s9, 4  ;;  %s129_s22 = int_to_ptr.vmem [resolvable:$true] %s128_s22  ;;  %s153_s26 = int_to_ptr.hbm [resolvable:$true] %s152_s26 }
  0x1e   :  { %134 = dma.hbm_to_vmem [thread:$0]  %s127_s19, 1280, %s129_s22, [#allocation15], %s5441_s1, %s5441_s1, %s5442_s20  }
  0x1f   :  { %s178_s24 = sshll.u32 %s6603_s11, 4  ;;  %s5448_s30 = smov [#allocation17]   ;;  %s179_s24 = int_to_ptr.hbm [resolvable:$true] %s178_s24 }
  0x20   :  { %s154_s0 = sshll.u32 %s5448_s30, 4  ;;  %s5449_s27 = smov [#allocation20]   ;;  %s155_s0 = int_to_ptr.vmem [resolvable:$true] %s154_s0 }
  0x21   :  { %160 = dma.hbm_to_vmem [thread:$0]  %s153_s26, 2048, %s155_s0, [#allocation18], %s5444_s28, %s5444_s28, %s5445_s29  }
  0x22   :  { %s180_s9 = sshll.u32 %s5449_s27, 4  ;;  %s206_s5 = sshll.u32 %s6606_s14, 4  ;;  %s181_s9 = int_to_ptr.vmem [resolvable:$true] %s180_s9  ;;  %s207_s5 = int_to_ptr.hbm [resolvable:$true] %s206_s5 }
  0x23   :  { %186 = dma.hbm_to_vmem [thread:$0]  %s179_s24, 256, %s181_s9, [#allocation21], %s5441_s1, %s5441_s1, %s5442_s20  }
  0x24   :  { %s6624_s22 = sld [smem:[#allocation73_spill]]  ;;  %s5450_s25 = smov [#allocation23]  }
  0x25   :  { %s208_s7 = sshll.u32 %s5450_s25, 4  ;;  %s5451_s26 = smov [#allocation2]   ;;  %s209_s7 = int_to_ptr.vmem [resolvable:$true] %s208_s7 }
  0x26   :  { %214 = dma.hbm_to_vmem [thread:$0]  %s207_s5, 2048, %s209_s7, [#allocation24], %s5441_s1, %s5441_s1, %s5442_s20  }
  0x27   :  { %s39_s14 = sshll.u32 %s5451_s26, 4  ;;  %s6625_s0 = sld [smem:[#allocation75_spill]]  ;;  %s40_s14 = int_to_ptr.vmem [resolvable:$true] %s39_s14 }
  0x28   :  { %s90_s3 = sshll.u32 %s6596_s4, 4  ;;  %s5452_s21 = smov [#allocation7]   ;;  %s91_s3 = int_to_ptr.hbm [resolvable:$true] %s90_s3 }
  0x29   :  { %s65_s11 = sshll.u32 %s5452_s21, 4  ;;  %s5453_s5 = smov [#allocation10]   ;;  %s66_s11 = int_to_ptr.vmem [resolvable:$true] %s65_s11 }
  0x2a   :  { %s37_s23 = sshll.u32 %s6624_s22, 4  ;;  %s92_s19 = sshll.u32 %s5453_s5, 4  ;;  %s38_s23 = int_to_ptr.hbm [resolvable:$true] %s37_s23  ;;  %s93_s19 = int_to_ptr.vmem [resolvable:$true] %s92_s19 }
  0x2b   :  { %45 = dma.hbm_to_vmem [thread:$0]  %s38_s23, 1792, %s40_s14, [#allocation3], %s5444_s28, %s5444_s28, %s5445_s29  }
  0x2c   :  { %s113_s7 = sshll.u32 %s6598_s6, 4  ;;  %s139_s4 = sshll.u32 %s6600_s8, 4  ;;  %s114_s7 = int_to_ptr.hbm [resolvable:$true] %s113_s7  ;;  %s140_s4 = int_to_ptr.hbm [resolvable:$true] %s139_s4 }
  0x2d   :  { %s63_s27 = sshll.u32 %s6625_s0, 4  ;;  %s5454_s14 = smov [#allocation13]   ;;  %s64_s27 = int_to_ptr.hbm [resolvable:$true] %s63_s27 }
  0x2e   :  { %71 = dma.hbm_to_vmem [thread:$0]  %s64_s27, 2560, %s66_s11, [#allocation6], %s5444_s28, %s5444_s28, %s5445_s29  }
  0x2f   :  { %95 = dma.hbm_to_vmem [thread:$0]  %s91_s3, 256, %s93_s19, [#allocation9]  }
  0x30   :  { %s115_s2 = sshll.u32 %s5454_s14, 4  ;;  %s5455_s30 = smov [#allocation16]   ;;  %s116_s2 = int_to_ptr.vmem [resolvable:$true] %s115_s2 }
  0x31   :  { %121 = dma.hbm_to_vmem [thread:$0]  %s114_s7, 3072, %s116_s2, [#allocation12], %s5441_s1, %s5441_s1, %s5442_s20  }
  0x32   :  { %s141_s0 = sshll.u32 %s5455_s30, 4  ;;  %s165_s6 = sshll.u32 %s6602_s10, 4  ;;  %s142_s0 = int_to_ptr.vmem [resolvable:$true] %s141_s0  ;;  %s166_s6 = int_to_ptr.hbm [resolvable:$true] %s165_s6 }
  0x33   :  { %147 = dma.hbm_to_vmem [thread:$0]  %s140_s4, 3840, %s142_s0, [#allocation15], %s5441_s1, %s5441_s1, %s5442_s20  }
  0x34   :  { %s191_s3 = sshll.u32 %s6604_s12, 4  ;;  %s5456_s21 = smov [#allocation19]   ;;  %s192_s3 = int_to_ptr.hbm [resolvable:$true] %s191_s3 }
  0x35   :  { %s167_s11 = sshll.u32 %s5456_s21, 4  ;;  %s5457_s5 = smov [#allocation22]   ;;  %s168_s11 = int_to_ptr.vmem [resolvable:$true] %s167_s11 }
  0x36   :  { %173 = dma.hbm_to_vmem [thread:$0]  %s166_s6, 256, %s168_s11, [#allocation18], %s5444_s28, %s5444_s28, %s5445_s29  }
  0x37   :  { %s193_s10 = sshll.u32 %s5457_s5, 4  ;;  %s219_s25 = sshll.u32 %s6607_s15, 4  ;;  %s194_s10 = int_to_ptr.vmem [resolvable:$true] %s193_s10  ;;  %s220_s25 = int_to_ptr.hbm [resolvable:$true] %s219_s25 }
  0x38   :  { %199 = dma.hbm_to_vmem [thread:$0]  %s192_s3, 2048, %s194_s10, [#allocation21], %s5441_s1, %s5441_s1, %s5442_s20  }
  0x39   :  { %s232_s23 = sshll.u32 %s6608_s16, 4  ;;  %s5458_s26 = smov [#allocation25]   ;;  %s233_s23 = int_to_ptr.hbm [resolvable:$true] %s232_s23 }
  0x3a   :  { %s221_s4 = sshll.u32 %s5458_s26, 4  ;;  %s5459_s28 = smov [#allocation26]   ;;  %s222_s4 = int_to_ptr.vmem [resolvable:$true] %s221_s4 }
  0x3b   :  { %227 = dma.hbm_to_vmem [thread:$0]  %s220_s25, 1024, %s222_s4, [#allocation24], %s5441_s1, %s5441_s1, %s5442_s20  }
  0x3c   :  { %s234_s15 = sshll.u32 %s5459_s28, 4  ;;  %s235_s15 = int_to_ptr.vmem [resolvable:$true] %s234_s15 }
  0x3d   :  { %240 = dma.hbm_to_vmem [thread:$0]  %s233_s23, 1024, %s235_s15, [#allocation27], %s5441_s1, %s5441_s1, %s5442_s20  }
  0x3e   :  { %5420 = dma.done.wait [#allocation3], 1792  }
  0x3f   :  { %5421 = vsyncadd [#allocation3], 4294965504 }
  0x40   :  { %5422 = dma.done.wait [#allocation6], 6400  }
  0x41   :  { %5423 = vsyncadd [#allocation6], 4294960896 }
  0x42   :  { %5424 = dma.done.wait [#allocation9], 3328  }
  0x43   :  { %5425 = vsyncadd [#allocation9], 4294963968 }
  0x44   :  { %5426 = dma.done.wait [#allocation12], 3840  }
  0x45   :  { %5427 = vsyncadd [#allocation12], 4294963456 }
  0x46   :  { %5428 = dma.done.wait [#allocation15], 5120  }
  0x47   :  { %5429 = vsyncadd [#allocation15], 4294962176 }
  0x48   :  { %5430 = dma.done.wait [#allocation18], 2304  }
  0x49   :  { %5431 = vsyncadd [#allocation18], 4294964992 }
  0x4a   :  { %5432 = dma.done.wait [#allocation21], 2304  }
  0x4b   :  { %5433 = vsyncadd [#allocation21], 4294964992 }
  0x4c   :  { %5434 = dma.done.wait [#allocation24], 3072  }
  0x4d   :  { %5435 = vsyncadd [#allocation24], 4294964224 }
  0x4e   :  { %5436 = dma.done.wait [#allocation27], 1024  }
  0x4f   :  { %5437 = vsyncadd [#allocation27], 4294966272  ;;  %v320_v0 = vld [vmem:[#allocation2 + $0x60] sm:$0xff]  ;;  %v321_v1 = vld [vmem:[#allocation2 + $0x68] sm:$0xff]  ;;  %vm371_vm0 = vcmask 916480   ;;  %vm587_vm1 = vcmask 1045504  }
  0x50   :  { %v318_v2 = vld [vmem:[#allocation2 + $0x50] sm:$0xff]  ;;  %v5652_v3 = vpack.c.bf16 %v321_v1, %v320_v0  ;;  %v319_v4 = vld [vmem:[#allocation2 + $0x58] sm:$0xff]  ;;  %v316_v6 = vld [vmem:[#allocation2 + $0x40] sm:$0xff]  ;;  %vm568_vm2 = vcmask 228352   ;;  %vm1600_vm3 = vcmask 523264   ;;  %vm1682_vm5 = vcmask 64512  }
  0x51   :  { %v5655_v5 = vpack.c.bf16 %v319_v4, %v318_v2  ;;  %v317_v7 = vld [vmem:[#allocation2 + $0x48] sm:$0xff]  ;;  %v314_v9 = vld [vmem:[#allocation2 + $0x30] sm:$0xff]  ;;  %v315_v10 = vld [vmem:[#allocation2 + $0x38] sm:$0xff]  ;;  %vm2020_vm12 = vcmask 785408   ;;  %vm2489_vm13 = vcmask 392192   ;;  %vm3121_vm15 = vcmask 130048  }
  0x52   :  { %501 = vmatpush.bf16.msra.mxu1 %v5652_v3  ;;  %391 = vmatpush.bf16.msra.mxu0 %v5652_v3  ;;  %v5659_v8 = vpack.c.bf16 %v317_v7, %v316_v6  ;;  %v5663_v11 = vpack.c.bf16 %v315_v10, %v314_v9  ;;  %v312_v12 = vld [vmem:[#allocation2 + $0x20] sm:$0xff]  ;;  %v313_v13 = vld [vmem:[#allocation2 + $0x28] sm:$0xff]  ;;  %v310_v15 = vld [vmem:[#allocation2 + $0x10] sm:$0xff]  ;;  %s5463_s24 = smov [#allocation28]   ;;  %s3951_s3 = sshll.u32 %s6610_s18, 4  ;;  %s3952_s3 = int_to_ptr.hbm [resolvable:$true] %s3951_s3 }
  0x53   :  { %v5667_v14 = vpack.c.bf16 %v313_v13, %v312_v12  ;;  %v311_v16 = vld [vmem:[#allocation2 + $0x18] sm:$0xff]  ;;  %v308_v18 = vld [vmem:[#allocation2] sm:$0xff]  ;;  %v309_v19 = vld [vmem:[#allocation2 + $0x8] sm:$0xff]  ;;  %s3949_s6 = sshll.u32 %s5463_s24, 4  ;;  %s3950_s6 = int_to_ptr.vmem [resolvable:$true] %s3949_s6 }
  0x54   :  { %v5671_v17 = vpack.c.bf16 %v311_v16, %v310_v15  ;;  %v5675_v20 = vpack.c.bf16 %v309_v19, %v308_v18  ;;  %v4808_v21 = vld [vmem:[#allocation5 + $0x30] sm:$0xff]  ;;  %v4798_v22 = vld [vmem:[#allocation5] sm:$0xff]  ;;  %v4809_v23 = vld [vmem:[#allocation5 + $0x38] sm:$0xff] }
  0x55   :  { %v4799_v24 = vld [vmem:[#allocation5 + $0x8] sm:$0xff]  ;;  %v4810_v25 = vld [vmem:[#allocation5 + $0x40] sm:$0xff]  ;;  %v4800_v26 = vld [vmem:[#allocation5 + $0x10] sm:$0xff] }
  0x56   :  { %502 = vmatpush.bf16.msra.mxu1 %v5655_v5  ;;  %392 = vmatpush.bf16.msra.mxu0 %v5655_v5  ;;  %v4811_v27 = vld [vmem:[#allocation5 + $0x48] sm:$0xff]  ;;  %v4801_v28 = vld [vmem:[#allocation5 + $0x18] sm:$0xff]  ;;  %v4812_v29 = vld [vmem:[#allocation5 + $0x50] sm:$0xff] }
  0x57   :  { %v4802_v30 = vld [vmem:[#allocation5 + $0x20] sm:$0xff]  ;;  %v4813_v31 = vld [vmem:[#allocation5 + $0x58] sm:$0xff]  ;;  %v4803_v32 = vld [vmem:[#allocation5 + $0x28] sm:$0xff] }
  0x58   :  { %v4818_v33 = vld [vmem:[#allocation5 + $0x60] sm:$0xff]  ;;  %v4817_v35 = vld [vmem:[#allocation7 + $0x34] sm:$0x30]  ;;  %v4041_v38 = vld [vmem:[#allocation7 + $0x38] sm:$0x30] }
  0x59   :  { %v4039_v34 = vld [vmem:[#allocation7 + $0x30] sm:$0xf]  ;;  %v4816_v37 = vld [vmem:[#allocation7 + $0x34] sm:$0xf]  ;;  %v4031_v42 = vld [vmem:[#allocation7 + $0x20] sm:$0xf] }
  0x5a   :  { %503 = vmatpush.bf16.msra.mxu1 %v5659_v8  ;;  %393 = vmatpush.bf16.msra.mxu0 %v5659_v8  ;;  %v4040_v36 = vor.u32 %v4817_v35, %v4039_v34  ;;  %v4044_v39 = vor.u32 %v4816_v37, %v4041_v38  ;;  %v4815_v43 = vld [vmem:[#allocation7 + $0x24] sm:$0xf0]  ;;  %v4814_v44 = vld [vmem:[#allocation7 + $0x24] sm:$0xf]  ;;  %v4033_v46 = vld [vmem:[#allocation7 + $0x28] sm:$0xf0] }
  0x5b   :  { %v4032_v45 = vor.u32 %v4815_v43, %v4031_v42  ;;  %v4036_v47 = vor.u32 %v4814_v44, %v4033_v46  ;;  %v4819_v48 = vld [vmem:[#allocation5 + $0x68] sm:$0xff]  ;;  %v4820_v49 = vld [vmem:[#allocation5 + $0x70] sm:$0xff]  ;;  %v4821_v55 = vld [vmem:[#allocation5 + $0x78] sm:$0xff] }
  0x5c   :  { %v589_v40 = vsel %vm587_vm1, %v4040_v36, 0  ;;  %v592_v41 = vsel %vm587_vm1, %v4044_v39, 0  ;;  %v4822_v61 = vld [vmem:[#allocation5 + $0x80] sm:$0xff]  ;;  %v4823_v4 = vld [vmem:[#allocation5 + $0x88] sm:$0xff]  ;;  %v4117_v39 = vld [vmem:[#allocation7 + $0x40] sm:$0xf] }
  0x5d   :  { %600 = vmatpush.bf16.msra.mxu2 %v589_v40  ;;  %639 = vmatpush.bf16.msra.mxu3 %v592_v41  ;;  %v4067_v9 = vld [vmem:[#allocation7 + $0x10] sm:$0xf]  ;;  %v4807_v10 = vld [vmem:[#allocation7 + $0x14] sm:$0x30]  ;;  %v4806_v19 = vld [vmem:[#allocation7 + $0x14] sm:$0xf] }
  0x5e   :  { %504 = vmatpush.bf16.msra.mxu1 %v5663_v11  ;;  %394 = vmatpush.bf16.msra.mxu0 %v5663_v11  ;;  %v4068_v12 = vor.u32 %v4807_v10, %v4067_v9  ;;  %v4125_v34 = vld [vmem:[#allocation7 + $0x50] sm:$0xf]  ;;  %v4827_v35 = vld [vmem:[#allocation7 + $0x54] sm:$0x30]  ;;  %v4825_v40 = vld [vmem:[#allocation7 + $0x44] sm:$0xf0] }
  0x5f   :  { %v4126_v37 = vor.u32 %v4827_v35, %v4125_v34  ;;  %v4118_v41 = vor.u32 %v4825_v40, %v4117_v39  ;;  %v4830_v40 = vld [vmem:[#allocation5 + $0xa0] sm:$0xff] }
  0x60   :  { %v709_v13 = vsel %vm587_vm1, %v4068_v12, 0 }
  0x61   :  { %601 = vmatpush.bf16.msra.mxu2 %v4032_v45  ;;  %640 = vmatpush.bf16.msra.mxu3 %v4036_v47  ;;  %v940_v38 = vsel %vm587_vm1, %v4126_v37, 0 }
  0x62   :  { %505 = vmatpush.bf16.msra.mxu1 %v5667_v14  ;;  %395 = vmatpush.bf16.msra.mxu0 %v5667_v14 }
  0x65   :  { %720 = vmatpush.bf16.msrb.mxu2 %v709_v13 }
  0x66   :  { %506 = vmatpush.bf16.msra.mxu1 %v5671_v17  ;;  %396 = vmatpush.bf16.msra.mxu0 %v5671_v17 }
  0x6a   :  { %507 = vmatpush.bf16.msra.mxu1 %v5675_v20  ;;  %397 = vmatpush.bf16.msra.mxu0 %v5675_v20 }
  0x6d   :  { %4023 = vmatmul.msk.bf16.vlgmr.msra.gmra.mxu1 %vm371_vm0, %v4808_v21  ;;  %3993 = vmatmul.msk.bf16.vlgmr.msra.gmra.mxu0 %vm371_vm0, %v4798_v22  ;;  %v4069_v21 = vld [vmem:[#allocation7 + $0x18] sm:$0x30]  ;;  %v4059_v22 = vld [vmem:[#allocation7] sm:$0xf] }
  0x6e   :  { %854 = vmatpush.bf16.msrb.mxu0 %v5652_v3  ;;  %951 = vmatpush.bf16.msrb.mxu1 %v940_v38 }
  0x72   :  { %855 = vmatpush.bf16.msrb.mxu0 %v5655_v5  ;;  %952 = vmatpush.bf16.msrb.mxu1 %v4118_v41 }
  0x76   :  { %856 = vmatpush.bf16.msrb.mxu0 %v5659_v8 }
  0x7a   :  { %857 = vmatpush.bf16.msrb.mxu0 %v5663_v11 }
  0x7d   :  { %4024 = vmatmul.msk.bf16.gmra.mxu1 %vm371_vm0, %v4809_v23  ;;  %3994 = vmatmul.msk.bf16.gmra.mxu0 %vm371_vm0, %v4799_v24  ;;  %v4072_v23 = vor.u32 %v4806_v19, %v4069_v21  ;;  %v4805_v24 = vld [vmem:[#allocation7 + $0x4] sm:$0xf0]  ;;  %v4119_v19 = vld [vmem:[#allocation7 + $0x48] sm:$0xf0] }
  0x7e   :  { %858 = vmatpush.bf16.msrb.mxu0 %v5667_v14 }
  0x82   :  { %859 = vmatpush.bf16.msrb.mxu0 %v5671_v17 }
  0x86   :  { %860 = vmatpush.bf16.msrb.mxu0 %v5675_v20 }
  0x8d   :  { %4025 = vmatmul.msk.bf16.gmra.mxu1 %vm371_vm0, %v4810_v25  ;;  %3995 = vmatmul.msk.bf16.gmra.mxu0 %vm371_vm0, %v4800_v26  ;;  %v4804_v25 = vld [vmem:[#allocation7 + $0x4] sm:$0xf]  ;;  %v4061_v26 = vld [vmem:[#allocation7 + $0x8] sm:$0xf0] }
  0x9d   :  { %4026 = vmatmul.msk.bf16.gmra.mxu1 %vm371_vm0, %v4811_v27  ;;  %3996 = vmatmul.msk.bf16.gmra.mxu0 %vm371_vm0, %v4801_v28  ;;  %v4060_v27 = vor.u32 %v4805_v24, %v4059_v22  ;;  %v712_v28 = vsel %vm587_vm1, %v4072_v23, 0 }
  0x9e   :  { %759 = vmatpush.bf16.msrb.mxu3 %v712_v28 }
  0x9f   :  { %721 = vmatpush.bf16.msrb.mxu2 %v4060_v27 }
  0xad   :  { %4027 = vmatmul.msk.bf16.gmra.mxu1 %vm371_vm0, %v4812_v29  ;;  %3997 = vmatmul.msk.bf16.gmra.mxu0 %vm371_vm0, %v4802_v30  ;;  %v4064_v29 = vor.u32 %v4804_v25, %v4061_v26 }
  0xaf   :  { %760 = vmatpush.bf16.msrb.mxu3 %v4064_v29 }
  0xbd   :  { %4028 = vmatmul.msk.bf16.gmra.mxu1 %vm371_vm0, %v4813_v31  ;;  %3998 = vmatmul.msk.bf16.gmra.mxu0 %vm371_vm0, %v4803_v32 }
  0xcd   :  { %4109 = vmatmul.msk.bf16.vlgmr.msrb.gmra.mxu0 %vm371_vm0, %v4818_v33 }
  0xdd   :  { %4110 = vmatmul.msk.bf16.gmra.mxu0 %vm371_vm0, %v4819_v48 }
  0xea   :  { %v509_v50 = vpop.f32.mrf.mxu1  ;;  %v5703_v51 = vpop.f32.mrf.mxu0 }
  0xed   :  { %4111 = vmatmul.msk.bf16.gmra.mxu0 %vm371_vm0, %v4820_v49 }
  0xf2   :  { %v511_v52 = vpop.f32.mrf.mxu1  ;;  %v5706_v53 = vpop.f32.mrf.mxu0 }
  0xf3   :  { %v539_v54 = vpack.c.bf16 %v511_v52, %v509_v50  ;;  %v429_v49 = vpack.c.bf16 %v5706_v53, %v5703_v51 }
  0xf5   :  { %4045 = vmatmul.msk.bf16.vlgmr.msra.gmra.mxu2 %vm568_vm2, %v539_v54  ;;  %4051 = vmatmul.msk.bf16.vlgmr.msra.gmra.mxu3 %vm568_vm2, %v539_v54 }
  0xf6   :  { %1109 = vmatpush.bf16.msra.mxu3 %v5652_v3 }
  0xfa   :  { %v514_v56 = vpop.f32.mrf.mxu1  ;;  %v5710_v57 = vpop.f32.mrf.mxu0  ;;  %1110 = vmatpush.bf16.msra.mxu3 %v5655_v5 }
  0xfd   :  { %4112 = vmatmul.msk.bf16.gmra.mxu0 %vm371_vm0, %v4821_v55 }
  0xfe   :  { %1111 = vmatpush.bf16.msra.mxu3 %v5659_v8 }
 0x102   :  { %v516_v58 = vpop.f32.mrf.mxu1  ;;  %v5713_v59 = vpop.f32.mrf.mxu0  ;;  %1112 = vmatpush.bf16.msra.mxu3 %v5663_v11 }
 0x103   :  { %v540_v60 = vpack.c.bf16 %v516_v58, %v514_v56  ;;  %v430_v55 = vpack.c.bf16 %v5713_v59, %v5710_v57 }
 0x105   :  { %4046 = vmatmul.msk.bf16.gmra.mxu2 %vm568_vm2, %v540_v60  ;;  %4052 = vmatmul.msk.bf16.gmra.mxu3 %vm568_vm2, %v540_v60 }
 0x106   :  { %1113 = vmatpush.bf16.msra.mxu3 %v5667_v14 }
 0x10a   :  { %v519_v62 = vpop.f32.mrf.mxu1  ;;  %v5717_v63 = vpop.f32.mrf.mxu0  ;;  %1114 = vmatpush.bf16.msra.mxu3 %v5671_v17 }
 0x10d   :  { %4113 = vmatmul.msk.bf16.gmra.mxu0 %vm371_vm0, %v4822_v61  ;;  %v4826_v61 = vld [vmem:[#allocation7 + $0x54] sm:$0xf] }
 0x10e   :  { %1115 = vmatpush.bf16.msra.mxu3 %v5675_v20 }
 0x112   :  { %v521_v0 = vpop.f32.mrf.mxu1  ;;  %v5720_v1 = vpop.f32.mrf.mxu0 }
 0x113   :  { %v541_v2 = vpack.c.bf16 %v521_v0, %v519_v62  ;;  %v431_v58 = vpack.c.bf16 %v5720_v1, %v5717_v63  ;;  %v4127_v62 = vld [vmem:[#allocation7 + $0x58] sm:$0x30] }
 0x114   :  { %v4130_v0 = vor.u32 %v4826_v61, %v4127_v62 }
 0x115   :  { %4047 = vmatmul.msk.bf16.gmra.mxu2 %vm568_vm2, %v541_v2  ;;  %4053 = vmatmul.msk.bf16.gmra.mxu3 %vm568_vm2, %v541_v2 }
 0x11a   :  { %v524_v6 = vpop.f32.mrf.mxu1  ;;  %v5724_v7 = vpop.f32.mrf.mxu0 }
 0x11d   :  { %4114 = vmatmul.msk.bf16.gmra.mxu0 %vm371_vm0, %v4823_v4  ;;  %v943_v4 = vsel %vm587_vm1, %v4130_v0, 0  ;;  %v4833_v0 = vld [vmem:[#allocation5 + $0xb8] sm:$0xff] }
 0x11e   :  { %990 = vmatpush.bf16.msra.mxu2 %v943_v4 }
 0x122   :  { %v526_v15 = vpop.f32.mrf.mxu1  ;;  %v5728_v16 = vpop.f32.mrf.mxu0 }
 0x123   :  { %v542_v18 = vpack.c.bf16 %v526_v15, %v524_v6  ;;  %v432_v9 = vpack.c.bf16 %v5728_v16, %v5724_v7 }
 0x125   :  { %4048 = vmatmul.msk.bf16.gmra.mxu2 %vm568_vm2, %v542_v18  ;;  %4054 = vmatmul.msk.bf16.gmra.mxu3 %vm568_vm2, %v542_v18  ;;  %v4824_v18 = vld [vmem:[#allocation7 + $0x44] sm:$0xf] }
 0x126   :  { %v4122_v7 = vor.u32 %v4824_v18, %v4119_v19  ;;  %v4838_v19 = vld [vmem:[#allocation5 + $0xc0] sm:$0xff] }
 0x128   :  { %991 = vmatpush.bf16.msra.mxu2 %v4122_v7 }
 0x12a   :  { %v529_v30 = vpop.f32.mrf.mxu1  ;;  %v5733_v31 = vpop.f32.mrf.mxu0 }
 0x132   :  { %v531_v32 = vpop.f32.mrf.mxu1  ;;  %v5736_v33 = vpop.f32.mrf.mxu0 }
 0x133   :  { %v543_v36 = vpack.c.bf16 %v531_v32, %v529_v30  ;;  %v433_v23 = vpack.c.bf16 %v5736_v33, %v5733_v31  ;;  %v4828_v33 = vld [vmem:[#allocation5 + $0x90] sm:$0xff] }
 0x135   :  { %4049 = vmatmul.msk.bf16.gmra.mxu2 %vm568_vm2, %v543_v36  ;;  %4055 = vmatmul.msk.bf16.gmra.mxu3 %vm568_vm2, %v543_v36  ;;  %v4829_v36 = vld [vmem:[#allocation5 + $0x98] sm:$0xff] }
 0x13a   :  { %v534_v42 = vpop.f32.mrf.mxu1  ;;  %v5743_v43 = vpop.f32.mrf.mxu0 }
 0x142   :  { %v536_v44 = vpop.f32.mrf.mxu1  ;;  %v5747_v45 = vpop.f32.mrf.mxu0 }
 0x143   :  { %v544_v46 = vpack.c.bf16 %v536_v44, %v534_v42  ;;  %v434_v30 = vpack.c.bf16 %v5747_v45, %v5743_v43 }
 0x145   :  { %4050 = vmatmul.msk.bf16.gmra.mxu2 %vm568_vm2, %v544_v46  ;;  %4056 = vmatmul.msk.bf16.gmra.mxu3 %vm568_vm2, %v544_v46 }
 0x14a   :  { %v862_v47 = vpop.f32.mrf.mxu0 }
 0x152   :  { %v864_v48 = vpop.f32.mrf.mxu0 }
 0x153   :  { %v5755_v50 = vpack.c.bf16 %v864_v48, %v862_v47  ;;  %v4831_v47 = vld [vmem:[#allocation5 + $0xa8] sm:$0xff] }
 0x155   :  { %4073 = vmatmul.msk.bf16.vlgmr.msrb.gmra.mxu2 %vm568_vm2, %v429_v49  ;;  %4079 = vmatmul.msk.bf16.vlgmr.msrb.gmra.mxu3 %vm568_vm2, %v429_v49 }
 0x156   :  { %4131 = vmatmul.msk.bf16.vlgmr.msrb.gmra.mxu1 %vm568_vm2, %v5755_v50  ;;  %1364 = vmatpush.bf16.msrb.mxu2 %v5652_v3 }
 0x15a   :  { %v867_v52 = vpop.f32.mrf.mxu0  ;;  %1365 = vmatpush.bf16.msrb.mxu2 %v5655_v5 }
 0x15e   :  { %1366 = vmatpush.bf16.msrb.mxu2 %v5659_v8 }
 0x162   :  { %v869_v54 = vpop.f32.mrf.mxu0  ;;  %1367 = vmatpush.bf16.msrb.mxu2 %v5663_v11 }
 0x163   :  { %v5763_v56 = vpack.c.bf16 %v869_v54, %v867_v52 }
 0x165   :  { %4074 = vmatmul.msk.bf16.gmra.mxu2 %vm568_vm2, %v430_v55  ;;  %4080 = vmatmul.msk.bf16.gmra.mxu3 %vm568_vm2, %v430_v55 }
 0x166   :  { %4132 = vmatmul.msk.bf16.gmra.mxu1 %vm568_vm2, %v5763_v56  ;;  %1368 = vmatpush.bf16.msrb.mxu2 %v5667_v14 }
 0x16a   :  { %v872_v51 = vpop.f32.mrf.mxu0  ;;  %1369 = vmatpush.bf16.msrb.mxu2 %v5671_v17 }
 0x16e   :  { %1370 = vmatpush.bf16.msrb.mxu2 %v5675_v20 }
 0x172   :  { %v874_v53 = vpop.f32.mrf.mxu0 }
 0x173   :  { %v5771_v60 = vpack.c.bf16 %v874_v53, %v872_v51 }
 0x175   :  { %4075 = vmatmul.msk.bf16.gmra.mxu2 %vm568_vm2, %v431_v58  ;;  %4081 = vmatmul.msk.bf16.gmra.mxu3 %vm568_vm2, %v431_v58 }
 0x176   :  { %4133 = vmatmul.msk.bf16.gmra.mxu1 %vm568_vm2, %v5771_v60 }
 0x178   :  { %v5777_v57 = vpop.f32.mrf.mxu2  ;;  %v5779_v59 = vpop.f32.mrf.mxu3 }
 0x17a   :  { %v877_v2 = vpop.f32.mrf.mxu0 }
 0x180   :  { %v5782_v63 = vpop.f32.mrf.mxu2  ;;  %v5784_v1 = vpop.f32.mrf.mxu3 }
 0x182   :  { %v879_v6 = vpop.f32.mrf.mxu0 }
 0x183   :  { %v5788_v10 = vpack.c.bf16 %v879_v6, %v877_v2 }
 0x185   :  { %4076 = vmatmul.msk.bf16.gmra.mxu2 %vm568_vm2, %v432_v9  ;;  %4082 = vmatmul.msk.bf16.gmra.mxu3 %vm568_vm2, %v432_v9 }
 0x186   :  { %4134 = vmatmul.msk.bf16.gmra.mxu1 %vm568_vm2, %v5788_v10 }
 0x188   :  { %v5794_v12 = vpop.f32.mrf.mxu2  ;;  %v5796_v13 = vpop.f32.mrf.mxu3 }
 0x18a   :  { %v882_v15 = vpop.f32.mrf.mxu0 }
 0x190   :  { %v5798_v21 = vpop.f32.mrf.mxu2  ;;  %v5800_v22 = vpop.f32.mrf.mxu3 }
 0x192   :  { %v884_v16 = vpop.f32.mrf.mxu0 }
 0x193   :  { %v896_v24 = vpack.c.bf16 %v884_v16, %v882_v15 }
 0x195   :  { %4077 = vmatmul.msk.bf16.gmra.mxu2 %vm568_vm2, %v433_v23  ;;  %4083 = vmatmul.msk.bf16.gmra.mxu3 %vm568_vm2, %v433_v23 }
 0x196   :  { %4135 = vmatmul.msk.bf16.gmra.mxu1 %vm568_vm2, %v896_v24 }
 0x198   :  { %v5809_v25 = vpop.f32.mrf.mxu2  ;;  %v5811_v26 = vpop.f32.mrf.mxu3 }
 0x19a   :  { %v887_v27 = vpop.f32.mrf.mxu0 }
 0x1a0   :  { %v5815_v28 = vpop.f32.mrf.mxu2  ;;  %v5817_v3 = vpop.f32.mrf.mxu3 }
 0x1a2   :  { %v889_v29 = vpop.f32.mrf.mxu0 }
 0x1a3   :  { %v897_v31 = vpack.c.bf16 %v889_v29, %v887_v27  ;;  %v4183_v27 = vld [vmem:[#allocation7 + $0x70] sm:$0xf]  ;;  %v4837_v29 = vld [vmem:[#allocation7 + $0x74] sm:$0x30] }
 0x1a5   :  { %4078 = vmatmul.msk.bf16.gmra.mxu2 %vm568_vm2, %v434_v30  ;;  %4084 = vmatmul.msk.bf16.gmra.mxu3 %vm568_vm2, %v434_v30  ;;  %v4836_v30 = vld [vmem:[#allocation7 + $0x74] sm:$0xf] }
 0x1a6   :  { %4136 = vmatmul.msk.bf16.gmra.mxu1 %vm568_vm2, %v897_v31 }
 0x1a8   :  { %v5826_v5 = vpop.f32.mrf.mxu2  ;;  %v5828_v8 = vpop.f32.mrf.mxu3 }
 0x1b0   :  { %v620_v11 = vpop.f32.mrf.mxu2  ;;  %v5831_v32 = vpop.f32.mrf.mxu3 }
 0x1b5   :  { %4137 = vmatmul.msk.bf16.vlgmr.msra.gmra.mxu2 %vm568_vm2, %v5755_v50  ;;  %4167 = vmatmul.msk.bf16.vlgmr.msra.gmra.mxu3 %vm371_vm0, %v4828_v33  ;;  %v4185_v33 = vld [vmem:[#allocation7 + $0x78] sm:$0x30] }
 0x1b8   :  { %v5836_v14 = vpop.f32.mrf.mxu2  ;;  %v5838_v34 = vpop.f32.mrf.mxu3 }
 0x1c0   :  { %v5840_v17 = vpop.f32.mrf.mxu2  ;;  %v5842_v35 = vpop.f32.mrf.mxu3 }
 0x1c1   :  { %6626 = vst [vmem:[#allocation39_spill] sm:$0xff] %v5842_v35 }
 0x1c5   :  { %4138 = vmatmul.msk.bf16.gmra.mxu2 %vm568_vm2, %v5763_v56  ;;  %4168 = vmatmul.msk.bf16.gmra.mxu3 %vm371_vm0, %v4829_v36  ;;  %v4832_v56 = vld [vmem:[#allocation5 + $0xb0] sm:$0xff]  ;;  %v4188_v36 = vor.u32 %v4836_v30, %v4185_v33 }
 0x1c8   :  { %v5847_v20 = vpop.f32.mrf.mxu2  ;;  %v5849_v37 = vpop.f32.mrf.mxu3 }
 0x1c9   :  { %6627 = vst [vmem:[#allocation40_spill] sm:$0xff] %v5849_v37 }
 0x1d0   :  { %v5851_v38 = vpop.f32.mrf.mxu2  ;;  %v5853_v39 = vpop.f32.mrf.mxu3 }
 0x1d1   :  { %6628 = vst [vmem:[#allocation41_spill] sm:$0xff] %v5851_v38 }
 0x1d2   :  { %6629 = vst [vmem:[#allocation42_spill] sm:$0xff] %v5853_v39 }
 0x1d3   :  { %v5855_v41 = vpop.f32.mrf.mxu1 }
 0x1d5   :  { %4139 = vmatmul.msk.bf16.gmra.mxu2 %vm568_vm2, %v5771_v60  ;;  %4169 = vmatmul.msk.bf16.gmra.mxu3 %vm371_vm0, %v4830_v40 }
 0x1d8   :  { %v5860_v42 = vpop.f32.mrf.mxu2  ;;  %v5862_v43 = vpop.f32.mrf.mxu3 }
 0x1db   :  { %v5864_v44 = vpop.f32.mrf.mxu1 }
 0x1e0   :  { %v5866_v45 = vpop.f32.mrf.mxu2  ;;  %v5868_v46 = vpop.f32.mrf.mxu3 }
 0x1e3   :  { %v5870_v48 = vpop.f32.mrf.mxu1 }
 0x1e5   :  { %4140 = vmatmul.msk.bf16.gmra.mxu2 %vm568_vm2, %v5788_v10  ;;  %4170 = vmatmul.msk.bf16.gmra.mxu3 %vm371_vm0, %v4831_v47  ;;  %v4175_v47 = vld [vmem:[#allocation7 + $0x60] sm:$0xf] }
 0x1e8   :  { %v5875_v49 = vpop.f32.mrf.mxu2  ;;  %v5877_v50 = vpop.f32.mrf.mxu3 }
 0x1eb   :  { %v5879_v52 = vpop.f32.mrf.mxu1 }
 0x1f0   :  { %v5881_v54 = vpop.f32.mrf.mxu2  ;;  %v5883_v55 = vpop.f32.mrf.mxu3 }
 0x1f3   :  { %v5885_v51 = vpop.f32.mrf.mxu1 }
 0x1f5   :  { %4141 = vmatmul.msk.bf16.gmra.mxu2 %vm568_vm2, %v896_v24  ;;  %4171 = vmatmul.msk.bf16.gmra.mxu3 %vm371_vm0, %v4832_v56  ;;  %v4835_v56 = vld [vmem:[#allocation7 + $0x64] sm:$0xf0] }
 0x1f8   :  { %v5889_v53 = vpop.f32.mrf.mxu2  ;;  %v5891_v58 = vpop.f32.mrf.mxu3 }
 0x1fb   :  { %v5893_v60 = vpop.f32.mrf.mxu1 }
 0x200   :  { %v5895_v61 = vpop.f32.mrf.mxu2  ;;  %v5897_v62 = vpop.f32.mrf.mxu3 }
 0x203   :  { %v5899_v2 = vpop.f32.mrf.mxu1 }
 0x205   :  { %4142 = vmatmul.msk.bf16.gmra.mxu2 %vm568_vm2, %v897_v31  ;;  %4172 = vmatmul.msk.bf16.gmra.mxu3 %vm371_vm0, %v4833_v0  ;;  %v4184_v31 = vor.u32 %v4837_v29, %v4183_v27  ;;  %v4834_v0 = vld [vmem:[#allocation7 + $0x64] sm:$0xf]  ;;  %v4839_v29 = vld [vmem:[#allocation5 + $0xc8] sm:$0xff] }
 0x207   :  { %v1195_v40 = vsel %vm587_vm1, %v4184_v31, 0 }
 0x208   :  { %v5903_v4 = vpop.f32.mrf.mxu2  ;;  %v5905_v6 = vpop.f32.mrf.mxu3  ;;  %1206 = vmatpush.bf16.msra.mxu0 %v1195_v40 }
 0x20b   :  { %v971_v9 = vpop.f32.mrf.mxu1 }
 0x210   :  { %v740_v10 = vpop.f32.mrf.mxu2  ;;  %v5907_v15 = vpop.f32.mrf.mxu3 }
 0x211   :  { %v741_v18 = vadd.f32 %v740_v10, %v620_v11  ;;  %v1198_v11 = vsel %vm587_vm1, %v4188_v36, 0  ;;  %v4177_v10 = vld [vmem:[#allocation7 + $0x68] sm:$0xf0] }
 0x212   :  { %1245 = vmatpush.bf16.msra.mxu1 %v1198_v11  ;;  %v4840_v11 = vld [vmem:[#allocation5 + $0xd0] sm:$0xff] }
 0x213   :  { %v5909_v7 = vadd.f32 %v971_v9, %v741_v18  ;;  %v5912_v16 = vpop.f32.mrf.mxu1  ;;  %v4176_v9 = vor.u32 %v4835_v56, %v4175_v47 }
 0x215   :  { %6630 = vst [vmem:[#allocation43_spill] sm:$0xff] %v5909_v7  ;;  %4225 = vmatmul.msk.bf16.vlgmr.msrb.gmra.mxu2 %vm371_vm0, %v4838_v19  ;;  %v4180_v19 = vor.u32 %v4834_v0, %v4177_v10  ;;  %1207 = vmatpush.bf16.msra.mxu0 %v4176_v9  ;;  %v4841_v9 = vld [vmem:[#allocation5 + $0xd8] sm:$0xff] }
 0x217   :  { %1246 = vmatpush.bf16.msra.mxu1 %v4180_v19 }
 0x218   :  { %v5914_v23 = vpop.f32.mrf.mxu2  ;;  %v5916_v24 = vpop.f32.mrf.mxu3 }
 0x219   :  { %6631 = vst [vmem:[#allocation44_spill] sm:$0xff] %v5916_v24 }
 0x21b   :  { %v976_v18 = vpop.f32.mrf.mxu1 }
 0x220   :  { %v745_v38 = vpop.f32.mrf.mxu2  ;;  %v5920_v7 = vpop.f32.mrf.mxu3 }
 0x221   :  { %6632 = vst [vmem:[#allocation45_spill] sm:$0xff] %v5920_v7  ;;  %v746_v27 = vadd.f32 %v745_v38, %v5840_v17 }
 0x223   :  { %v5923_v30 = vadd.f32 %v976_v18, %v746_v27 }
 0x225   :  { %6633 = vst [vmem:[#allocation46_spill] sm:$0xff] %v5923_v30  ;;  %4226 = vmatmul.msk.bf16.gmra.mxu2 %vm371_vm0, %v4839_v29 }
 0x228   :  { %v5926_v31 = vpop.f32.mrf.mxu2  ;;  %v5928_v33 = vpop.f32.mrf.mxu3 }
 0x229   :  { %6634 = vst [vmem:[#allocation47_spill] sm:$0xff] %v5928_v33 }
 0x230   :  { %v5930_v36 = vpop.f32.mrf.mxu2  ;;  %v5932_v40 = vpop.f32.mrf.mxu3 }
 0x231   :  { %6635 = vst [vmem:[#allocation48_spill] sm:$0xff] %v5930_v36  ;;  %v4843_v36 = vld [vmem:[#allocation5 + $0xe8] sm:$0xff] }
 0x232   :  { %6636 = vst [vmem:[#allocation49_spill] sm:$0xff] %v5932_v40  ;;  %v4847_v40 = vld [vmem:[#allocation7 + $0x94] sm:$0x30] }
 0x235   :  { %4227 = vmatmul.msk.bf16.gmra.mxu2 %vm371_vm0, %v4840_v11  ;;  %v4842_v11 = vld [vmem:[#allocation5 + $0xe0] sm:$0xff] }
 0x238   :  { %v5935_v47 = vpop.f32.mrf.mxu2  ;;  %v1117_v17 = vpop.f32.mrf.mxu3 }
 0x240   :  { %v5937_v38 = vpop.f32.mrf.mxu2  ;;  %v1119_v56 = vpop.f32.mrf.mxu3 }
 0x241   :  { %v1147_v0 = vpack.c.bf16 %v1119_v56, %v1117_v17 }
 0x243   :  { %4189 = vmatmul.msk.bf16.vlgmr.msra.gmra.mxu0 %vm568_vm2, %v1147_v0  ;;  %4195 = vmatmul.msk.bf16.vlgmr.msra.gmra.mxu1 %vm568_vm2, %v1147_v0 }
 0x245   :  { %4228 = vmatmul.msk.bf16.gmra.mxu2 %vm371_vm0, %v4841_v9 }
 0x248   :  { %v5942_v10 = vpop.f32.mrf.mxu2  ;;  %v1122_v18 = vpop.f32.mrf.mxu3 }
 0x250   :  { %v5944_v19 = vpop.f32.mrf.mxu2  ;;  %v1124_v27 = vpop.f32.mrf.mxu3 }
 0x251   :  { %v1148_v29 = vpack.c.bf16 %v1124_v27, %v1122_v18 }
 0x253   :  { %4190 = vmatmul.msk.bf16.gmra.mxu0 %vm568_vm2, %v1148_v29  ;;  %4196 = vmatmul.msk.bf16.gmra.mxu1 %vm568_vm2, %v1148_v29  ;;  %v4241_v29 = vld [vmem:[#allocation7 + $0x90] sm:$0xf] }
 0x255   :  { %4229 = vmatmul.msk.bf16.gmra.mxu2 %vm371_vm0, %v4842_v11  ;;  %v4242_v11 = vor.u32 %v4847_v40, %v4241_v29  ;;  %v4233_v40 = vld [vmem:[#allocation7 + $0x80] sm:$0xf]  ;;  %v4845_v29 = vld [vmem:[#allocation7 + $0x84] sm:$0xf0] }
 0x257   :  { %v1450_v39 = vsel %vm587_vm1, %v4242_v11, 0  ;;  %v4234_v11 = vor.u32 %v4845_v29, %v4233_v40 }
 0x258   :  { %v5949_v17 = vpop.f32.mrf.mxu2  ;;  %v1127_v56 = vpop.f32.mrf.mxu3  ;;  %1461 = vmatpush.bf16.msrb.mxu3 %v1450_v39  ;;  %v4844_v39 = vld [vmem:[#allocation7 + $0x84] sm:$0xf] }
 0x25c   :  { %1462 = vmatpush.bf16.msrb.mxu3 %v4234_v11 }
 0x260   :  { %v5951_v0 = vpop.f32.mrf.mxu2  ;;  %v1129_v9 = vpop.f32.mrf.mxu3 }
 0x261   :  { %v1149_v30 = vpack.c.bf16 %v1129_v9, %v1127_v56  ;;  %v4846_v9 = vld [vmem:[#allocation7 + $0x94] sm:$0xf] }
 0x263   :  { %4191 = vmatmul.msk.bf16.gmra.mxu0 %vm568_vm2, %v1149_v30  ;;  %4197 = vmatmul.msk.bf16.gmra.mxu1 %vm568_vm2, %v1149_v30 }
 0x265   :  { %4230 = vmatmul.msk.bf16.gmra.mxu2 %vm371_vm0, %v4843_v36 }
 0x268   :  { %v5956_v18 = vpop.f32.mrf.mxu2  ;;  %v1132_v27 = vpop.f32.mrf.mxu3 }
 0x269   :  { %6637 = vst [vmem:[#allocation50_spill] sm:$0xff] %v5956_v18  ;;  %v4243_v18 = vld [vmem:[#allocation7 + $0x98] sm:$0x30] }
 0x26a   :  { %v4246_v7 = vor.u32 %v4846_v9, %v4243_v18 }
 0x26c   :  { %v1453_v35 = vsel %vm587_vm1, %v4246_v7, 0 }
 0x26d   :  { %1500 = vmatpush.bf16.msrb.mxu0 %v1453_v35 }
 0x270   :  { %v5959_v33 = vpop.f32.mrf.mxu2  ;;  %v1134_v37 = vpop.f32.mrf.mxu3 }
 0x271   :  { %6638 = vst [vmem:[#allocation51_spill] sm:$0xff] %v5959_v33  ;;  %v1150_v56 = vpack.c.bf16 %v1134_v37, %v1132_v27  ;;  %v4235_v33 = vld [vmem:[#allocation7 + $0x88] sm:$0xf0] }
 0x272   :  { %v4238_v24 = vor.u32 %v4844_v39, %v4235_v33 }
 0x273   :  { %4192 = vmatmul.msk.bf16.gmra.mxu0 %vm568_vm2, %v1150_v56  ;;  %4198 = vmatmul.msk.bf16.gmra.mxu1 %vm568_vm2, %v1150_v56 }
 0x274   :  { %1501 = vmatpush.bf16.msrb.mxu0 %v4238_v24 }
 0x278   :  { %v5963_v30 = vpop.f32.mrf.mxu2  ;;  %v1137_v36 = vpop.f32.mrf.mxu3 }
 0x279   :  { %6639 = vst [vmem:[#allocation52_spill] sm:$0xff] %v5963_v30 }
 0x280   :  { %v5966_v37 = vpop.f32.mrf.mxu2  ;;  %v1139_v27 = vpop.f32.mrf.mxu3 }
 0x281   :  { %v1151_v56 = vpack.c.bf16 %v1139_v27, %v1137_v36  ;;  %v724_v27 = vadd.f32 %v5860_v42, %v5777_v57 }
 0x283   :  { %4193 = vmatmul.msk.bf16.gmra.mxu0 %vm568_vm2, %v1151_v56  ;;  %4199 = vmatmul.msk.bf16.gmra.mxu1 %vm568_vm2, %v1151_v56 }
 0x288   :  { %v5970_v18 = vpop.f32.mrf.mxu2  ;;  %v1142_v7 = vpop.f32.mrf.mxu3 }
 0x290   :  { %v5972_v35 = vpop.f32.mrf.mxu2  ;;  %v1144_v9 = vpop.f32.mrf.mxu3 }
 0x291   :  { %6640 = vst [vmem:[#allocation53_spill] sm:$0xff] %v5972_v35  ;;  %v1152_v30 = vpack.c.bf16 %v1144_v9, %v1142_v7 }
 0x293   :  { %4194 = vmatmul.msk.bf16.gmra.mxu0 %vm568_vm2, %v1152_v30  ;;  %4200 = vmatmul.msk.bf16.gmra.mxu1 %vm568_vm2, %v1152_v30  ;;  %v1023_v30 = vadd.f32 %v5855_v41, %v724_v27 }
 0x298   :  { %v1372_v33 = vpop.f32.mrf.mxu2 }
 0x2a0   :  { %v1374_v40 = vpop.f32.mrf.mxu2 }
 0x2a1   :  { %v1402_v29 = vpack.c.bf16 %v1374_v40, %v1372_v33 }
 0x2a3   :  { %4247 = vmatmul.msk.bf16.vlgmr.msrb.gmra.mxu3 %vm568_vm2, %v1402_v29  ;;  %4253 = vmatmul.msk.bf16.vlgmr.msrb.gmra.mxu0 %vm568_vm2, %v1402_v29 }
 0x2a8   :  { %v1377_v24 = vpop.f32.mrf.mxu2 }
 0x2b0   :  { %v1379_v36 = vpop.f32.mrf.mxu2 }
 0x2b1   :  { %v1403_v39 = vpack.c.bf16 %v1379_v36, %v1377_v24  ;;  %v729_v24 = vadd.f32 %v5875_v49, %v5794_v12 }
 0x2b3   :  { %4248 = vmatmul.msk.bf16.gmra.mxu3 %vm568_vm2, %v1403_v39  ;;  %4254 = vmatmul.msk.bf16.gmra.mxu0 %vm568_vm2, %v1403_v39  ;;  %v1027_v36 = vadd.f32 %v5870_v48, %v729_v24  ;;  %v739_v24 = vadd.f32 %v5903_v4, %v5826_v5 }
 0x2b8   :  { %v1382_v11 = vpop.f32.mrf.mxu2 }
 0x2c0   :  { %v1209_v56 = vpop.f32.mrf.mxu0  ;;  %v1384_v9 = vpop.f32.mrf.mxu2 }
 0x2c1   :  { %v1278_v7 = vadd.f32 %v1209_v56, %v1023_v30  ;;  %v1404_v33 = vpack.c.bf16 %v1384_v9, %v1382_v11  ;;  %v734_v30 = vadd.f32 %v5889_v53, %v5809_v25 }
 0x2c3   :  { %4249 = vmatmul.msk.bf16.gmra.mxu3 %vm568_vm2, %v1404_v33  ;;  %4255 = vmatmul.msk.bf16.gmra.mxu0 %vm568_vm2, %v1404_v33  ;;  %v1031_v56 = vadd.f32 %v5885_v51, %v734_v30 }
 0x2c8   :  { %v5985_v40 = vpop.f32.mrf.mxu0  ;;  %v1387_v29 = vpop.f32.mrf.mxu2 }
 0x2d0   :  { %v1214_v39 = vpop.f32.mrf.mxu0  ;;  %v1389_v41 = vpop.f32.mrf.mxu2 }
 0x2d1   :  { %v5990_v57 = vadd.f32 %v1214_v39, %v1027_v36  ;;  %v1405_v42 = vpack.c.bf16 %v1389_v41, %v1387_v29  ;;  %v1035_v36 = vadd.f32 %v5899_v2, %v739_v24  ;;  %v979_v41 = vpop.f32.mrf.mxu1 }
 0x2d3   :  { %4250 = vmatmul.msk.bf16.gmra.mxu3 %vm568_vm2, %v1405_v42  ;;  %4256 = vmatmul.msk.bf16.gmra.mxu0 %vm568_vm2, %v1405_v42 }
 0x2d8   :  { %v5994_v11 = vpop.f32.mrf.mxu0  ;;  %v1392_v27 = vpop.f32.mrf.mxu2 }
 0x2d9   :  { %v6017_v5 = vpop.f32.mrf.mxu1 }
 0x2da   :  { %6643 = vst [vmem:[#allocation56_spill] sm:$0xff] %v6017_v5 }
 0x2e0   :  { %v1219_v12 = vpop.f32.mrf.mxu0  ;;  %v1394_v48 = vpop.f32.mrf.mxu2 }
 0x2e1   :  { %v5999_v49 = vadd.f32 %v1219_v12, %v1031_v56  ;;  %v1406_v9 = vpack.c.bf16 %v1394_v48, %v1392_v27  ;;  %v744_v27 = vadd.f32 %v5914_v23, %v5836_v14  ;;  %v1248_v56 = vpop.f32.mrf.mxu1  ;;  %v749_v48 = vadd.f32 %v5926_v31, %v5847_v20 }
 0x2e2   :  { %v763_v14 = vadd.f32 %v5862_v43, %v5779_v59 }
 0x2e3   :  { %4251 = vmatmul.msk.bf16.gmra.mxu3 %vm568_vm2, %v1406_v9  ;;  %4257 = vmatmul.msk.bf16.gmra.mxu0 %vm568_vm2, %v1406_v9  ;;  %v1039_v30 = vadd.f32 %v5912_v16, %v744_v27  ;;  %v1043_v9 = vadd.f32 %v979_v41, %v749_v48 }
 0x2e4   :  { %v1024_v23 = vadd.f32 %v5935_v47, %v763_v14 }
 0x2e8   :  { %v6003_v33 = vpop.f32.mrf.mxu0  ;;  %v1397_v29 = vpop.f32.mrf.mxu2 }
 0x2e9   :  { %v1250_v24 = vpop.f32.mrf.mxu1 }
 0x2f0   :  { %v1224_v25 = vpop.f32.mrf.mxu0  ;;  %v1399_v51 = vpop.f32.mrf.mxu2 }
 0x2f1   :  { %v6008_v53 = vadd.f32 %v1224_v25, %v1035_v36  ;;  %v1407_v39 = vpack.c.bf16 %v1399_v51, %v1397_v29  ;;  %v6031_v16 = vpop.f32.mrf.mxu1  ;;  %v1279_v51 = vadd.f32 %v1248_v56, %v1024_v23 }
 0x2f3   :  { %6641 = vst [vmem:[#allocation54_spill] sm:$0xff] %v6008_v53  ;;  %4252 = vmatmul.msk.bf16.gmra.mxu3 %vm568_vm2, %v1407_v39  ;;  %4258 = vmatmul.msk.bf16.gmra.mxu0 %vm568_vm2, %v1407_v39  ;;  %v6088_v53 = vld [vmem:[#allocation8 + $0x48] sm:$0xff] }
 0x2f4   :  { %6657 = vst [vmem:[#allocation70_spill] sm:$0xff] %v6088_v53 }
 0x2f8   :  { %v6012_v42 = vpop.f32.mrf.mxu0 }
 0x2f9   :  { %6642 = vst [vmem:[#allocation55_spill] sm:$0xff] %v6012_v42  ;;  %v6093_v42 = vld [vmem:[#allocation8 + $0x40] sm:$0xff] }
 0x2fa   :  { %6658 = vst [vmem:[#allocation71_spill] sm:$0xff] %v6093_v42 }
 0x300   :  { %v1229_v2 = vpop.f32.mrf.mxu0 }
 0x301   :  { %v6019_v4 = vadd.f32 %v1229_v2, %v1039_v30  ;;  %v6036_v30 = vpop.f32.mrf.mxu1 }
 0x303   :  { %6644 = vst [vmem:[#allocation57_spill] sm:$0xff] %v6019_v4  ;;  %v6075_v4 = vld [vmem:[#allocation8 + $0x60] sm:$0xff] }
 0x304   :  { %6653 = vst [vmem:[#allocation66_spill] sm:$0xff] %v6075_v4 }
 0x308   :  { %v6021_v12 = vpop.f32.mrf.mxu0 }
 0x309   :  { %6645 = vst [vmem:[#allocation58_spill] sm:$0xff] %v6021_v12  ;;  %v6042_v48 = vpop.f32.mrf.mxu1  ;;  %v6078_v12 = vld [vmem:[#allocation8 + $0x58] sm:$0xff] }
 0x30a   :  { %6654 = vst [vmem:[#allocation67_spill] sm:$0xff] %v6078_v12 }
 0x310   :  { %v1234_v29 = vpop.f32.mrf.mxu0 }
 0x311   :  { %v6025_v36 = vadd.f32 %v1234_v29, %v1043_v9  ;;  %v6048_v47 = vpop.f32.mrf.mxu1 }
 0x313   :  { %6646 = vst [vmem:[#allocation59_spill] sm:$0xff] %v6025_v36  ;;  %v6070_v36 = vld [vmem:[#allocation8 + $0x68] sm:$0xff] }
 0x314   :  { %6652 = vst [vmem:[#allocation65_spill] sm:$0xff] %v6070_v36 }
 0x318   :  { %v6027_v25 = vpop.f32.mrf.mxu0 }
 0x319   :  { %6647 = vst [vmem:[#allocation60_spill] sm:$0xff] %v6027_v25  ;;  %v6054_v14 = vpop.f32.mrf.mxu1 }
 0x320   :  { %v1503_v39 = vpop.f32.mrf.mxu0 }
 0x321   :  { %v6034_v27 = vadd.f32 %v1503_v39, %v1279_v51  ;;  %v6060_v51 = vld [vmem:[#allocation8 + $0x78] sm:$0xff]  ;;  %v6063_v39 = vpop.f32.mrf.mxu1 }
 0x322   :  { %6649 = vst [vmem:[#allocation62_spill] sm:$0xff] %v6060_v51  ;;  %1642 = vmatpush.msrb.mxu1 %v6060_v51  ;;  %v6081_v51 = vld [vmem:[#allocation8 + $0x50] sm:$0xff] }
 0x323   :  { %6655 = vst [vmem:[#allocation68_spill] sm:$0xff] %v6081_v51 }
 0x326   :  { %v1464_v20 = vpop.f32.mrf.mxu3 }
 0x327   :  { %v6038_v31 = vadd.f32 %v1464_v20, %v1278_v7  ;;  %v6065_v20 = vld [vmem:[#allocation8 + $0x70] sm:$0xff] }
 0x328   :  { %v1505_v41 = vpop.f32.mrf.mxu0  ;;  %6650 = vst [vmem:[#allocation63_spill] sm:$0xff] %v6065_v20  ;;  %1643 = vmatpush.msrb.mxu1 %v6065_v20 }
 0x329   :  { %v6084_v20 = vpop.f32.mrf.mxu1 }
 0x32a   :  { %1644 = vmatpush.msrb.mxu1 %v6070_v36 }
 0x32c   :  { %1645 = vmatpush.msrb.mxu1 %v6075_v4  ;;  %v6096_v4 = vld [vmem:[#allocation8 + $0x38] sm:$0xff] }
 0x32d   :  { %6659 = vst [vmem:[#allocation72_spill] sm:$0xff] %v6096_v4 }
 0x32e   :  { %v6040_v2 = vpop.f32.mrf.mxu3  ;;  %1646 = vmatpush.msrb.mxu1 %v6078_v12  ;;  %v765_v12 = vadd.f32 %v5868_v46, %v5784_v1  ;;  %v6113_v1 = vld [vmem:[#allocation8 + $0x28] sm:$0xff]  ;;  %v770_v46 = vadd.f32 %v5883_v55, %v5800_v22 }
 0x330   :  { %v1508_v9 = vpop.f32.mrf.mxu0  ;;  %1647 = vmatpush.msrb.mxu1 %v6081_v51  ;;  %v6101_v51 = vld [vmem:[#allocation8 + $0x30] sm:$0xff] }
 0x332   :  { %1648 = vmatpush.msrb.mxu1 %v6088_v53  ;;  %v1026_v53 = vadd.f32 %v5937_v38, %v765_v12  ;;  %v6121_v38 = vpop.f32.mrf.mxu1  ;;  %v6663_v12 = vld [vmem:[#allocation50_spill] sm:$0xff] }
 0x334   :  { %1649 = vmatpush.msrb.mxu1 %v6093_v42  ;;  %v731_v42 = vadd.f32 %v5881_v54, %v5798_v21  ;;  %v6125_v21 = vld [vmem:[#allocation8 + $0x20] sm:$0xff]  ;;  %v1030_v54 = vadd.f32 %v5944_v19, %v770_v46 }
 0x335   :  { %v6666_v46 = vld [vmem:[#allocation51_spill] sm:$0xff] }
 0x336   :  { %v6044_v59 = vpop.f32.mrf.mxu3  ;;  %1650 = vmatpush.msrb.mxu1 %v6096_v4 }
 0x338   :  { %v6046_v43 = vpop.f32.mrf.mxu0  ;;  %1651 = vmatpush.msrb.mxu1 %v6101_v51 }
 0x33a   :  { %1652 = vmatpush.msrb.mxu1 %v6113_v1 }
 0x33c   :  { %1653 = vmatpush.msrb.mxu1 %v6125_v21 }
 0x33e   :  { %v6050_v56 = vpop.f32.mrf.mxu3 }
 0x340   :  { %v6052_v29 = vpop.f32.mrf.mxu0 }
 0x346   :  { %v6056_v7 = vpop.f32.mrf.mxu3 }
 0x347   :  { %6648 = vst [vmem:[#allocation61_spill] sm:$0xff] %v6056_v7 }
 0x348   :  { %v6058_v23 = vpop.f32.mrf.mxu0 }
 0x34e   :  { %v6068_v25 = vpop.f32.mrf.mxu3 }
 0x34f   :  { %6651 = vst [vmem:[#allocation64_spill] sm:$0xff] %v6068_v25  ;;  %v726_v25 = vadd.f32 %v5866_v45, %v5782_v63  ;;  %v773_v45 = vadd.f32 %v5891_v58, %v5811_v26  ;;  %v1285_v26 = vadd.f32 %v6036_v30, %v1030_v54 }
 0x350   :  { %v6073_v5 = vpop.f32.mrf.mxu0 }
 0x356   :  { %v6086_v35 = vpop.f32.mrf.mxu3 }
 0x357   :  { %6656 = vst [vmem:[#allocation69_spill] sm:$0xff] %v6086_v35  ;;  %v768_v35 = vadd.f32 %v5877_v50, %v5796_v13  ;;  %v1281_v13 = vadd.f32 %v1250_v24, %v1026_v53  ;;  %v736_v50 = vadd.f32 %v5895_v61, %v5815_v28  ;;  %v1029_v28 = vadd.f32 %v5879_v52, %v731_v42  ;;  %v6136_v61 = vld [vmem:[#allocation8 + $0x18] sm:$0xff]  ;;  %v6150_v42 = vld [vmem:[#allocation8 + $0x10] sm:$0xff] }
 0x358   :  { %v6091_v36 = vpop.f32.mrf.mxu0  ;;  %v1032_v53 = vadd.f32 %v5949_v17, %v773_v45  ;;  %1654 = vmatpush.msrb.mxu1 %v6136_v61  ;;  %v780_v52 = vadd.f32 %v5907_v15, %v5831_v32  ;;  %v6662_v32 = vld [vmem:[#allocation45_spill] sm:$0xff] }
 0x359   :  { %v1028_v4 = vadd.f32 %v5942_v10, %v768_v35  ;;  %v6131_v55 = vadd.f32 %v1505_v41, %v1281_v13  ;;  %v1025_v10 = vadd.f32 %v5864_v44, %v726_v25  ;;  %v775_v35 = vadd.f32 %v5897_v62, %v5817_v3 }
 0x35a   :  { %v1033_v19 = vadd.f32 %v5893_v60, %v736_v50  ;;  %v778_v44 = vadd.f32 %v5905_v6, %v5828_v8  ;;  %v1287_v62 = vadd.f32 %v6042_v48, %v1032_v53  ;;  %1655 = vmatpush.msrb.mxu1 %v6150_v42  ;;  %v6660_v8 = vld [vmem:[#allocation44_spill] sm:$0xff]  ;;  %v6661_v6 = vld [vmem:[#allocation39_spill] sm:$0xff]  ;;  %v1601_v41 = vsel %vm1600_vm3, %v6034_v27, 0.0 }
 0x35b   :  { %v1283_v22 = vadd.f32 %v6031_v16, %v1028_v4  ;;  %v1034_v3 = vadd.f32 %v5951_v0, %v775_v35  ;;  %v1602_v17 = vsel %vm1600_vm3, %v6131_v55, 0.0  ;;  %v6157_v4 = vadd.f32 %v6046_v43, %v1285_v26  ;;  %v6168_v16 = vld [vmem:[#allocation8 + $0x8] sm:$0xff]  ;;  %v1580_v26 = vld [vmem:[#allocation8 + $0xb8] sm:$0xff] }
 0x35c   :  { %v783_v60 = vadd.f32 %v6660_v8, %v5838_v34  ;;  %v785_v15 = vadd.f32 %v6662_v32, %v6661_v6  ;;  %v1036_v24 = vadd.f32 %v6663_v12, %v778_v44  ;;  %v1280_v0 = vadd.f32 %v5985_v40, %v1025_v10  ;;  %1656 = vmatpush.msrb.mxu1 %v6168_v16  ;;  %v6665_v43 = vld [vmem:[#allocation47_spill] sm:$0xff]  ;;  %v6667_v50 = vld [vmem:[#allocation52_spill] sm:$0xff] }
 0x35d   :  { %v6142_v58 = vadd.f32 %v1508_v9, %v1283_v22  ;;  %v1289_v30 = vadd.f32 %v6048_v47, %v1034_v3  ;;  %v6176_v34 = vadd.f32 %v6052_v29, %v1287_v62  ;;  %v6664_v9 = vld [vmem:[#allocation40_spill] sm:$0xff]  ;;  %v1038_v13 = vadd.f32 %v6666_v46, %v780_v52  ;;  %v6183_v22 = vld [vmem:[#allocation8] sm:$0xff]  ;;  %v1273_v3 = vpop.f32.mrf.mxu1  ;;  %1855 = vmatpush.msra.mxu2 %v1580_v26  ;;  %v6671_v46 = vld [vmem:[#allocation49_spill] sm:$0xff] }
 0x35e   :  { %v6111_v7 = vpop.f32.mrf.mxu3  ;;  %v788_v40 = vadd.f32 %v6665_v43, %v6664_v9  ;;  %v1040_v45 = vadd.f32 %v6667_v50, %v783_v60  ;;  %v1603_v54 = vadd.f32 %v1602_v17, %v1601_v41  ;;  %v1291_v10 = vadd.f32 %v6054_v14, %v1036_v24  ;;  %1657 = vmatpush.msrb.mxu1 %v6183_v22  ;;  %v1579_v8 = vld [vmem:[#allocation8 + $0xb0] sm:$0xff]  ;;  %v1578_v60 = vld [vmem:[#allocation8 + $0xa8] sm:$0xff]  ;;  %v1576_v43 = vld [vmem:[#allocation8 + $0x98] sm:$0xff] }
 0x35f   :  { %v1604_v48 = vsel %vm1600_vm3, %v6142_v58, 0.0  ;;  %v6187_v35 = vadd.f32 %v6040_v2, %v1280_v0  ;;  %v1606_v29 = vsel %vm1600_vm3, %v6157_v4, 0.0  ;;  %v6192_v53 = vadd.f32 %v6058_v23, %v1289_v30  ;;  %1856 = vmatpush.msra.mxu2 %v1579_v8  ;;  %v1577_v0 = vld [vmem:[#allocation8 + $0xa0] sm:$0xff]  ;;  %v6669_v41 = vld [vmem:[#allocation64_spill] sm:$0xff] }
 0x360   :  { %v6123_v63 = vpop.f32.mrf.mxu0  ;;  %v1042_v44 = vadd.f32 %v5966_v37, %v785_v15  ;;  %v1284_v52 = vadd.f32 %v5994_v11, %v1029_v28  ;;  %v1605_v62 = vadd.f32 %v1604_v48, %v1603_v54  ;;  %1670 = vmatpush.msra.mxu1 %v1580_v26  ;;  %v1293_v2 = vadd.f32 %v6063_v39, %v1038_v13  ;;  %v6672_v50 = vld [vmem:[#allocation43_spill] sm:$0xff]  ;;  %v6674_v26 = vld [vmem:[#allocation54_spill] sm:$0xff] }
 0x361   :  { %v6200_v14 = vadd.f32 %v6044_v59, %v5990_v57  ;;  %v1608_v23 = vsel %vm1600_vm3, %v6176_v34, 0.0  ;;  %v6205_v17 = vadd.f32 %v6073_v5, %v1291_v10  ;;  %v1044_v37 = vadd.f32 %v5970_v18, %v788_v40  ;;  %1857 = vmatpush.msra.mxu2 %v1578_v60  ;;  %v1575_v40 = vld [vmem:[#allocation8 + $0x90] sm:$0xff] }
 0x362   :  { %v1295_v11 = vadd.f32 %v6084_v20, %v1040_v45  ;;  %v1607_v28 = vadd.f32 %v1606_v29, %v1605_v62  ;;  %1671 = vmatpush.msra.mxu1 %v1579_v8  ;;  %v1583_v39 = vadd.f32 %v6187_v35, %v6038_v31  ;;  %v6212_v57 = vadd.f32 %v6050_v56, %v1284_v52  ;;  %v6668_v56 = vld [vmem:[#allocation61_spill] sm:$0xff]  ;;  %v6673_v45 = vld [vmem:[#allocation55_spill] sm:$0xff] }
 0x363   :  { %v1610_v59 = vsel %vm1600_vm3, %v6192_v53, 0.0  ;;  %v6217_v5 = vadd.f32 %v6091_v36, %v1293_v2  ;;  %v1288_v18 = vadd.f32 %v6003_v33, %v1033_v19  ;;  %v1297_v20 = vadd.f32 %v6121_v38, %v1042_v44  ;;  %1858 = vmatpush.msra.mxu2 %v1577_v0  ;;  %v6675_v44 = vld [vmem:[#allocation69_spill] sm:$0xff]  ;;  %v1574_v62 = vld [vmem:[#allocation8 + $0x88] sm:$0xff] }
 0x364   :  { %v1609_v6 = vadd.f32 %v1608_v23, %v1607_v28  ;;  %1672 = vmatpush.msra.mxu1 %v1578_v60  ;;  %v1584_v15 = vadd.f32 %v1583_v39, %v6200_v14  ;;  %v6224_v12 = vadd.f32 %v6668_v56, %v5999_v49  ;;  %v1612_v24 = vsel %vm1600_vm3, %v6205_v17, 0.0  ;;  %v6676_v2 = vld [vmem:[#allocation53_spill] sm:$0xff]  ;;  %v1573_v60 = vld [vmem:[#allocation8 + $0x80] sm:$0xff] }
 0x365   :  { %v6229_v36 = vadd.f32 %v6123_v63, %v1295_v11  ;;  %v1299_v33 = vadd.f32 %v1273_v3, %v1044_v37  ;;  %v6233_v48 = vadd.f32 %v6669_v41, %v1288_v18  ;;  %v1614_v49 = vsel %vm1600_vm3, %v6217_v5, 0.0  ;;  %v6670_v63 = vld [vmem:[#allocation42_spill] sm:$0xff]  ;;  %1859 = vmatpush.msra.mxu2 %v1576_v43  ;;  %v1275_v8 = vpop.f32.mrf.mxu1  ;;  %v6677_v18 = vld [vmem:[#allocation41_spill] sm:$0xff] }
 0x366   :  { %v6166_v25 = vpop.f32.mrf.mxu3  ;;  %v1611_v19 = vadd.f32 %v1610_v59, %v1609_v6  ;;  %1673 = vmatpush.msra.mxu1 %v1577_v0  ;;  %v1585_v30 = vadd.f32 %v1584_v15, %v6212_v57  ;;  %v790_v13 = vadd.f32 %v6671_v46, %v6670_v63  ;;  %v1292_v54 = vadd.f32 %v6673_v45, %v6672_v50  ;;  %v6679_v15 = vld [vmem:[#allocation46_spill] sm:$0xff]  ;;  %v6682_v45 = vld [vmem:[#allocation56_spill] sm:$0xff] }
 0x367   :  { %v6246_v52 = vadd.f32 %v6675_v44, %v6674_v26  ;;  %1860 = vmatpush.msra.mxu2 %v1575_v40  ;;  %v5460_v59 = vmov 96.0   ;;  %v6680_v56 = vld [vmem:[#allocation58_spill] sm:$0xff] }
 0x368   :  { %v1525_v47 = vpop.f32.mrf.mxu0  ;;  %v1613_v10 = vadd.f32 %v1612_v24, %v1611_v19  ;;  %1674 = vmatpush.msra.mxu1 %v1576_v43  ;;  %v1586_v29 = vadd.f32 %v1585_v30, %v6224_v12  ;;  %v1046_v23 = vadd.f32 %v6676_v2, %v790_v13  ;;  %v6255_v28 = vadd.f32 %v6111_v7, %v1292_v54 }
 0x369   :  { %v6237_v9 = vadd.f32 %v1525_v47, %v1297_v20  ;;  %v1616_v47 = vsel %vm1600_vm3, %v6229_v36, 0.0  ;;  %4996 = vrcp.f32 %v5460_v59  ;;  %v6678_v20 = vld [vmem:[#allocation48_spill] sm:$0xff]  ;;  %v1296_v24 = vadd.f32 %v6680_v56, %v6679_v15  ;;  %1861 = vmatpush.msra.mxu2 %v1574_v62 }
 0x36a   :  { %v1615_v37 = vadd.f32 %v1614_v49, %v1613_v10  ;;  %1675 = vmatpush.msra.mxu1 %v1575_v40  ;;  %v1587_v11 = vadd.f32 %v1586_v29, %v6233_v48  ;;  %v751_v6 = vadd.f32 %v6678_v20, %v6677_v18  ;;  %v1301_v19 = vadd.f32 %v1275_v8, %v1046_v23  ;;  %v6683_v10 = vld [vmem:[#allocation59_spill] sm:$0xff] }
 0x36b   :  { %v1618_v39 = vsel %vm1600_vm3, %v6237_v9, 0.0  ;;  %1862 = vmatpush.msra.mxu2 %v1573_v60 }
 0x36c   :  { %v1617_v0 = vadd.f32 %v1616_v47, %v1615_v37  ;;  %1676 = vmatpush.msra.mxu1 %v1574_v62  ;;  %v1588_v7 = vadd.f32 %v1587_v11, %v6246_v52  ;;  %v1045_v54 = vadd.f32 %v6682_v45, %v751_v6  ;;  %v6684_v47 = vld [vmem:[#allocation60_spill] sm:$0xff] }
 0x36d   :  { %v6293_v45 = vld [vmem:[#allocation10 + $0x8] sm:$0xff] }
 0x36e   :  { %v1486_v32 = vpop.f32.mrf.mxu3  ;;  %v1619_v49 = vadd.f32 %v1618_v39, %v1617_v0  ;;  %1677 = vmatpush.msra.mxu1 %v1573_v60  ;;  %v1589_v40 = vadd.f32 %v1588_v7, %v6255_v28  ;;  %v1300_v62 = vadd.f32 %v6684_v47, %v1045_v54  ;;  %v6688_v47 = vld [vmem:[#allocation66_spill] sm:$0xff] }
 0x36f   :  { %v6271_v63 = vadd.f32 %v1486_v32, %v1296_v24  ;;  %v4997_v50 = vpop.eup %4996 }
 0x370   :  { %v1528_v38 = vpop.f32.mrf.mxu0  ;;  %v1631_v2 = vmul.f32 96.0, %v4997_v50  ;;  %vm1635_vm4 = vweird.f32 %v4997_v50 }
 0x371   :  { %v6250_v3 = vadd.f32 %v1528_v38, %v1299_v33  ;;  %v6681_v38 = vld [vmem:[#allocation57_spill] sm:$0xff] }
 0x372   :  { %v6266_v30 = vadd.f32 %v6166_v25, %v6681_v38  ;;  %v1632_v59 = vsub.f32 1.0, %v1631_v2  ;;  %v6691_v2 = vld [vmem:[#allocation70_spill] sm:$0xff] }
 0x373   :  { %v1620_v41 = vsel %vm1600_vm3, %v6250_v3, 0.0 }
 0x374   :  { %v1621_v13 = vadd.f32 %v1620_v41, %v1619_v49  ;;  %v1590_v25 = vadd.f32 %v1589_v40, %v6266_v30  ;;  %v1633_v6 = vmul.f32 %v4997_v50, %v1632_v59 }
 0x376   :  { %v1489_v33 = vpop.f32.mrf.mxu3  ;;  %v1591_v32 = vadd.f32 %v1590_v25, %v6271_v63  ;;  %v1634_v0 = vadd.f32 %v4997_v50, %v1633_v6 }
 0x377   :  { %v6278_v29 = vadd.f32 %v1489_v33, %v6683_v10  ;;  %v6685_v10 = vld [vmem:[#allocation62_spill] sm:$0xff] }
 0x378   :  { %v1530_v43 = vpop.f32.mrf.mxu0  ;;  %v6288_v38 = vsel %vm1635_vm4, %v4997_v50, %v1634_v0  ;;  %vm3238_vm4 = vcmask 261120  }
 0x379   :  { %v6273_v46 = vadd.f32 %v1530_v43, %v1301_v19  ;;  %v1592_v8 = vadd.f32 %v1591_v32, %v6278_v29  ;;  %v6690_v32 = vld [vmem:[#allocation68_spill] sm:$0xff] }
 0x37b   :  { %v1622_v26 = vsel %vm1600_vm3, %v6273_v46, 0.0 }
 0x37c   :  { %v1623_v44 = vadd.f32 %v1622_v26, %v1621_v13  ;;  %v1581_v13 = vld [vmem:[#allocation10] sm:$0xff] }
 0x37d   :  { %v6686_v26 = vld [vmem:[#allocation63_spill] sm:$0xff] }
 0x37e   :  { %v1491_v23 = vpop.f32.mrf.mxu3  ;;  %v1624_v37 = vrot.slane %v1623_v44, 4 }
 0x37f   :  { %v6285_v11 = vadd.f32 %v1491_v23, %v1300_v62  ;;  %v6689_v62 = vld [vmem:[#allocation67_spill] sm:$0xff] }
 0x380   :  { %v1625_v60 = vadd.f32 %v1624_v37, %v1623_v44  ;;  %v6687_v44 = vld [vmem:[#allocation65_spill] sm:$0xff]  ;;  %v6692_v23 = vld [vmem:[#allocation71_spill] sm:$0xff] }
 0x381   :  { %v1593_v39 = vadd.f32 %v1592_v8, %v6285_v11  ;;  %v6693_v8 = vld [vmem:[#allocation72_spill] sm:$0xff] }
 0x382   :  { %v1626_v15 = vrot.slane %v1625_v60, 2 }
 0x383   :  { %v1594_v18 = vrot.slane %v1593_v39, 4 }
 0x384   :  { %v1627_v33 = vadd.f32 %v1626_v15, %v1625_v60 }
 0x385   :  { %v1595_v20 = vadd.f32 %v1594_v18, %v1593_v39 }
 0x386   :  { %v1628_v41 = vrot.slane %v1627_v33, 1 }
 0x387   :  { %v1596_v56 = vrot.slane %v1595_v20, 2 }
 0x388   :  { %v1629_v43 = vadd.f32 %v1628_v41, %v1627_v33 }
 0x389   :  { %v1597_v24 = vadd.f32 %v1596_v56, %v1595_v20 }
 0x38a   :  { %v1638_v40 = vmul.f32 %v6288_v38, %v1629_v43 }
 0x38b   :  { %v1598_v19 = vrot.slane %v1597_v24, 1 }
 0x38d   :  { %v1599_v7 = vadd.f32 %v1598_v19, %v1597_v24 }
 0x38f   :  { %v1637_v49 = vmul.f32 %v6288_v38, %v1599_v7 }
 0x391   :  { %1658 = vmatmul.f32.vlgmr.msrb.gmra.mxu1 %v1637_v49 }
 0x392   :  { %1701 = vmatpush.msrb.mxu1 %v1581_v13 }
 0x399   :  { %4259 = vmatmul.msk.f32.vlgmr.msra.gmra.mxu1 %vm1600_vm3, %v1638_v40 }
 0x39a   :  { %1721 = vmatpush.msra.mxu1 %v6293_v45 }
 0x40e   :  { %v1659_v54 = vpop.f32.mrf.mxu1 }
 0x416   :  { %v1679_v25 = vpop.f32.mrf.mxu1 }
 0x417   :  { %v1680_v50 = vadd.f32 %v1679_v25, %v1659_v54 }
 0x419   :  { %4260 = vmatmul.msk.f32.vlgmr.msrb.gmra.mxu1 %vm1682_vm5, %v1680_v50 }
 0x41a   :  { %1827 = vmatpush.msrb.mxu1 %v6685_v10 }
 0x41c   :  { %1828 = vmatpush.msrb.mxu1 %v6686_v26 }
 0x41e   :  { %1829 = vmatpush.msrb.mxu1 %v6687_v44 }
 0x420   :  { %1830 = vmatpush.msrb.mxu1 %v6688_v47 }
 0x421   :  { %4261 = vmatmul.msk.f32.vlgmr.msra.gmra.mxu1 %vm1682_vm5, %v1680_v50 }
 0x422   :  { %1831 = vmatpush.msrb.mxu1 %v6689_v62 }
 0x424   :  { %1832 = vmatpush.msrb.mxu1 %v6690_v32 }
 0x426   :  { %1833 = vmatpush.msrb.mxu1 %v6691_v2 }
 0x428   :  { %1834 = vmatpush.msrb.mxu1 %v6692_v23 }
 0x42a   :  { %1835 = vmatpush.msrb.mxu1 %v6693_v8 }
 0x42c   :  { %1836 = vmatpush.msrb.mxu1 %v6101_v51 }
 0x42e   :  { %1837 = vmatpush.msrb.mxu1 %v6113_v1 }
 0x430   :  { %1838 = vmatpush.msrb.mxu1 %v6125_v21 }
 0x432   :  { %1839 = vmatpush.msrb.mxu1 %v6136_v61 }
 0x434   :  { %1840 = vmatpush.msrb.mxu1 %v6150_v42 }
 0x436   :  { %1841 = vmatpush.msrb.mxu1 %v6168_v16 }
 0x438   :  { %1842 = vmatpush.msrb.mxu1 %v6183_v22 }
 0x43a   :  { %1885 = vmatpush.msra.mxu1 %v1581_v13 }
 0x496   :  { %v1703_v37 = vpop.f32.mrf.mxu1 }
 0x497   :  { %v1726_v39 = vperm.slane %v1703_v37, 0 }
 0x499   :  { %v6315_v59 = vsub.f32 %v6038_v31, %v1726_v39  ;;  %v6318_v51 = vsub.f32 %v6187_v35, %v1726_v39  ;;  %v6321_v1 = vsub.f32 %v6200_v14, %v1726_v39  ;;  %v6328_v42 = vsub.f32 %v6212_v57, %v1726_v39 }
 0x49a   :  { %v6333_v31 = vsub.f32 %v6224_v12, %v1726_v39  ;;  %v6338_v60 = vsub.f32 %v6233_v48, %v1726_v39  ;;  %v6355_v15 = vsub.f32 %v6246_v52, %v1726_v39  ;;  %v6379_v19 = vsub.f32 %v6266_v30, %v1726_v39 }
 0x49b   :  { %v1752_v21 = vmul.f32 %v6315_v59, %v6315_v59  ;;  %v1754_v61 = vmul.f32 %v6318_v51, %v6318_v51  ;;  %v1756_v35 = vmul.f32 %v6321_v1, %v6321_v1  ;;  %v1758_v18 = vmul.f32 %v6328_v42, %v6328_v42 }
 0x49c   :  { %v1760_v48 = vmul.f32 %v6333_v31, %v6333_v31  ;;  %v1762_v52 = vmul.f32 %v6338_v60, %v6338_v60  ;;  %v1764_v7 = vmul.f32 %v6355_v15, %v6355_v15  ;;  %v6392_v40 = vsub.f32 %v6271_v63, %v1726_v39 }
 0x49d   :  { %v1776_v14 = vadd.f32 %v1754_v61, %v1752_v21  ;;  %v6404_v10 = vsub.f32 %v6278_v29, %v1726_v39  ;;  %v1768_v63 = vmul.f32 %v6379_v19, %v6379_v19  ;;  %v6416_v32 = vsub.f32 %v6285_v11, %v1726_v39 }
 0x49e   :  { %v1723_v16 = vpop.f32.mrf.mxu1  ;;  %v1770_v29 = vmul.f32 %v6392_v40, %v6392_v40 }
 0x49f   :  { %v6330_v22 = vperm.slane %v1723_v16, 0  ;;  %v1777_v20 = vadd.f32 %v1776_v14, %v1756_v35  ;;  %v1772_v21 = vmul.f32 %v6404_v10, %v6404_v10  ;;  %v1774_v35 = vmul.f32 %v6416_v32, %v6416_v32 }
 0x4a1   :  { %v6344_v57 = vsub.f32 %v6034_v27, %v6330_v22  ;;  %v6348_v6 = vsub.f32 %v6131_v55, %v6330_v22  ;;  %v6352_v12 = vsub.f32 %v6142_v58, %v6330_v22  ;;  %v1778_v56 = vadd.f32 %v1777_v20, %v1758_v18 }
 0x4a2   :  { %v6361_v24 = vsub.f32 %v6157_v4, %v6330_v22  ;;  %v6368_v58 = vsub.f32 %v6255_v28, %v1726_v39  ;;  %v6374_v33 = vsub.f32 %v6176_v34, %v6330_v22  ;;  %v6385_v28 = vsub.f32 %v6192_v53, %v6330_v22 }
 0x4a3   :  { %v1753_v27 = vmul.f32 %v6344_v57, %v6344_v57  ;;  %v1755_v55 = vmul.f32 %v6348_v6, %v6348_v6  ;;  %v1779_v0 = vadd.f32 %v1778_v56, %v1760_v48  ;;  %v1757_v4 = vmul.f32 %v6352_v12, %v6352_v12 }
 0x4a4   :  { %v1759_v49 = vmul.f32 %v6361_v24, %v6361_v24  ;;  %v1766_v30 = vmul.f32 %v6368_v58, %v6368_v58  ;;  %v6398_v25 = vsub.f32 %v6205_v17, %v6330_v22  ;;  %v1761_v53 = vmul.f32 %v6374_v33, %v6374_v33 }
 0x4a5   :  { %v1780_v41 = vadd.f32 %v1779_v0, %v1762_v52  ;;  %v1793_v34 = vsel %vm1600_vm3, %v1753_v27, 0.0  ;;  %v1794_v43 = vsel %vm1600_vm3, %v1755_v55, 0.0  ;;  %v1796_v50 = vsel %vm1600_vm3, %v1757_v4, 0.0 }
 0x4a6   :  { %v1795_v54 = vadd.f32 %v1794_v43, %v1793_v34  ;;  %v6410_v47 = vsub.f32 %v6217_v5, %v6330_v22  ;;  %v1763_v17 = vmul.f32 %v6385_v28, %v6385_v28  ;;  %v1798_v62 = vsel %vm1600_vm3, %v1759_v49, 0.0 }
 0x4a7   :  { %v1781_v13 = vadd.f32 %v1780_v41, %v1764_v7  ;;  %v6422_v8 = vsub.f32 %v6229_v36, %v6330_v22  ;;  %v1765_v5 = vmul.f32 %v6398_v25, %v6398_v25  ;;  %v1800_v37 = vsel %vm1600_vm3, %v1761_v53, 0.0 }
 0x4a8   :  { %v1797_v44 = vadd.f32 %v1796_v50, %v1795_v54  ;;  %v6431_v39 = vsub.f32 %v6237_v9, %v6330_v22  ;;  %v1767_v16 = vmul.f32 %v6410_v47, %v6410_v47  ;;  %v1802_v36 = vsel %vm1600_vm3, %v1763_v17, 0.0 }
 0x4a9   :  { %v1782_v26 = vadd.f32 %v1781_v13, %v1766_v30  ;;  %v6440_v20 = vsub.f32 %v6250_v3, %v6330_v22  ;;  %v1769_v48 = vmul.f32 %v6422_v8, %v6422_v8  ;;  %v1804_v9 = vsel %vm1600_vm3, %v1765_v5, 0.0 }
 0x4aa   :  { %v1799_v23 = vadd.f32 %v1798_v62, %v1797_v44  ;;  %v6447_v55 = vsub.f32 %v6273_v46, %v6330_v22  ;;  %v1771_v52 = vmul.f32 %v6431_v39, %v6431_v39  ;;  %v1806_v0 = vsel %vm1600_vm3, %v1767_v16, 0.0 }
 0x4ab   :  { %v1783_v2 = vadd.f32 %v1782_v26, %v1768_v63  ;;  %v1773_v3 = vmul.f32 %v6440_v20, %v6440_v20  ;;  %v1808_v41 = vsel %vm1600_vm3, %v1769_v48, 0.0 }
 0x4ac   :  { %v1801_v11 = vadd.f32 %v1800_v37, %v1799_v23  ;;  %v1775_v43 = vmul.f32 %v6447_v55, %v6447_v55  ;;  %v1810_v46 = vsel %vm1600_vm3, %v1771_v52, 0.0 }
 0x4ad   :  { %v1784_v61 = vadd.f32 %v1783_v2, %v1770_v29  ;;  %v1812_v13 = vsel %vm1600_vm3, %v1773_v3, 0.0 }
 0x4ae   :  { %v1803_v18 = vadd.f32 %v1802_v36, %v1801_v11  ;;  %v1814_v50 = vsel %vm1600_vm3, %v1775_v43, 0.0 }
 0x4af   :  { %v1785_v14 = vadd.f32 %v1784_v61, %v1772_v21 }
 0x4b0   :  { %v1805_v27 = vadd.f32 %v1804_v9, %v1803_v18 }
 0x4b1   :  { %v1786_v56 = vadd.f32 %v1785_v14, %v1774_v35 }
 0x4b2   :  { %v1807_v7 = vadd.f32 %v1806_v0, %v1805_v27 }
 0x4b3   :  { %v1787_v4 = vrot.slane %v1786_v56, 4 }
 0x4b4   :  { %v1809_v34 = vadd.f32 %v1808_v41, %v1807_v7 }
 0x4b5   :  { %v1788_v49 = vadd.f32 %v1787_v4, %v1786_v56 }
 0x4b6   :  { %v1811_v30 = vadd.f32 %v1810_v46, %v1809_v34 }
 0x4b7   :  { %v1789_v22 = vrot.slane %v1788_v49, 2 }
 0x4b8   :  { %v1813_v53 = vadd.f32 %v1812_v13, %v1811_v30 }
 0x4b9   :  { %v1790_v54 = vadd.f32 %v1789_v22, %v1788_v49 }
 0x4ba   :  { %v1815_v26 = vadd.f32 %v1814_v50, %v1813_v53 }
 0x4bb   :  { %v1791_v63 = vrot.slane %v1790_v54, 1 }
 0x4bc   :  { %v1816_v17 = vrot.slane %v1815_v26, 4 }
 0x4bd   :  { %v1792_v44 = vadd.f32 %v1791_v63, %v1790_v54 }
 0x4be   :  { %v1817_v29 = vadd.f32 %v1816_v17, %v1815_v26 }
 0x4bf   :  { %v1822_v62 = vmul.f32 %v1792_v44, %v6288_v38 }
 0x4c0   :  { %v1818_v2 = vrot.slane %v1817_v29, 2 }
 0x4c1   :  { %1843 = vmatmul.f32.vlgmr.msrb.gmra.mxu1 %v1822_v62 }
 0x4c2   :  { %1905 = vmatpush.msrb.mxu1 %v6293_v45  ;;  %v1819_v23 = vadd.f32 %v1818_v2, %v1817_v29 }
 0x4c4   :  { %v1820_v5 = vrot.slane %v1819_v23, 1 }
 0x4c6   :  { %v1821_v37 = vadd.f32 %v1820_v5, %v1819_v23 }
 0x4c8   :  { %v1823_v21 = vmul.f32 %v1821_v37, %v6288_v38 }
 0x4ca   :  { %4262 = vmatmul.msk.f32.vlgmr.msra.gmra.mxu2 %vm1600_vm3, %v1823_v21 }
 0x53e   :  { %v1844_v61 = vpop.f32.mrf.mxu1 }
 0x54d   :  { %v1864_v11 = vpop.f32.mrf.mxu2 }
 0x54e   :  { %v1865_v16 = vadd.f32 %v1864_v11, %v1844_v61 }
 0x550   :  { %4263 = vmatmul.msk.f32.vlgmr.msra.gmra.mxu1 %vm1682_vm5, %v1865_v16 }
 0x558   :  { %4264 = vmatmul.msk.f32.vlgmr.msrb.gmra.mxu1 %vm1682_vm5, %v1865_v16  ;;  %vm3713_vm5 = vcmask 1043456  }
 0x5cd   :  { %v1887_v36 = vpop.f32.mrf.mxu1 }
 0x5ce   :  { %v1888_v35 = vadd.f32 1e-05, %v1887_v36 }
 0x5d0   :  { %4998 = vrsqrt.f32 %v1888_v35  ;;  %vm1916_vm7 = vweird.f32 %v1888_v35 }
 0x5d5   :  { %v1907_v14 = vpop.f32.mrf.mxu1 }
 0x5d6   :  { %v4999_v18 = vpop.eup %4998  ;;  %v1908_v45 = vadd.f32 1e-05, %v1907_v14 }
 0x5d7   :  { %v1911_v48 = vmul.f32 %v4999_v18, %v1888_v35  ;;  %vm1917_vm6 = vweird.f32 %v4999_v18 }
 0x5d8   :  { %5000 = vrsqrt.f32 %v1908_v45  ;;  %vm1918_vm8 = vmor %vm1916_vm7, %vm1917_vm6  ;;  %vm1926_vm10 = vweird.f32 %v1908_v45 }
 0x5d9   :  { %v1912_v9 = vmul.f32 %v4999_v18, %v1911_v48 }
 0x5db   :  { %v1913_v56 = vmul.f32 0.5, %v1912_v9 }
 0x5dd   :  { %v1914_v38 = vsub.f32 1.5, %v1913_v56 }
 0x5de   :  { %v5001_v27 = vpop.eup %5000 }
 0x5df   :  { %v1915_v52 = vmul.f32 %v4999_v18, %v1914_v38  ;;  %v1921_v0 = vmul.f32 %v5001_v27, %v1908_v45  ;;  %vm1927_vm9 = vweird.f32 %v5001_v27 }
 0x5e0   :  { %vm1928_vm11 = vmor %vm1926_vm10, %vm1927_vm9 }
 0x5e1   :  { %v1919_v4 = vsel %vm1918_vm8, %v4999_v18, %v1915_v52  ;;  %v1922_v7 = vmul.f32 %v5001_v27, %v1921_v0 }
 0x5e2   :  { %v1930_v3 = vperm.slane %v1919_v4, 0 }
 0x5e3   :  { %v1923_v41 = vmul.f32 0.5, %v1922_v7 }
 0x5e4   :  { %v1952_v49 = vmul.f32 %v1930_v3, %v6404_v10  ;;  %v1954_v34 = vmul.f32 %v1930_v3, %v6416_v32  ;;  %v1948_v43 = vmul.f32 %v1930_v3, %v6379_v19  ;;  %v1950_v46 = vmul.f32 %v1930_v3, %v6392_v40 }
 0x5e5   :  { %v1924_v22 = vsub.f32 1.5, %v1923_v41  ;;  %v1944_v54 = vmul.f32 %v1930_v3, %v6355_v15  ;;  %v1946_v26 = vmul.f32 %v1930_v3, %v6368_v58  ;;  %v1940_v19 = vmul.f32 %v1930_v3, %v6333_v31 }
 0x5e6   :  { %v1976_v30 = vmax.f32 %v1952_v49, 0.0  ;;  %v1978_v13 = vmax.f32 %v1954_v34, 0.0  ;;  %v1972_v50 = vmax.f32 %v1948_v43, 0.0  ;;  %v1974_v63 = vmax.f32 %v1950_v46, 0.0  ;;  %v4848_v49 = vld [vmem:[#allocation11] sm:$0xff] }
 0x5e7   :  { %v1925_v53 = vmul.f32 %v5001_v27, %v1924_v22  ;;  %v1968_v17 = vmax.f32 %v1944_v54, 0.0  ;;  %v1970_v62 = vmax.f32 %v1946_v26, 0.0  ;;  %v1942_v29 = vmul.f32 %v1930_v3, %v6338_v60  ;;  %v4872_v22 = vld [vmem:[#allocation13 + $0x90] sm:$0xff]  ;;  %v4870_v26 = vld [vmem:[#allocation13 + $0x80] sm:$0xff] }
 0x5e8   :  { %v2003_v10 = vpack.c.bf16 %v1978_v13, %v1976_v30  ;;  %v2001_v40 = vpack.c.bf16 %v1974_v63, %v1972_v50  ;;  %v1964_v21 = vmax.f32 %v1940_v19, 0.0  ;;  %v1936_v31 = vmul.f32 %v1930_v3, %v6321_v1  ;;  %v4849_v30 = vld [vmem:[#allocation11 + $0x8] sm:$0xff]  ;;  %v4852_v54 = vld [vmem:[#allocation11 + $0x20] sm:$0xff]  ;;  %v4871_v50 = vld [vmem:[#allocation13 + $0x88] sm:$0xff] }
 0x5e9   :  { %v1929_v44 = vsel %vm1928_vm11, %v5001_v27, %v1925_v53  ;;  %v1999_v61 = vpack.c.bf16 %v1970_v62, %v1968_v17  ;;  %v1966_v11 = vmax.f32 %v1942_v29, 0.0  ;;  %v1938_v16 = vmul.f32 %v1930_v3, %v6328_v42  ;;  %v4877_v13 = vld [vmem:[#allocation13 + $0xb8] sm:$0xff]  ;;  %v4860_v53 = vld [vmem:[#allocation13 + $0x30] sm:$0xff]  ;;  %v4859_v63 = vld [vmem:[#allocation13 + $0x28] sm:$0xff] }
 0x5ea   :  { %v1931_v32 = vperm.slane %v1929_v44, 0  ;;  %2032 = vmatpush.bf16.msra.mxu0 %v2003_v10  ;;  %2104 = vmatpush.bf16.msrb.mxu2 %v2003_v10  ;;  %v1932_v35 = vmul.f32 %v1930_v3, %v6315_v59  ;;  %v1934_v45 = vmul.f32 %v1930_v3, %v6318_v51  ;;  %v4869_v10 = vld [vmem:[#allocation13 + $0x78] sm:$0xff]  ;;  %v4850_v44 = vld [vmem:[#allocation11 + $0x10] sm:$0xff]  ;;  %v4868_v17 = vld [vmem:[#allocation13 + $0x70] sm:$0xff] }
 0x5eb   :  { %v1997_v14 = vpack.c.bf16 %v1966_v11, %v1964_v21  ;;  %v1962_v1 = vmax.f32 %v1938_v16, 0.0  ;;  %v4858_v19 = vld [vmem:[#allocation13 + $0x20] sm:$0xff]  ;;  %v4856_v62 = vld [vmem:[#allocation13 + $0x10] sm:$0xff] }
 0x5ec   :  { %v1953_v15 = vmul.f32 %v1931_v32, %v6440_v20  ;;  %v1955_v2 = vmul.f32 %v1931_v32, %v6447_v55  ;;  %v1949_v23 = vmul.f32 %v1931_v32, %v6422_v8  ;;  %v1951_v58 = vmul.f32 %v1931_v32, %v6431_v39  ;;  %v4876_v29 = vld [vmem:[#allocation13 + $0xb0] sm:$0xff]  ;;  %v4854_v21 = vld [vmem:[#allocation13] sm:$0xff] }
 0x5ed   :  { %v1945_v60 = vmul.f32 %v1931_v32, %v6398_v25  ;;  %v1947_v8 = vmul.f32 %v1931_v32, %v6410_v47  ;;  %v1960_v39 = vmax.f32 %v1936_v31, 0.0  ;;  %v1941_v25 = vmul.f32 %v1931_v32, %v6374_v33  ;;  %v4874_v31 = vld [vmem:[#allocation13 + $0xa0] sm:$0xff] }
 0x5ee   :  { %2033 = vmatpush.bf16.msra.mxu0 %v2001_v40  ;;  %2105 = vmatpush.bf16.msrb.mxu2 %v2001_v40  ;;  %v1977_v5 = vmax.f32 %v1953_v15, 0.0  ;;  %v1979_v37 = vmax.f32 %v1955_v2, 0.0  ;;  %v1973_v36 = vmax.f32 %v1949_v23, 0.0  ;;  %v1975_v55 = vmax.f32 %v1951_v58, 0.0  ;;  %v4857_v40 = vld [vmem:[#allocation13 + $0x18] sm:$0xff]  ;;  %v4867_v2 = vld [vmem:[#allocation13 + $0x68] sm:$0xff] }
 0x5ef   :  { %v1969_v18 = vmax.f32 %v1945_v60, 0.0  ;;  %v1971_v48 = vmax.f32 %v1947_v8, 0.0  ;;  %v1943_v9 = vmul.f32 %v1931_v32, %v6385_v28  ;;  %v1995_v47 = vpack.c.bf16 %v1962_v1, %v1960_v39  ;;  %v4865_v15 = vld [vmem:[#allocation13 + $0x58] sm:$0xff]  ;;  %v4875_v23 = vld [vmem:[#allocation13 + $0xa8] sm:$0xff]  ;;  %v4862_v11 = vld [vmem:[#allocation13 + $0x40] sm:$0xff] }
 0x5f0   :  { %v2004_v20 = vpack.c.bf16 %v1979_v37, %v1977_v5  ;;  %v2002_v42 = vpack.c.bf16 %v1975_v55, %v1973_v36  ;;  %v1956_v56 = vmax.f32 %v1932_v35, 0.0  ;;  %v1958_v59 = vmax.f32 %v1934_v45, 0.0  ;;  %v4855_v58 = vld [vmem:[#allocation13 + $0x8] sm:$0xff]  ;;  %v4864_v5 = vld [vmem:[#allocation13 + $0x50] sm:$0xff]  ;;  %v4866_v37 = vld [vmem:[#allocation13 + $0x60] sm:$0xff] }
 0x5f1   :  { %v1937_v38 = vmul.f32 %v1931_v32, %v6352_v12  ;;  %v2000_v27 = vpack.c.bf16 %v1971_v48, %v1969_v18  ;;  %v1965_v52 = vmax.f32 %v1941_v25, 0.0  ;;  %v1967_v0 = vmax.f32 %v1943_v9, 0.0  ;;  %v4851_v12 = vld [vmem:[#allocation11 + $0x18] sm:$0xff] }
 0x5f2   :  { %2034 = vmatpush.bf16.msra.mxu0 %v1999_v61  ;;  %2056 = vmatpush.bf16.msra.mxu1 %v2004_v20  ;;  %v1939_v51 = vmul.f32 %v1931_v32, %v6361_v24  ;;  %v1993_v33 = vpack.c.bf16 %v1958_v59, %v1956_v56  ;;  %v1933_v3 = vmul.f32 %v1931_v32, %v6344_v57  ;;  %v4873_v57 = vld [vmem:[#allocation13 + $0x98] sm:$0xff] }
 0x5f3   :  { %2106 = vmatpush.bf16.msrb.mxu2 %v1999_v61  ;;  %2128 = vmatpush.bf16.msra.mxu3 %v2004_v20  ;;  %v1961_v28 = vmax.f32 %v1937_v38, 0.0  ;;  %v1998_v4 = vpack.c.bf16 %v1967_v0, %v1965_v52  ;;  %v1935_v41 = vmul.f32 %v1931_v32, %v6348_v6  ;;  %v4861_v6 = vld [vmem:[#allocation13 + $0x38] sm:$0xff]  ;;  %v4863_v61 = vld [vmem:[#allocation13 + $0x48] sm:$0xff] }
 0x5f4   :  { %v1963_v7 = vmax.f32 %v1939_v51, 0.0  ;;  %v1957_v34 = vmax.f32 %v1933_v3, 0.0  ;;  %v4853_v32 = vld [vmem:[#allocation11 + $0x28] sm:$0xff] }
 0x5f5   :  { %v1959_v43 = vmax.f32 %v1935_v41, 0.0 }
 0x5f6   :  { %2035 = vmatpush.bf16.msra.mxu0 %v1997_v14  ;;  %2057 = vmatpush.bf16.msra.mxu1 %v2002_v42  ;;  %v1996_v24 = vpack.c.bf16 %v1963_v7, %v1961_v28 }
 0x5f7   :  { %2107 = vmatpush.bf16.msrb.mxu2 %v1997_v14  ;;  %2129 = vmatpush.bf16.msra.mxu3 %v2002_v42  ;;  %v1994_v46 = vpack.c.bf16 %v1959_v43, %v1957_v34 }
 0x5fa   :  { %2036 = vmatpush.bf16.msra.mxu0 %v1995_v47  ;;  %2058 = vmatpush.bf16.msra.mxu1 %v2000_v27 }
 0x5fb   :  { %2108 = vmatpush.bf16.msrb.mxu2 %v1995_v47  ;;  %2130 = vmatpush.bf16.msra.mxu3 %v2000_v27 }
 0x5fe   :  { %2037 = vmatpush.bf16.msra.mxu0 %v1993_v33  ;;  %2059 = vmatpush.bf16.msra.mxu1 %v1998_v4 }
 0x5ff   :  { %2109 = vmatpush.bf16.msrb.mxu2 %v1993_v33  ;;  %2131 = vmatpush.bf16.msra.mxu3 %v1998_v4 }
 0x601   :  { %4277 = vmatmul.msk.bf16.vlgmr.msra.gmra.mxu0 %vm2020_vm12, %v4848_v49 }
 0x602   :  { %2060 = vmatpush.bf16.msra.mxu1 %v1996_v24  ;;  %4295 = vmatmul.msk.bf16.vlgmr.msrb.gmra.mxu2 %vm2020_vm12, %v4851_v12 }
 0x603   :  { %2132 = vmatpush.bf16.msra.mxu3 %v1996_v24  ;;  %2418 = vmatpush.bf16.msra.mxu2 %v4873_v57 }
 0x604   :  { %2298 = vmatpush.bf16.msrb.mxu0 %v4861_v6 }
 0x606   :  { %2061 = vmatpush.bf16.msra.mxu1 %v1994_v46 }
 0x607   :  { %2133 = vmatpush.bf16.msra.mxu3 %v1994_v46  ;;  %2419 = vmatpush.bf16.msra.mxu2 %v4872_v22 }
 0x608   :  { %2299 = vmatpush.bf16.msrb.mxu0 %v4860_v53 }
 0x609   :  { %4280 = vmatmul.msk.bf16.vlgmr.msra.gmra.mxu1 %vm2020_vm12, %v4848_v49 }
 0x60a   :  { %4298 = vmatmul.msk.bf16.vlgmr.msra.gmra.mxu3 %vm2020_vm12, %v4851_v12  ;;  %2326 = vmatpush.bf16.msrb.mxu1 %v4865_v15 }
 0x60b   :  { %2446 = vmatpush.bf16.msrb.mxu3 %v4877_v13  ;;  %2420 = vmatpush.bf16.msra.mxu2 %v4871_v50 }
 0x60c   :  { %2300 = vmatpush.bf16.msrb.mxu0 %v4859_v63 }
 0x60e   :  { %2327 = vmatpush.bf16.msrb.mxu1 %v4864_v5  ;;  %v4888_v5 = vld [vmem:[#allocation16 + $0x30] sm:$0xff] }
 0x60f   :  { %2421 = vmatpush.bf16.msra.mxu2 %v4870_v26  ;;  %2447 = vmatpush.bf16.msrb.mxu3 %v4876_v29  ;;  %v4893_v26 = vld [vmem:[#allocation16 + $0x58] sm:$0xff] }
 0x610   :  { %2301 = vmatpush.bf16.msrb.mxu0 %v4858_v19 }
 0x611   :  { %4278 = vmatmul.msk.bf16.gmra.mxu0 %vm2020_vm12, %v4849_v30 }
 0x612   :  { %4296 = vmatmul.msk.bf16.gmra.mxu2 %vm2020_vm12, %v4852_v54  ;;  %2328 = vmatpush.bf16.msrb.mxu1 %v4863_v61 }
 0x613   :  { %2422 = vmatpush.bf16.msra.mxu2 %v4869_v10  ;;  %2448 = vmatpush.bf16.msrb.mxu3 %v4875_v23 }
 0x614   :  { %2302 = vmatpush.bf16.msrb.mxu0 %v4857_v40 }
 0x616   :  { %2329 = vmatpush.bf16.msrb.mxu1 %v4862_v11 }
 0x617   :  { %2423 = vmatpush.bf16.msra.mxu2 %v4868_v17  ;;  %2449 = vmatpush.bf16.msrb.mxu3 %v4874_v31  ;;  %v4891_v17 = vld [vmem:[#allocation16 + $0x48] sm:$0xff] }
 0x618   :  { %2303 = vmatpush.bf16.msrb.mxu0 %v4856_v62  ;;  %v4890_v62 = vld [vmem:[#allocation16 + $0x40] sm:$0xff] }
 0x619   :  { %4281 = vmatmul.msk.bf16.gmra.mxu1 %vm2020_vm12, %v4849_v30 }
 0x61a   :  { %4299 = vmatmul.msk.bf16.gmra.mxu3 %vm2020_vm12, %v4852_v54 }
 0x61b   :  { %2424 = vmatpush.bf16.msra.mxu2 %v4867_v2 }
 0x61c   :  { %2304 = vmatpush.bf16.msrb.mxu0 %v4855_v58  ;;  %v4889_v58 = vld [vmem:[#allocation16 + $0x38] sm:$0xff] }
 0x61f   :  { %2425 = vmatpush.bf16.msra.mxu2 %v4866_v37 }
 0x620   :  { %2305 = vmatpush.bf16.msrb.mxu0 %v4854_v21 }
 0x621   :  { %4279 = vmatmul.msk.bf16.gmra.mxu0 %vm2020_vm12, %v4850_v44 }
 0x622   :  { %4297 = vmatmul.msk.bf16.gmra.mxu2 %vm2020_vm12, %v4853_v32 }
 0x623   :  { %2628 = vmatpush.bf16.msrb.mxu2 %v4893_v26  ;;  %v4898_v26 = vld [vmem:[#allocation16 + $0x70] sm:$0xff] }
 0x629   :  { %4282 = vmatmul.msk.bf16.gmra.mxu1 %vm2020_vm12, %v4850_v44  ;;  %v4892_v44 = vld [vmem:[#allocation16 + $0x50] sm:$0xff] }
 0x62a   :  { %4300 = vmatmul.msk.bf16.gmra.mxu3 %vm2020_vm12, %v4853_v32  ;;  %2629 = vmatpush.bf16.msrb.mxu2 %v4892_v44 }
 0x62e   :  { %2630 = vmatpush.bf16.msrb.mxu2 %v4891_v17  ;;  %v4896_v17 = vld [vmem:[#allocation16 + $0x60] sm:$0xff] }
 0x632   :  { %2631 = vmatpush.bf16.msrb.mxu2 %v4890_v62 }
 0x636   :  { %2632 = vmatpush.bf16.msrb.mxu2 %v4889_v58 }
 0x63a   :  { %2633 = vmatpush.bf16.msrb.mxu2 %v4888_v5  ;;  %v4910_v5 = vld [vmem:[#allocation14 + $0x40] sm:$0xff] }
 0x67e   :  { %v2039_v16 = vpop.f32.mrf.mxu0 }
 0x685   :  { %v2111_v60 = vpop.f32.mrf.mxu2 }
 0x686   :  { %v2063_v20 = vpop.f32.mrf.mxu1  ;;  %v2041_v36 = vpop.f32.mrf.mxu0  ;;  %v2150_v55 = vmax.f32 %v2039_v16, %v2111_v60 }
 0x68d   :  { %v2135_v8 = vpop.f32.mrf.mxu3  ;;  %v2113_v39 = vpop.f32.mrf.mxu2 }
 0x68e   :  { %v2065_v35 = vpop.f32.mrf.mxu1  ;;  %v2152_v14 = vmax.f32 %v2041_v36, %v2113_v39  ;;  %v2044_v1 = vpop.f32.mrf.mxu0  ;;  %v2151_v48 = vmax.f32 %v2063_v20, %v2135_v8 }
 0x690   :  { %v2211_v18 = vpack.c.bf16 %v2152_v14, %v2150_v55 }
 0x692   :  { %2426 = vmatmul.bf16.vlgmr.msra.gmra.mxu2 %v2211_v18  ;;  %2306 = vmatmul.bf16.vlgmr.msrb.gmra.mxu0 %v2211_v18 }
 0x695   :  { %v2137_v45 = vpop.f32.mrf.mxu3  ;;  %v2116_v42 = vpop.f32.mrf.mxu2 }
 0x696   :  { %v2153_v25 = vmax.f32 %v2065_v35, %v2137_v45  ;;  %v2068_v9 = vpop.f32.mrf.mxu1  ;;  %v2046_v47 = vpop.f32.mrf.mxu0  ;;  %v2154_v59 = vmax.f32 %v2044_v1, %v2116_v42 }
 0x698   :  { %v2212_v56 = vpack.c.bf16 %v2153_v25, %v2151_v48 }
 0x69a   :  { %4400 = vmatmul.msk.bf16.vlgmr.msrb.gmra.mxu3 %vm1600_vm3, %v2212_v56  ;;  %4349 = vmatmul.msk.bf16.vlgmr.msrb.gmra.mxu1 %vm1600_vm3, %v2212_v56 }
 0x69d   :  { %v2140_v38 = vpop.f32.mrf.mxu3  ;;  %v2118_v27 = vpop.f32.mrf.mxu2 }
 0x69e   :  { %v2156_v52 = vmax.f32 %v2046_v47, %v2118_v27  ;;  %v2070_v51 = vpop.f32.mrf.mxu1  ;;  %v2049_v33 = vpop.f32.mrf.mxu0  ;;  %v2155_v7 = vmax.f32 %v2068_v9, %v2140_v38 }
 0x6a0   :  { %v2213_v0 = vpack.c.bf16 %v2156_v52, %v2154_v59 }
 0x6a2   :  { %2431 = vmatmul.bf16.gmra.mxu2 %v2213_v0  ;;  %2311 = vmatmul.bf16.gmra.mxu0 %v2213_v0 }
 0x6a5   :  { %v2142_v28 = vpop.f32.mrf.mxu3  ;;  %v2121_v4 = vpop.f32.mrf.mxu2 }
 0x6a6   :  { %v2157_v3 = vmax.f32 %v2070_v51, %v2142_v28  ;;  %v2073_v49 = vpop.f32.mrf.mxu1  ;;  %v2051_v12 = vpop.f32.mrf.mxu0  ;;  %v2158_v24 = vmax.f32 %v2049_v33, %v2121_v4 }
 0x6a8   :  { %v2214_v41 = vpack.c.bf16 %v2157_v3, %v2155_v7 }
 0x6aa   :  { %4401 = vmatmul.msk.bf16.gmra.mxu3 %vm1600_vm3, %v2214_v41  ;;  %4350 = vmatmul.msk.bf16.gmra.mxu1 %vm1600_vm3, %v2214_v41  ;;  %v4886_v41 = vld [vmem:[#allocation14 + $0x10] sm:$0xff] }
 0x6ad   :  { %v2145_v34 = vpop.f32.mrf.mxu3  ;;  %v2123_v43 = vpop.f32.mrf.mxu2 }
 0x6ae   :  { %v2160_v46 = vmax.f32 %v2051_v12, %v2123_v43  ;;  %v2075_v6 = vpop.f32.mrf.mxu1  ;;  %v2159_v30 = vmax.f32 %v2073_v49, %v2145_v34  ;;  %v4878_v49 = vld [vmem:[#allocation14] sm:$0xff]  ;;  %v4887_v12 = vld [vmem:[#allocation14 + $0x18] sm:$0xff] }
 0x6af   :  { %v4894_v34 = vld [vmem:[#allocation14 + $0x20] sm:$0xff]  ;;  %v4885_v43 = vld [vmem:[#allocation16 + $0x28] sm:$0xff] }
 0x6b0   :  { %v2215_v57 = vpack.c.bf16 %v2160_v46, %v2158_v24  ;;  %v4879_v24 = vld [vmem:[#allocation14 + $0x8] sm:$0xff]  ;;  %2689 = vmatpush.bf16.msra.mxu3 %v4885_v43  ;;  %v4884_v46 = vld [vmem:[#allocation16 + $0x20] sm:$0xff] }
 0x6b2   :  { %2436 = vmatmul.bf16.gmra.mxu2 %v2215_v57  ;;  %2316 = vmatmul.bf16.gmra.mxu0 %v2215_v57  ;;  %v4883_v57 = vld [vmem:[#allocation16 + $0x18] sm:$0xff] }
 0x6b4   :  { %2690 = vmatpush.bf16.msra.mxu3 %v4884_v46 }
 0x6b5   :  { %v2147_v22 = vpop.f32.mrf.mxu3 }
 0x6b6   :  { %v2161_v13 = vmax.f32 %v2075_v6, %v2147_v22  ;;  %v4882_v6 = vld [vmem:[#allocation16 + $0x10] sm:$0xff]  ;;  %v4881_v22 = vld [vmem:[#allocation16 + $0x8] sm:$0xff] }
 0x6b8   :  { %v2216_v54 = vpack.c.bf16 %v2161_v13, %v2159_v30  ;;  %2691 = vmatpush.bf16.msra.mxu3 %v4883_v57  ;;  %v4880_v30 = vld [vmem:[#allocation16] sm:$0xff]  ;;  %v4901_v13 = vld [vmem:[#allocation16 + $0x88] sm:$0xff] }
 0x6ba   :  { %4402 = vmatmul.msk.bf16.gmra.mxu3 %vm1600_vm3, %v2216_v54  ;;  %4351 = vmatmul.msk.bf16.gmra.mxu1 %vm1600_vm3, %v2216_v54  ;;  %v4900_v54 = vld [vmem:[#allocation16 + $0x80] sm:$0xff] }
 0x6bc   :  { %2692 = vmatpush.bf16.msra.mxu3 %v4882_v6 }
 0x6c0   :  { %2693 = vmatpush.bf16.msra.mxu3 %v4881_v22  ;;  %v3081_v22 = vld [vmem:[#allocation17 + $0x78] sm:$0xff] }
 0x6c4   :  { %2694 = vmatpush.bf16.msra.mxu3 %v4880_v30 }
 0x70f   :  { %v2307_v53 = vpop.f32.mrf.mxu0 }
 0x715   :  { %v2427_v50 = vpop.f32.mrf.mxu2 }
 0x717   :  { %v2331_v63 = vpop.f32.mrf.mxu1  ;;  %v2309_v10 = vpop.f32.mrf.mxu0 }
 0x718   :  { %v2332_v33 = vadd.f32 %v2331_v63, %v2307_v53  ;;  %v4899_v63 = vld [vmem:[#allocation16 + $0x78] sm:$0xff] }
 0x71d   :  { %v2451_v32 = vpop.f32.mrf.mxu3  ;;  %v2429_v19 = vpop.f32.mrf.mxu2 }
 0x71e   :  { %v2452_v52 = vadd.f32 %v2451_v32, %v2427_v50 }
 0x71f   :  { %v2333_v40 = vpop.f32.mrf.mxu1  ;;  %v2312_v15 = vpop.f32.mrf.mxu0 }
 0x720   :  { %v2334_v0 = vadd.f32 %v2333_v40, %v2309_v10  ;;  %v2466_v7 = vmax.f32 %v2332_v33, %v2452_v52  ;;  %v4897_v40 = vld [vmem:[#allocation16 + $0x68] sm:$0xff] }
 0x725   :  { %v2453_v29 = vpop.f32.mrf.mxu3  ;;  %v2432_v23 = vpop.f32.mrf.mxu2 }
 0x726   :  { %v2454_v56 = vadd.f32 %v2453_v29, %v2429_v19 }
 0x727   :  { %v2336_v2 = vpop.f32.mrf.mxu1  ;;  %v2314_v31 = vpop.f32.mrf.mxu0 }
 0x728   :  { %v2337_v59 = vadd.f32 %v2336_v2, %v2312_v15  ;;  %v2467_v28 = vmax.f32 %v2334_v0, %v2454_v56  ;;  %v4912_v56 = vld [vmem:[#allocation16 + $0xc0] sm:$0xff] }
 0x72a   :  { %v2472_v3 = vpack.c.bf16 %v2467_v28, %v2466_v7 }
 0x72d   :  { %v2456_v37 = vpop.f32.mrf.mxu3  ;;  %v2434_v61 = vpop.f32.mrf.mxu2 }
 0x72e   :  { %v2457_v48 = vadd.f32 %v2456_v37, %v2432_v23 }
 0x72f   :  { %v2338_v21 = vpop.f32.mrf.mxu1  ;;  %v2317_v60 = vpop.f32.mrf.mxu0 }
 0x730   :  { %v2339_v25 = vadd.f32 %v2338_v21, %v2314_v31  ;;  %v2468_v51 = vmax.f32 %v2337_v59, %v2457_v48  ;;  %v4895_v21 = vld [vmem:[#allocation14 + $0x28] sm:$0xff]  ;;  %v4914_v48 = vld [vmem:[#allocation16 + $0xd0] sm:$0xff] }
 0x735   :  { %v2458_v11 = vpop.f32.mrf.mxu3  ;;  %v2437_v20 = vpop.f32.mrf.mxu2 }
 0x736   :  { %v2459_v1 = vadd.f32 %v2458_v11, %v2434_v61  ;;  %v4911_v11 = vld [vmem:[#allocation14 + $0x48] sm:$0xff] }
 0x737   :  { %v2341_v16 = vpop.f32.mrf.mxu1  ;;  %v2319_v39 = vpop.f32.mrf.mxu0 }
 0x738   :  { %v2342_v18 = vadd.f32 %v2341_v16, %v2317_v60  ;;  %v2469_v38 = vmax.f32 %v2339_v25, %v2459_v1  ;;  %v4902_v16 = vld [vmem:[#allocation14 + $0x30] sm:$0xff]  ;;  %v4903_v60 = vld [vmem:[#allocation14 + $0x38] sm:$0xff] }
 0x73a   :  { %v2473_v4 = vpack.c.bf16 %v2469_v38, %v2468_v51 }
 0x73d   :  { %v2461_v36 = vpop.f32.mrf.mxu3  ;;  %v2439_v35 = vpop.f32.mrf.mxu2 }
 0x73e   :  { %v2462_v8 = vadd.f32 %v2461_v36, %v2437_v20  ;;  %v4909_v36 = vld [vmem:[#allocation16 + $0xb8] sm:$0xff] }
 0x73f   :  { %v2343_v55 = vpop.f32.mrf.mxu1  ;;  %2925 = vmatpush.bf16.msrb.mxu3 %v4909_v36 }
 0x740   :  { %v2344_v45 = vadd.f32 %v2343_v55, %v2319_v39  ;;  %v2470_v9 = vmax.f32 %v2342_v18, %v2462_v8  ;;  %v4908_v8 = vld [vmem:[#allocation16 + $0xb0] sm:$0xff]  ;;  %v4917_v39 = vld [vmem:[#allocation16 + $0xe8] sm:$0xff]  ;;  %v4906_v18 = vld [vmem:[#allocation16 + $0xa0] sm:$0xff] }
 0x743   :  { %2926 = vmatpush.bf16.msrb.mxu3 %v4908_v8 }
 0x745   :  { %v2463_v14 = vpop.f32.mrf.mxu3 }
 0x746   :  { %v2464_v42 = vadd.f32 %v2463_v14, %v2439_v35  ;;  %v4907_v35 = vld [vmem:[#allocation16 + $0xa8] sm:$0xff]  ;;  %v4916_v14 = vld [vmem:[#allocation16 + $0xe0] sm:$0xff] }
 0x747   :  { %2927 = vmatpush.bf16.msrb.mxu3 %v4907_v35 }
 0x748   :  { %v2471_v47 = vmax.f32 %v2344_v45, %v2464_v42  ;;  %v4915_v45 = vld [vmem:[#allocation16 + $0xd8] sm:$0xff] }
 0x749   :  { %v4905_v42 = vld [vmem:[#allocation16 + $0x98] sm:$0xff] }
 0x74a   :  { %v6508_v27 = vpack.c.bf16 %v2471_v47, %v2470_v9  ;;  %v4904_v9 = vld [vmem:[#allocation16 + $0x90] sm:$0xff]  ;;  %v4913_v47 = vld [vmem:[#allocation16 + $0xc8] sm:$0xff] }
 0x74b   :  { %2928 = vmatpush.bf16.msrb.mxu3 %v4906_v18 }
 0x74c   :  { %2501 = vmatpush.bf16.msra.mxu0 %v6508_v27  ;;  %2555 = vmatpush.bf16.msra.mxu1 %v6508_v27 }
 0x74d   :  { %4968 = vmatpush.bf16.msra.mxu2 %v6508_v27 }
 0x74f   :  { %2929 = vmatpush.bf16.msrb.mxu3 %v4905_v42 }
 0x750   :  { %2502 = vmatpush.bf16.msra.mxu0 %v2473_v4  ;;  %2556 = vmatpush.bf16.msra.mxu1 %v2473_v4 }
 0x751   :  { %4969 = vmatpush.bf16.msra.mxu2 %v2473_v4 }
 0x753   :  { %2930 = vmatpush.bf16.msrb.mxu3 %v4904_v9 }
 0x754   :  { %2503 = vmatpush.bf16.msra.mxu0 %v2472_v3  ;;  %2557 = vmatpush.bf16.msra.mxu1 %v2472_v3 }
 0x755   :  { %4970 = vmatpush.bf16.msra.mxu2 %v2472_v3 }
 0x757   :  { %4421 = vmatmul.msk.bf16.vlgmr.msra.gmra.mxu1 %vm2489_vm13, %v4886_v41  ;;  %4411 = vmatmul.msk.bf16.vlgmr.msra.gmra.mxu0 %vm2489_vm13, %v4878_v49 }
 0x758   :  { %2732 = vmatpush.bf16.msrb.mxu0 %v6508_v27  ;;  %2805 = vmatpush.bf16.msrb.mxu1 %v4901_v13  ;;  %v3080_v13 = vld [vmem:[#allocation17 + $0x70] sm:$0xff] }
 0x75c   :  { %2733 = vmatpush.bf16.msrb.mxu0 %v2473_v4  ;;  %2806 = vmatpush.bf16.msrb.mxu1 %v4900_v54 }
 0x760   :  { %2734 = vmatpush.bf16.msrb.mxu0 %v2472_v3  ;;  %2807 = vmatpush.bf16.msrb.mxu1 %v4899_v63  ;;  %v3077_v63 = vld [vmem:[#allocation17 + $0x58] sm:$0xff] }
 0x764   :  { %2972 = vmatpush.bf16.msra.mxu0 %v6508_v27  ;;  %2808 = vmatpush.bf16.msrb.mxu1 %v4898_v26 }
 0x767   :  { %4422 = vmatmul.msk.bf16.gmra.mxu1 %vm2489_vm13, %v4887_v12  ;;  %4412 = vmatmul.msk.bf16.gmra.mxu0 %vm2489_vm13, %v4879_v24 }
 0x768   :  { %2973 = vmatpush.bf16.msra.mxu0 %v2473_v4  ;;  %2809 = vmatpush.bf16.msrb.mxu1 %v4897_v40  ;;  %v3074_v40 = vld [vmem:[#allocation17 + $0x40] sm:$0xff] }
 0x76c   :  { %2974 = vmatpush.bf16.msra.mxu0 %v2472_v3  ;;  %2810 = vmatpush.bf16.msrb.mxu1 %v4896_v17  ;;  %v3073_v17 = vld [vmem:[#allocation17 + $0x38] sm:$0xff] }
 0x770   :  { %3045 = vmatpush.bf16.msra.mxu1 %v4917_v39 }
 0x774   :  { %3046 = vmatpush.bf16.msra.mxu1 %v4916_v14  ;;  %v3066_v14 = vld [vmem:[#allocation17] sm:$0xff] }
 0x777   :  { %4483 = vmatmul.msk.bf16.vlgmr.msrb.gmra.mxu0 %vm2489_vm13, %v4894_v34 }
 0x778   :  { %3047 = vmatpush.bf16.msra.mxu1 %v4915_v45  ;;  %3164 = vmatpush.msrb.mxu0 %v3081_v22 }
 0x77a   :  { %3165 = vmatpush.msrb.mxu0 %v3080_v13 }
 0x77c   :  { %3048 = vmatpush.bf16.msra.mxu1 %v4914_v48 }
 0x780   :  { %3049 = vmatpush.bf16.msra.mxu1 %v4913_v47 }
 0x784   :  { %3050 = vmatpush.bf16.msra.mxu1 %v4912_v56 }
 0x787   :  { %4555 = vmatmul.msk.bf16.vlgmr.msra.gmra.mxu0 %vm2489_vm13, %v4910_v5 }
 0x797   :  { %4556 = vmatmul.msk.bf16.gmra.mxu0 %vm2489_vm13, %v4911_v11 }
 0x7d4   :  { %v2559_v53 = vpop.f32.mrf.mxu1  ;;  %v2505_v50 = vpop.f32.mrf.mxu0 }
 0x7dc   :  { %v2561_v10 = vpop.f32.mrf.mxu1  ;;  %v2507_v44 = vpop.f32.mrf.mxu0 }
 0x7dd   :  { %v2569_v32 = vpack.c.bf16 %v2561_v10, %v2559_v53  ;;  %v2515_v19 = vpack.c.bf16 %v2507_v44, %v2505_v50  ;;  %v3079_v53 = vld [vmem:[#allocation17 + $0x68] sm:$0xff]  ;;  %v3078_v50 = vld [vmem:[#allocation17 + $0x60] sm:$0xff]  ;;  %v3076_v10 = vld [vmem:[#allocation17 + $0x50] sm:$0xff] }
 0x7de   :  { %3166 = vmatpush.msrb.mxu0 %v3079_v53 }
 0x7df   :  { %4447 = vmatmul.msk.bf16.vlgmr.msrb.gmra.mxu2 %vm2020_vm12, %v2569_v32  ;;  %4473 = vmatmul.msk.bf16.vlgmr.msra.gmra.mxu3 %vm2020_vm12, %v2515_v19  ;;  %v3075_v19 = vld [vmem:[#allocation17 + $0x48] sm:$0xff] }
 0x7e0   :  { %2852 = vmatpush.bf16.msrb.mxu2 %v6508_v27  ;;  %3101 = vmatpush.msra.mxu3 %v3081_v22 }
 0x7e1   :  { %3167 = vmatpush.msrb.mxu0 %v3078_v50 }
 0x7e2   :  { %3102 = vmatpush.msra.mxu3 %v3080_v13 }
 0x7e3   :  { %3168 = vmatpush.msrb.mxu0 %v3077_v63 }
 0x7e4   :  { %2853 = vmatpush.bf16.msrb.mxu2 %v2473_v4  ;;  %v2564_v62 = vpop.f32.mrf.mxu1  ;;  %v2510_v29 = vpop.f32.mrf.mxu0  ;;  %3103 = vmatpush.msra.mxu3 %v3079_v53 }
 0x7e5   :  { %3169 = vmatpush.msrb.mxu0 %v3076_v10 }
 0x7e6   :  { %3104 = vmatpush.msra.mxu3 %v3078_v50 }
 0x7e7   :  { %3170 = vmatpush.msrb.mxu0 %v3075_v19 }
 0x7e8   :  { %2854 = vmatpush.bf16.msrb.mxu2 %v2472_v3  ;;  %3105 = vmatpush.msra.mxu3 %v3077_v63 }
 0x7e9   :  { %3171 = vmatpush.msrb.mxu0 %v3074_v40 }
 0x7ea   :  { %3106 = vmatpush.msra.mxu3 %v3076_v10 }
 0x7eb   :  { %3172 = vmatpush.msrb.mxu0 %v3073_v17 }
 0x7ec   :  { %v2566_v15 = vpop.f32.mrf.mxu1  ;;  %v2512_v2 = vpop.f32.mrf.mxu0  ;;  %3107 = vmatpush.msra.mxu3 %v3075_v19 }
 0x7ed   :  { %v2570_v23 = vpack.c.bf16 %v2566_v15, %v2564_v62  ;;  %v2516_v58 = vpack.c.bf16 %v2512_v2, %v2510_v29  ;;  %v3072_v29 = vld [vmem:[#allocation17 + $0x30] sm:$0xff]  ;;  %v3071_v2 = vld [vmem:[#allocation17 + $0x28] sm:$0xff] }
 0x7ee   :  { %3108 = vmatpush.msra.mxu3 %v3074_v40  ;;  %3173 = vmatpush.msrb.mxu0 %v3072_v29 }
 0x7ef   :  { %4448 = vmatmul.msk.bf16.gmra.mxu2 %vm2020_vm12, %v2570_v23  ;;  %4474 = vmatmul.msk.bf16.gmra.mxu3 %vm2020_vm12, %v2516_v58  ;;  %v3070_v23 = vld [vmem:[#allocation17 + $0x20] sm:$0xff]  ;;  %v3069_v58 = vld [vmem:[#allocation17 + $0x18] sm:$0xff] }
 0x7f0   :  { %3109 = vmatpush.msra.mxu3 %v3073_v17  ;;  %3174 = vmatpush.msrb.mxu0 %v3071_v2 }
 0x7f2   :  { %3110 = vmatpush.msra.mxu3 %v3072_v29  ;;  %3175 = vmatpush.msrb.mxu0 %v3070_v23 }
 0x7f4   :  { %v2736_v37 = vpop.f32.mrf.mxu0  ;;  %3111 = vmatpush.msra.mxu3 %v3071_v2  ;;  %3176 = vmatpush.msrb.mxu0 %v3069_v58 }
 0x7f6   :  { %3112 = vmatpush.msra.mxu3 %v3070_v23 }
 0x7f8   :  { %3113 = vmatpush.msra.mxu3 %v3069_v58 }
 0x7fc   :  { %v2738_v31 = vpop.f32.mrf.mxu0 }
 0x7fd   :  { %v2746_v61 = vpack.c.bf16 %v2738_v31, %v2736_v37  ;;  %v3068_v37 = vld [vmem:[#allocation17 + $0x10] sm:$0xff] }
 0x7fe   :  { %3114 = vmatpush.msra.mxu3 %v3068_v37  ;;  %3177 = vmatpush.msrb.mxu0 %v3068_v37 }
 0x7ff   :  { %4484 = vmatmul.msk.bf16.vlgmr.msra.gmra.mxu2 %vm2489_vm13, %v4895_v21  ;;  %4509 = vmatmul.msk.bf16.vlgmr.msrb.gmra.mxu1 %vm2020_vm12, %v2746_v61  ;;  %v3083_v21 = vld [vmem:[#allocation19 + $0x8] sm:$0xff] }
 0x800   :  { %3201 = vmatpush.msra.mxu2 %v3083_v21 }
 0x804   :  { %v2976_v38 = vpop.f32.mrf.mxu0 }
 0x80c   :  { %v2978_v51 = vpop.f32.mrf.mxu0 }
 0x80d   :  { %v2986_v33 = vpack.c.bf16 %v2978_v51, %v2976_v38 }
 0x80f   :  { %4519 = vmatmul.msk.bf16.vlgmr.msrb.gmra.mxu2 %vm2489_vm13, %v4902_v16  ;;  %v5461_v16 = vmov 32.0  }
 0x810   :  { %5002 = vrcp.f32 %v5461_v16 }
 0x814   :  { %v2981_v7 = vpop.f32.mrf.mxu0 }
 0x81c   :  { %v2983_v41 = vpop.f32.mrf.mxu0 }
 0x81d   :  { %v2987_v49 = vpack.c.bf16 %v2983_v41, %v2981_v7 }
 0x81f   :  { %4520 = vmatmul.msk.bf16.gmra.mxu2 %vm2489_vm13, %v4903_v60  ;;  %v3067_v60 = vld [vmem:[#allocation17 + $0x8] sm:$0xff] }
 0x820   :  { %3115 = vmatpush.msra.mxu3 %v3067_v60  ;;  %3178 = vmatpush.msrb.mxu0 %v3067_v60 }
 0x822   :  { %3116 = vmatpush.msra.mxu3 %v3066_v14  ;;  %3179 = vmatpush.msrb.mxu0 %v3066_v14 }
 0x862   :  { %v6531_v20 = vpop.f32.mrf.mxu2  ;;  %v2696_v43 = vpop.f32.mrf.mxu3 }
 0x863   :  { %v2697_v31 = vadd.f32 %v2696_v43, %v6531_v20 }
 0x86a   :  { %v6533_v55 = vpop.f32.mrf.mxu2  ;;  %v2698_v57 = vpop.f32.mrf.mxu3 }
 0x86b   :  { %v2699_v5 = vadd.f32 %v2698_v57, %v6533_v55 }
 0x872   :  { %v6535_v1 = vpop.f32.mrf.mxu2  ;;  %v2701_v30 = vpop.f32.mrf.mxu3 }
 0x873   :  { %v2702_v11 = vadd.f32 %v2701_v30, %v6535_v1  ;;  %v5003_v1 = vpop.eup %5002 }
 0x874   :  { %vm3098_vm14 = vweird.f32 %v5003_v1 }
 0x87a   :  { %v6537_v25 = vpop.f32.mrf.mxu2  ;;  %v2703_v26 = vpop.f32.mrf.mxu3 }
 0x87b   :  { %v2704_v45 = vadd.f32 %v2703_v26, %v6537_v25 }
 0x87c   :  { %v6544_v34 = vpop.f32.mrf.mxu1 }
 0x87d   :  { %v2822_v39 = vadd.f32 %v6544_v34, %v2697_v31 }
 0x882   :  { %v2741_v59 = vpop.f32.mrf.mxu2 }
 0x884   :  { %v2814_v46 = vpop.f32.mrf.mxu1 }
 0x885   :  { %v2823_v61 = vadd.f32 %v2814_v46, %v2699_v5  ;;  %v3082_v46 = vld [vmem:[#allocation19] sm:$0xff] }
 0x886   :  { %3202 = vmatpush.msra.mxu2 %v3082_v46 }
 0x88a   :  { %v2743_v27 = vpop.f32.mrf.mxu2 }
 0x88b   :  { %v2747_v52 = vpack.c.bf16 %v2743_v27, %v2741_v59  ;;  %v3094_v59 = vmul.f32 32.0, %v5003_v1 }
 0x88d   :  { %4510 = vmatmul.msk.bf16.gmra.mxu1 %vm2020_vm12, %v2747_v52 }
 0x892   :  { %v2856_v0 = vpop.f32.mrf.mxu2 }
 0x89a   :  { %v2858_v28 = vpop.f32.mrf.mxu2 }
 0x89b   :  { %v2866_v4 = vpack.c.bf16 %v2858_v28, %v2856_v0 }
 0x89d   :  { %4545 = vmatmul.msk.bf16.vlgmr.msrb.gmra.mxu3 %vm2020_vm12, %v2866_v4  ;;  %4581 = vmatmul.msk.bf16.vlgmr.msra.gmra.mxu1 %vm2020_vm12, %v2986_v33  ;;  %v3095_v33 = vsub.f32 1.0, %v3094_v59 }
 0x89e   :  { %3139 = vmatpush.msrb.mxu3 %v3083_v21  ;;  %v4927_v21 = vld [vmem:[#allocation22 + $0x38] sm:$0xff] }
 0x89f   :  { %v3096_v7 = vmul.f32 %v5003_v1, %v3095_v33  ;;  %3362 = vmatpush.bf16.msrb.mxu1 %v4927_v21  ;;  %v4931_v33 = vld [vmem:[#allocation22 + $0x58] sm:$0xff]  ;;  %v4944_v21 = vld [vmem:[#allocation23 + $0x40] sm:$0xff] }
 0x8a0   :  { %3140 = vmatpush.msrb.mxu3 %v3082_v46 }
 0x8a1   :  { %v3097_v25 = vadd.f32 %v5003_v1, %v3096_v7  ;;  %v4923_v7 = vld [vmem:[#allocation22 + $0x18] sm:$0xff] }
 0x8a2   :  { %v2861_v3 = vpop.f32.mrf.mxu2 }
 0x8aa   :  { %v2863_v12 = vpop.f32.mrf.mxu2 }
 0x8ab   :  { %v2867_v24 = vpack.c.bf16 %v2863_v12, %v2861_v3 }
 0x8ad   :  { %4546 = vmatmul.msk.bf16.gmra.mxu3 %vm2020_vm12, %v2867_v24  ;;  %4582 = vmatmul.msk.bf16.gmra.mxu1 %vm2020_vm12, %v2987_v49  ;;  %v3099_v24 = vsel %vm3098_vm14, %v5003_v1, %v3097_v25  ;;  %v4928_v25 = vld [vmem:[#allocation22 + $0x40] sm:$0xff] }
 0x90a   :  { %v2817_v6 = vpop.f32.mrf.mxu1 }
 0x90b   :  { %v2824_v55 = vadd.f32 %v2817_v6, %v2702_v11  ;;  %v4926_v11 = vld [vmem:[#allocation22 + $0x30] sm:$0xff] }
 0x90c   :  { %3363 = vmatpush.bf16.msrb.mxu1 %v4926_v11 }
 0x912   :  { %v6546_v54 = vpop.f32.mrf.mxu1 }
 0x913   :  { %v2825_v48 = vadd.f32 %v6546_v54, %v2704_v45 }
 0x91a   :  { %v3052_v44 = vpop.f32.mrf.mxu1 }
 0x920   :  { %v2932_v32 = vpop.f32.mrf.mxu3 }
 0x921   :  { %v2942_v18 = vadd.f32 %v2932_v32, %v2822_v39 }
 0x922   :  { %v3054_v62 = vpop.f32.mrf.mxu1 }
 0x923   :  { %v3062_v9 = vadd.f32 %v3052_v44, %v2942_v18 }
 0x928   :  { %v2934_v15 = vpop.f32.mrf.mxu3 }
 0x929   :  { %v2943_v35 = vadd.f32 %v2934_v15, %v2823_v61 }
 0x92a   :  { %v3057_v8 = vpop.f32.mrf.mxu1 }
 0x92b   :  { %v3063_v42 = vadd.f32 %v3054_v62, %v2943_v35 }
 0x92d   :  { %v3084_v38 = vadd.f32 %v3063_v42, %v3062_v9 }
 0x930   :  { %v2937_v36 = vpop.f32.mrf.mxu3 }
 0x931   :  { %v2944_v20 = vadd.f32 %v2937_v36, %v2824_v55  ;;  %v4925_v36 = vld [vmem:[#allocation22 + $0x28] sm:$0xff] }
 0x932   :  { %v3059_v52 = vpop.f32.mrf.mxu1  ;;  %3364 = vmatpush.bf16.msrb.mxu1 %v4925_v36 }
 0x933   :  { %v3064_v47 = vadd.f32 %v3057_v8, %v2944_v20 }
 0x935   :  { %v3085_v0 = vadd.f32 %v3084_v38, %v3064_v47  ;;  %v4918_v38 = vld [vmem:[#allocation20] sm:$0xff] }
 0x938   :  { %v2939_v56 = vpop.f32.mrf.mxu3 }
 0x939   :  { %v2945_v27 = vadd.f32 %v2939_v56, %v2825_v48  ;;  %v4935_v56 = vld [vmem:[#allocation22 + $0x78] sm:$0xff] }
 0x93b   :  { %v3065_v51 = vadd.f32 %v3059_v52, %v2945_v27  ;;  %v4919_v27 = vld [vmem:[#allocation20 + $0x8] sm:$0xff]  ;;  %v4934_v52 = vld [vmem:[#allocation22 + $0x70] sm:$0xff] }
 0x93d   :  { %v3086_v28 = vadd.f32 %v3085_v0, %v3065_v51  ;;  %v4933_v0 = vld [vmem:[#allocation22 + $0x68] sm:$0xff] }
 0x93f   :  { %v3087_v4 = vrot.slane %v3086_v28, 4 }
 0x941   :  { %v3088_v3 = vadd.f32 %v3087_v4, %v3086_v28  ;;  %v4924_v28 = vld [vmem:[#allocation22 + $0x20] sm:$0xff]  ;;  %v4930_v4 = vld [vmem:[#allocation22 + $0x50] sm:$0xff] }
 0x942   :  { %3365 = vmatpush.bf16.msrb.mxu1 %v4924_v28 }
 0x943   :  { %v3089_v41 = vrot.slane %v3088_v3, 2 }
 0x945   :  { %v3090_v49 = vadd.f32 %v3089_v41, %v3088_v3  ;;  %v4929_v3 = vld [vmem:[#allocation22 + $0x48] sm:$0xff]  ;;  %v4922_v41 = vld [vmem:[#allocation22 + $0x10] sm:$0xff] }
 0x946   :  { %3366 = vmatpush.bf16.msrb.mxu1 %v4923_v7 }
 0x947   :  { %v3091_v12 = vrot.slane %v3090_v49, 1 }
 0x949   :  { %v3092_v34 = vadd.f32 %v3091_v12, %v3090_v49  ;;  %v4921_v49 = vld [vmem:[#allocation22 + $0x8] sm:$0xff]  ;;  %v4920_v12 = vld [vmem:[#allocation22] sm:$0xff] }
 0x94a   :  { %3367 = vmatpush.bf16.msrb.mxu1 %v4922_v41 }
 0x94b   :  { %v3100_v43 = vmul.f32 %v3099_v24, %v3092_v34 }
 0x94d   :  { %3117 = vmatmul.f32.vlgmr.msra.gmra.mxu3 %v3100_v43 }
 0x94e   :  { %3368 = vmatpush.bf16.msrb.mxu1 %v4921_v49 }
 0x952   :  { %3369 = vmatpush.bf16.msrb.mxu1 %v4920_v12 }
 0x9d0   :  { %v3118_v57 = vpop.f32.mrf.mxu3 }
 0x9d1   :  { %4583 = vmatmul.msk.f32.vlgmr.msrb.gmra.mxu3 %vm3121_vm15, %v3118_v57 }
 0xa54   :  { %v3142_v6 = vpop.f32.mrf.mxu3 }
 0xa55   :  { %v3145_v22 = vperm.slane %v3142_v6, 0 }
 0xa57   :  { %v3146_v30 = vsub.f32 %v3062_v9, %v3145_v22  ;;  %v3147_v13 = vsub.f32 %v3063_v42, %v3145_v22  ;;  %v3148_v54 = vsub.f32 %v3064_v47, %v3145_v22  ;;  %v3149_v53 = vsub.f32 %v3065_v51, %v3145_v22  ;;  %v4932_v51 = vld [vmem:[#allocation22 + $0x60] sm:$0xff] }
 0xa59   :  { %v3150_v50 = vmul.f32 %v3146_v30, %v3146_v30  ;;  %v3151_v63 = vmul.f32 %v3147_v13, %v3147_v13  ;;  %v3152_v26 = vmul.f32 %v3148_v54, %v3148_v54  ;;  %v3153_v44 = vmul.f32 %v3149_v53, %v3149_v53 }
 0xa5b   :  { %v3154_v10 = vadd.f32 %v3151_v63, %v3150_v50 }
 0xa5d   :  { %v3155_v32 = vadd.f32 %v3154_v10, %v3152_v26 }
 0xa5f   :  { %v3156_v19 = vadd.f32 %v3155_v32, %v3153_v44 }
 0xa61   :  { %v3157_v40 = vrot.slane %v3156_v19, 4 }
 0xa63   :  { %v3158_v17 = vadd.f32 %v3157_v40, %v3156_v19  ;;  %v4660_v40 = vld [vmem:[%s6605_s13 + $0x2] sm:$0x3] }
 0xa65   :  { %v3159_v62 = vrot.slane %v3158_v17, 2 }
 0xa67   :  { %v3160_v29 = vadd.f32 %v3159_v62, %v3158_v17  ;;  %v3441_v17 = vld [vmem:[%s6605_s13] sm:$0x3]  ;;  %v4696_v62 = vld [vmem:[%s6605_s13 + $0x4] sm:$0x3] }
 0xa69   :  { %v3161_v15 = vrot.slane %v3160_v29, 1 }
 0xa6b   :  { %v3162_v2 = vadd.f32 %v3161_v15, %v3160_v29  ;;  %v4939_v29 = vld [vmem:[#allocation23 + $0x18] sm:$0xff]  ;;  %v4938_v15 = vld [vmem:[#allocation23 + $0x10] sm:$0xff] }
 0xa6d   :  { %v3163_v23 = vmul.f32 %v3162_v2, %v3099_v24  ;;  %v4937_v2 = vld [vmem:[#allocation23 + $0x8] sm:$0xff] }
 0xa6f   :  { %3180 = vmatmul.f32.vlgmr.msrb.gmra.mxu0 %v3163_v23  ;;  %v4947_v23 = vld [vmem:[#allocation23 + $0x58] sm:$0xff] }
 0xaec   :  { %v3181_v58 = vpop.f32.mrf.mxu0 }
 0xaed   :  { %4584 = vmatmul.msk.f32.vlgmr.msra.gmra.mxu2 %vm3121_vm15, %v3181_v58  ;;  %v4936_v58 = vld [vmem:[#allocation23] sm:$0xff] }
 0xb70   :  { %v3204_v5 = vpop.f32.mrf.mxu2 }
 0xb71   :  { %v3205_v37 = vadd.f32 1e-05, %v3204_v5  ;;  %v4946_v5 = vld [vmem:[#allocation23 + $0x50] sm:$0xff] }
 0xb73   :  { %5004 = vrsqrt.f32 %v3205_v37  ;;  %vm3213_vm1 = vweird.f32 %v3205_v37 }
 0xb79   :  { %v5005_v31 = vpop.eup %5004 }
 0xb7a   :  { %v3208_v61 = vmul.f32 %v5005_v31, %v3205_v37  ;;  %vm3214_vm0 = vweird.f32 %v5005_v31  ;;  %v4945_v37 = vld [vmem:[#allocation23 + $0x48] sm:$0xff] }
 0xb7b   :  { %vm3215_vm2 = vmor %vm3213_vm1, %vm3214_vm0 }
 0xb7c   :  { %v3209_v16 = vmul.f32 %v5005_v31, %v3208_v61 }
 0xb7e   :  { %v3210_v60 = vmul.f32 0.5, %v3209_v16 }
 0xb80   :  { %v3211_v8 = vsub.f32 1.5, %v3210_v60 }
 0xb82   :  { %v3212_v39 = vmul.f32 %v5005_v31, %v3211_v8  ;;  %v4715_v8 = vld [vmem:[%s6605_s13 + $0x6] sm:$0x3] }
 0xb84   :  { %v3216_v55 = vsel %vm3215_vm2, %v5005_v31, %v3212_v39 }
 0xb85   :  { %v3217_v35 = vperm.slane %v3216_v55, 0 }
 0xb87   :  { %v3220_v14 = vmul.f32 %v3217_v35, %v3148_v54  ;;  %v3221_v18 = vmul.f32 %v3217_v35, %v3149_v53  ;;  %v3218_v20 = vmul.f32 %v3217_v35, %v3146_v30  ;;  %v3219_v1 = vmul.f32 %v3217_v35, %v3147_v13  ;;  %v4943_v30 = vld [vmem:[#allocation23 + $0x38] sm:$0xff]  ;;  %v4942_v13 = vld [vmem:[#allocation23 + $0x30] sm:$0xff]  ;;  %v4941_v54 = vld [vmem:[#allocation23 + $0x28] sm:$0xff] }
 0xb88   :  { %3526 = vmatpush.bf16.msra.mxu1 %v4943_v30  ;;  %v4940_v53 = vld [vmem:[#allocation23 + $0x20] sm:$0xff] }
 0xb89   :  { %v3224_v45 = vmax.f32 %v3220_v14, 0.0  ;;  %v3225_v42 = vmax.f32 %v3221_v18, 0.0  ;;  %v3222_v9 = vmax.f32 %v3218_v20, 0.0  ;;  %v3223_v47 = vmax.f32 %v3219_v1, 0.0  ;;  %v4951_v14 = vld [vmem:[#allocation23 + $0x78] sm:$0xff]  ;;  %v4950_v18 = vld [vmem:[#allocation23 + $0x70] sm:$0xff] }
 0xb8a   :  { %v4949_v20 = vld [vmem:[#allocation23 + $0x68] sm:$0xff]  ;;  %v4948_v1 = vld [vmem:[#allocation23 + $0x60] sm:$0xff] }
 0xb8b   :  { %v3232_v48 = vpack.c.bf16 %v3225_v42, %v3224_v45  ;;  %v3231_v59 = vpack.c.bf16 %v3223_v47, %v3222_v9 }
 0xb8c   :  { %3527 = vmatpush.bf16.msra.mxu1 %v4942_v13 }
 0xb8d   :  { %3248 = vmatpush.bf16.msra.mxu3 %v3232_v48  ;;  %3270 = vmatpush.bf16.msrb.mxu2 %v3232_v48 }
 0xb90   :  { %3528 = vmatpush.bf16.msra.mxu1 %v4941_v54  ;;  %v4957_v54 = vld [vmem:[#allocation25 + $0x28] sm:$0xff] }
 0xb91   :  { %3249 = vmatpush.bf16.msra.mxu3 %v3231_v59  ;;  %3271 = vmatpush.bf16.msrb.mxu2 %v3231_v59 }
 0xb94   :  { %4589 = vmatmul.msk.bf16.vlgmr.msra.gmra.mxu3 %vm3238_vm4, %v4918_v38  ;;  %4594 = vmatmul.msk.bf16.vlgmr.msrb.gmra.mxu2 %vm3238_vm4, %v4919_v27 }
 0xb95   :  { %3424 = vmatpush.bf16.msrb.mxu3 %v4935_v56  ;;  %3529 = vmatpush.bf16.msra.mxu1 %v4940_v53 }
 0xb99   :  { %3425 = vmatpush.bf16.msrb.mxu3 %v4934_v52 }
 0xb9d   :  { %3426 = vmatpush.bf16.msrb.mxu3 %v4933_v0 }
 0xba1   :  { %3427 = vmatpush.bf16.msrb.mxu3 %v4932_v51  ;;  %v5462_v51 = vmov 4.0  }
 0xba2   :  { %5006 = vrcp.f32 %v5462_v51  ;;  %v4963_v51 = vld [vmem:[#allocation26 + $0x18] sm:$0xff] }
 0xba5   :  { %3428 = vmatpush.bf16.msrb.mxu3 %v4931_v33 }
 0xba8   :  { %v5007_v33 = vpop.eup %5006 }
 0xba9   :  { %3429 = vmatpush.bf16.msrb.mxu3 %v4930_v4  ;;  %v3722_v28 = vmul.f32 4.0, %v5007_v33 }
 0xbad   :  { %3430 = vmatpush.bf16.msrb.mxu3 %v4929_v3  ;;  %v3723_v3 = vsub.f32 1.0, %v3722_v28 }
 0xbaf   :  { %v3724_v49 = vmul.f32 %v5007_v33, %v3723_v3 }
 0xbb1   :  { %3431 = vmatpush.bf16.msrb.mxu3 %v4928_v25 }
 0xbb5   :  { %3634 = vmatpush.bf16.msra.mxu3 %v4947_v23 }
 0xbb9   :  { %3635 = vmatpush.bf16.msra.mxu3 %v4946_v5 }
 0xbbd   :  { %3636 = vmatpush.bf16.msra.mxu3 %v4945_v37 }
 0xbc1   :  { %3637 = vmatpush.bf16.msra.mxu3 %v4944_v21 }
 0xc17   :  { %v3251_v24 = vpop.f32.mrf.mxu3  ;;  %v3273_v34 = vpop.f32.mrf.mxu2 }
 0xc18   :  { %v3278_v57 = vmax.f32 %v3251_v24, %v3273_v34  ;;  %v4959_v24 = vld [vmem:[#allocation25 + $0x38] sm:$0xff] }
 0xc1f   :  { %v3253_v43 = vpop.f32.mrf.mxu3  ;;  %v3275_v46 = vpop.f32.mrf.mxu2 }
 0xc20   :  { %v3279_v6 = vmax.f32 %v3253_v43, %v3275_v46  ;;  %v3725_v46 = vadd.f32 %v5007_v33, %v3724_v49  ;;  %v4960_v49 = vld [vmem:[#allocation26] sm:$0xff] }
 0xc22   :  { %v3313_v22 = vpack.c.bf16 %v3279_v6, %v3278_v57  ;;  %v4958_v6 = vld [vmem:[#allocation25 + $0x30] sm:$0xff] }
 0xc24   :  { %3432 = vmatmul.bf16.vlgmr.msrb.gmra.mxu3 %v3313_v22  ;;  %3370 = vmatmul.bf16.vlgmr.msrb.gmra.mxu1 %v3313_v22 }
 0xca1   :  { %v3371_v50 = vpop.f32.mrf.mxu1 }
 0xca7   :  { %v3433_v63 = vpop.f32.mrf.mxu3 }
 0xca8   :  { %v3438_v44 = vmax.f32 %v3371_v50, %v3433_v63  ;;  %v4956_v63 = vld [vmem:[#allocation25 + $0x20] sm:$0xff] }
 0xca9   :  { %v3373_v26 = vpop.f32.mrf.mxu1 }
 0xcaf   :  { %v3435_v10 = vpop.f32.mrf.mxu3 }
 0xcb0   :  { %v3439_v32 = vmax.f32 %v3373_v26, %v3435_v10 }
 0xcb2   :  { %v3440_v19 = vpack.c.bf16 %v3439_v32, %v3438_v44  ;;  %v4955_v44 = vld [vmem:[#allocation25 + $0x18] sm:$0xff] }
 0xcb4   :  { %3479 = vmatpush.bf16.msra.mxu0 %v3440_v19  ;;  %3452 = vmatpush.bf16.msra.mxu2 %v3440_v19 }
 0xcb5   :  { %3656 = vmatpush.bf16.msrb.mxu1 %v3440_v19 }
 0xcb7   :  { %4661 = vmatmul.msk.bf16.vlgmr.msra.gmra.mxu0 %vm3121_vm15, %v4660_v40  ;;  %4659 = vmatmul.msk.bf16.vlgmr.msra.gmra.mxu2 %vm3121_vm15, %v3441_v17  ;;  %v4954_v40 = vld [vmem:[#allocation25 + $0x10] sm:$0xff] }
 0xcb8   :  { %3587 = vmatpush.bf16.msrb.mxu0 %v3440_v19  ;;  %3566 = vmatpush.bf16.msrb.mxu2 %v4939_v29  ;;  %v4953_v29 = vld [vmem:[#allocation25 + $0x8] sm:$0xff] }
 0xcbc   :  { %3567 = vmatpush.bf16.msrb.mxu2 %v4938_v15  ;;  %3817 = vmatpush.bf16.msra.mxu0 %v4959_v24 }
 0xcc0   :  { %3568 = vmatpush.bf16.msrb.mxu2 %v4937_v2  ;;  %3818 = vmatpush.bf16.msra.mxu0 %v4958_v6  ;;  %v4952_v2 = vld [vmem:[#allocation25] sm:$0xff] }
 0xcc4   :  { %3569 = vmatpush.bf16.msrb.mxu2 %v4936_v58  ;;  %3819 = vmatpush.bf16.msra.mxu0 %v4957_v54 }
 0xcc7   :  { %4697 = vmatmul.msk.bf16.vlgmr.msrb.gmra.mxu0 %vm3121_vm15, %v4696_v62 }
 0xcc8   :  { %3703 = vmatpush.bf16.msra.mxu2 %v4951_v14  ;;  %3820 = vmatpush.bf16.msra.mxu0 %v4956_v63 }
 0xccc   :  { %3704 = vmatpush.bf16.msra.mxu2 %v4950_v18  ;;  %3821 = vmatpush.bf16.msra.mxu0 %v4955_v44 }
 0xcd0   :  { %3705 = vmatpush.bf16.msra.mxu2 %v4949_v20  ;;  %3822 = vmatpush.bf16.msra.mxu0 %v4954_v40  ;;  %v4967_v20 = vld [vmem:[#allocation26 + $0x38] sm:$0xff] }
 0xcd1   :  { %3930 = vmatpush.bf16.msrb.mxu3 %v4967_v20 }
 0xcd4   :  { %3706 = vmatpush.bf16.msra.mxu2 %v4948_v1  ;;  %3823 = vmatpush.bf16.msra.mxu0 %v4953_v29 }
 0xcd8   :  { %3824 = vmatpush.bf16.msra.mxu0 %v4952_v2 }
 0xd34   :  { %v3481_v31 = vpop.f32.mrf.mxu0 }
 0xd35   :  { %v3485_v61 = vpack.c.bf16 %v3481_v31, %v3481_v31 }
 0xd37   :  { %4678 = vmatmul.msk.bf16.vlgmr.msra.gmra.mxu1 %vm1600_vm3, %v3485_v61 }
 0xd3a   :  { %v3454_v11 = vpop.f32.mrf.mxu2 }
 0xd3b   :  { %v3458_v16 = vpack.c.bf16 %v3454_v11, %v3454_v11 }
 0xd3c   :  { %v3483_v60 = vpop.f32.mrf.mxu0 }
 0xd3d   :  { %4695 = vmatmul.msk.bf16.vlgmr.msrb.gmra.mxu2 %vm1600_vm3, %v3458_v16 }
 0xd42   :  { %v3456_v36 = vpop.f32.mrf.mxu2 }
 0xd44   :  { %v3589_v39 = vpop.f32.mrf.mxu0 }
 0xd45   :  { %v3593_v55 = vpack.c.bf16 %v3589_v39, %v3589_v39 }
 0xd47   :  { %4716 = vmatmul.msk.bf16.vlgmr.msrb.gmra.mxu1 %vm3121_vm15, %v4715_v8  ;;  %4714 = vmatmul.msk.bf16.vlgmr.msra.gmra.mxu3 %vm1600_vm3, %v3593_v55 }
 0xd4c   :  { %v3591_v35 = vpop.f32.mrf.mxu0 }
 0xdb4   :  { %v3531_v45 = vpop.f32.mrf.mxu1 }
 0xdbc   :  { %v3533_v42 = vpop.f32.mrf.mxu1 }
 0xdc0   :  { %v3571_v48 = vpop.f32.mrf.mxu2 }
 0xdc1   :  { %v3572_v9 = vadd.f32 %v3571_v48, %v3531_v45  ;;  %v4966_v48 = vld [vmem:[#allocation26 + $0x30] sm:$0xff] }
 0xdc2   :  { %3931 = vmatpush.bf16.msrb.mxu3 %v4966_v48 }
 0xdc4   :  { %v3658_v47 = vpop.f32.mrf.mxu1 }
 0xdc5   :  { %v3662_v56 = vpack.c.bf16 %v3658_v47, %v3658_v47 }
 0xdc7   :  { %4733 = vmatmul.msk.bf16.vlgmr.msra.gmra.mxu2 %vm1600_vm3, %v3662_v56  ;;  %vm3726_vm3 = vweird.f32 %v5007_v33  ;;  %v4965_v56 = vld [vmem:[#allocation26 + $0x28] sm:$0xff] }
 0xdc8   :  { %v3573_v59 = vpop.f32.mrf.mxu2  ;;  %v6577_v30 = vsel %vm3726_vm3, %v5007_v33, %v3725_v46  ;;  %3932 = vmatpush.bf16.msrb.mxu3 %v4965_v56 }
 0xdca   :  { %v3639_v38 = vpop.f32.mrf.mxu3 }
 0xdcb   :  { %v3643_v27 = vadd.f32 %v3639_v38, %v3572_v9 }
 0xdcc   :  { %v3660_v52 = vpop.f32.mrf.mxu1 }
 0xdd2   :  { %v3641_v0 = vpop.f32.mrf.mxu3 }
 0xe4a   :  { %v3708_v4 = vpop.f32.mrf.mxu2 }
 0xe4b   :  { %v3712_v7 = vadd.f32 %v3708_v4, %v3643_v27  ;;  %v4964_v27 = vld [vmem:[#allocation26 + $0x20] sm:$0xff]  ;;  %v4962_v4 = vld [vmem:[#allocation26 + $0x10] sm:$0xff] }
 0xe4c   :  { %3933 = vmatpush.bf16.msrb.mxu3 %v4964_v27 }
 0xe4d   :  { %v3714_v41 = vsel %vm3713_vm5, %v3712_v7, 0.0 }
 0xe4e   :  { %v3715_v25 = vrot.slane %v3714_v41, 4 }
 0xe50   :  { %v3716_v12 = vadd.f32 %v3715_v25, %v3714_v41  ;;  %3934 = vmatpush.bf16.msrb.mxu3 %v4963_v51  ;;  %v4961_v41 = vld [vmem:[#allocation26 + $0x8] sm:$0xff] }
 0xe52   :  { %v3717_v34 = vrot.slane %v3716_v12, 2  ;;  %v3710_v43 = vpop.f32.mrf.mxu2 }
 0xe54   :  { %v3718_v57 = vadd.f32 %v3717_v34, %v3716_v12  ;;  %3935 = vmatpush.bf16.msrb.mxu3 %v4962_v4 }
 0xe56   :  { %v3719_v22 = vrot.slane %v3718_v57, 1 }
 0xe58   :  { %v3720_v13 = vadd.f32 %v3719_v22, %v3718_v57  ;;  %3936 = vmatpush.bf16.msrb.mxu3 %v4961_v41 }
 0xe5a   :  { %v3728_v53 = vmul.f32 %v6577_v30, %v3720_v13 }
 0xe5c   :  { %v3729_v50 = vsub.f32 %v3712_v7, %v3728_v53  ;;  %3937 = vmatpush.bf16.msrb.mxu3 %v4960_v49 }
 0xe5e   :  { %v3730_v26 = vmul.f32 %v3729_v50, %v3729_v50 }
 0xe60   :  { %v3731_v10 = vsel %vm3713_vm5, %v3730_v26, 0.0 }
 0xe61   :  { %v3732_v32 = vrot.slane %v3731_v10, 4 }
 0xe63   :  { %v3733_v19 = vadd.f32 %v3732_v32, %v3731_v10 }
 0xe65   :  { %v3734_v17 = vrot.slane %v3733_v19, 2 }
 0xe67   :  { %v3735_v62 = vadd.f32 %v3734_v17, %v3733_v19 }
 0xe69   :  { %v3736_v15 = vrot.slane %v3735_v62, 1 }
 0xe6b   :  { %v3737_v23 = vadd.f32 %v3736_v15, %v3735_v62 }
 0xe6d   :  { %v3738_v58 = vmul.f32 %v3737_v23, %v6577_v30 }
 0xe6f   :  { %v3739_v5 = vadd.f32 1e-05, %v3738_v58 }
 0xe71   :  { %5008 = vrsqrt.f32 %v3739_v5  ;;  %vm3746_vm7 = vweird.f32 %v3739_v5 }
 0xe77   :  { %v5009_v37 = vpop.eup %5008 }
 0xe78   :  { %v3741_v21 = vmul.f32 %v5009_v37, %v3739_v5  ;;  %vm3747_vm6 = vweird.f32 %v5009_v37 }
 0xe79   :  { %vm3748_vm8 = vmor %vm3746_vm7, %vm3747_vm6 }
 0xe7a   :  { %v3742_v31 = vmul.f32 %v5009_v37, %v3741_v21 }
 0xe7c   :  { %v3743_v61 = vmul.f32 0.5, %v3742_v31 }
 0xe7e   :  { %v3744_v11 = vsub.f32 1.5, %v3743_v61 }
 0xe80   :  { %v3745_v16 = vmul.f32 %v5009_v37, %v3744_v11 }
 0xe82   :  { %v3749_v60 = vsel %vm3748_vm8, %v5009_v37, %v3745_v16 }
 0xe83   :  { %v3750_v36 = vmul.f32 %v3749_v60, %v3729_v50 }
 0xe85   :  { %v3751_v8 = vmax.f32 %v3750_v36, 0.0 }
 0xe87   :  { %v3752_v39 = vpack.c.bf16 %v3751_v8, %v3751_v8 }
 0xe89   :  { %3825 = vmatmul.bf16.vlgmr.msra.gmra.mxu0 %v3752_v39 }
 0xf06   :  { %v3826_v55 = vpop.f32.mrf.mxu0 }
 0xf07   :  { %v3830_v35 = vsel %vm3713_vm5, %v3826_v55, 0.0 }
 0xf08   :  { %v3831_v14 = vrot.slane %v3830_v35, 4 }
 0xf0a   :  { %v3832_v18 = vadd.f32 %v3831_v14, %v3830_v35 }
 0xf0c   :  { %v3833_v1 = vrot.slane %v3832_v18, 2 }
 0xf0e   :  { %v3834_v45 = vadd.f32 %v3833_v1, %v3832_v18  ;;  %v3828_v42 = vpop.f32.mrf.mxu0 }
 0xf10   :  { %v3835_v9 = vrot.slane %v3834_v45, 1 }
 0xf12   :  { %v3836_v47 = vadd.f32 %v3835_v9, %v3834_v45 }
 0xf14   :  { %v3837_v59 = vmul.f32 %v3836_v47, %v6577_v30 }
 0xf16   :  { %v3838_v38 = vsub.f32 %v3826_v55, %v3837_v59 }
 0xf18   :  { %v3839_v52 = vmul.f32 %v3838_v38, %v3838_v38 }
 0xf1a   :  { %v3840_v0 = vsel %vm3713_vm5, %v3839_v52, 0.0 }
 0xf1b   :  { %v3841_v33 = vrot.slane %v3840_v0, 4 }
 0xf1d   :  { %v3842_v28 = vadd.f32 %v3841_v33, %v3840_v0 }
 0xf1f   :  { %v3843_v7 = vrot.slane %v3842_v28, 2 }
 0xf21   :  { %v3844_v3 = vadd.f32 %v3843_v7, %v3842_v28 }
 0xf23   :  { %v3845_v25 = vrot.slane %v3844_v3, 1 }
 0xf25   :  { %v3846_v12 = vadd.f32 %v3845_v25, %v3844_v3 }
 0xf27   :  { %v3847_v24 = vmul.f32 %v3846_v12, %v6577_v30  ;;  %v4995_v30 = vld [vmem:[%s6609_s17] ss:$0 sm:$0xff] }
 0xf29   :  { %v3848_v34 = vadd.f32 1e-05, %v3847_v24 }
 0xf2b   :  { %5010 = vrsqrt.f32 %v3848_v34  ;;  %vm3855_vm10 = vweird.f32 %v3848_v34 }
 0xf31   :  { %v5011_v43 = vpop.eup %5010 }
 0xf32   :  { %v3850_v46 = vmul.f32 %v5011_v43, %v3848_v34  ;;  %vm3856_vm9 = vweird.f32 %v5011_v43 }
 0xf33   :  { %vm3857_vm11 = vmor %vm3855_vm10, %vm3856_vm9 }
 0xf34   :  { %v3851_v57 = vmul.f32 %v5011_v43, %v3850_v46 }
 0xf36   :  { %v3852_v6 = vmul.f32 0.5, %v3851_v57 }
 0xf38   :  { %v3853_v22 = vsub.f32 1.5, %v3852_v6 }
 0xf3a   :  { %v3854_v13 = vmul.f32 %v5011_v43, %v3853_v22 }
 0xf3c   :  { %v3858_v54 = vsel %vm3857_vm11, %v5011_v43, %v3854_v13 }
 0xf3d   :  { %v3859_v53 = vmul.f32 %v3858_v54, %v3838_v38 }
 0xf3f   :  { %v3860_v50 = vmax.f32 %v3859_v53, 0.0 }
 0xf41   :  { %v3861_v63 = vpack.c.bf16 %v3860_v50, %v3860_v50 }
 0xf43   :  { %3938 = vmatmul.bf16.vlgmr.msrb.gmra.mxu3 %v3861_v63 }
 0xfc6   :  { %v3939_v26 = vpop.f32.mrf.mxu3 }
 0xfc7   :  { %v3940_v10 = vadd.f32 %v4995_v30, %v3939_v26 }
 0xfc9   :  { %3943 = vst [vmem:[#allocation28] sm:$0xf] %v3940_v10 }
 0xfca   :  { %3954 = dma.vmem_to_hbm [thread:$0]  %s3950_s6, 64, %s3952_s3, [#allocation4]  }
 0xfce   :  { %v3941_v44 = vpop.f32.mrf.mxu3 }
 0xfcf   :  { %5438 = dma.done.wait [#allocation4], 64  }
 0xfd0   :  { %5439 = vsyncadd [#allocation4], 4294967232 }
 0xfd1   :  { %3959 = vsyncpa [#allocation3], 1 }
 0xfd2   :  { %3960 = vsyncpa [#allocation6], 1 }
 0xfd3   :  { %3961 = vsyncpa [#allocation9], 1 }
 0xfd4   :  { %3962 = vsyncpa [#allocation12], 1 }
 0xfd5   :  { %3963 = vsyncpa [#allocation15], 1 }
 0xfd6   :  { %3964 = vsyncpa [#allocation18], 1 }
 0xfd7   :  { %3965 = vsyncpa [#allocation21], 1 }
 0xfd8   :  { %3966 = vsyncpa [#allocation24], 1 }
 0xfd9   :  { %3967 = vsyncpa [#allocation27], 1 }
 0xfda   :  { %3968 = vsyncpa [#allocation4], 1 }

</bundles_post_ra>
